<compile_context>
chip_gen: v7x
topology: tpu7x:2x2x1
jax: 0.10.0
libtpu: 0.0.40
codegen_flags: <defaults>
</compile_context>

<pallas_src>
import functools

import jax
import jax.numpy as jnp
from jax import lax
from jax.experimental import pallas as pl
from jax.experimental.pallas import tpu as pltpu


def _round_up(v, m):
    return (v + m - 1) // m * m


def _device_vmem_bytes():
    """Physical VMEM per core; conservative (v7x-sized) fallback if the query fails."""
    try:
        cap = getattr(pltpu.get_tpu_info(), "vmem_capacity_bytes", None)
        if cap:
            return int(cap)
    except Exception:
        pass
    return 64 * 1024 * 1024


def _layernorm(z, gamma, beta, eps=1e-5):
    mu = jnp.mean(z, axis=-1, keepdims=True)
    var = jnp.mean((z - mu) ** 2, axis=-1, keepdims=True)
    return (z - mu) * lax.rsqrt(var + eps) * gamma + beta


def _gelu_tanh(z):
    # tanh-approx GELU: the tanh goes to the EUP slot, keeping the FF phase off the VALU.
    # (PyTorch nn.GELU() default is exact erf; max deviation ~1e-3, well inside tolerance.)
    return 0.5 * z * (1.0 + jnp.tanh(0.7978845608028654 * (z + 0.044715 * z * z * z)))


def _gca_kernel(media_ref, k_ref, v_ref,
                wproj_ref, bproj_ref,
                ln1g_ref, ln1b_ref,
                wq_ref, wout_ref,
                ln2g_ref, ln2b_ref,
                wff1_ref, wff2_ref,
                out_ref, *, heads, hd_p, ff_chunk):
    dim_text = out_ref.shape[-1]

    media = media_ref[0]          # (tile_m, dm_p)     bf16  query stream (projected below)
    k = k_ref[0]                  # (n_text, inner_p)  bf16  precomputed keys  (head-padded)
    v = v_ref[0]                  # (n_text, inner_p)  bf16  precomputed values (head-padded)
    tile_m = media.shape[0]

    # --- media_projection: nn.Linear(dim_media, dim_text) with bias (f32 accumulation) ---
    med = jnp.dot(media, wproj_ref[...], preferred_element_type=jnp.float32) + bproj_ref[...]

    # --- MaskedCrossAttention(med, x), media_locations=None -> no masking ---
    # 1/sqrt(head_dim) is folded into w_q; tanh(attn_gate) is folded into w_out (wrapper).
    q_in = _layernorm(med, ln1g_ref[...], ln1b_ref[...]).astype(jnp.bfloat16)
    q = jnp.dot(q_in, wq_ref[...], preferred_element_type=jnp.float32).astype(jnp.bfloat16)

    # Per-head softmax attention on 128-lane-aligned head blocks (hd_p = head_dim zero-padded
    # to 128 -> aligned slices, no XLU relayouts; padded lanes contribute 0).  The per-head
    # contexts are concatenated and hit the output projection as ONE large-K MXU matmul.
    # TODO(synk): for heads >= 16 switch to lax.fori_loop + a VMEM ctx scratch.
    # TODO(synk): for long n_text, tile K/V with a flash-style online-softmax inner loop.
    ctx_parts = []
    for h in range(heads):
        sl = slice(h * hd_p, (h + 1) * hd_p)
        qh, kh, vh = q[:, sl], k[:, sl], v[:, sl]
        sim = lax.dot_general(qh, kh, (((1,), (1,)), ((), ())),
                              preferred_element_type=jnp.float32)          # (tile_m, n_text)
        sim = sim - jnp.max(sim, axis=-1, keepdims=True)
        e = jnp.exp(sim)
        inv = pl.reciprocal(jnp.sum(e, axis=-1, keepdims=True), approx=True)   # EUP slot
        attn = (e * inv).astype(jnp.bfloat16)
        ctx_parts.append(jnp.dot(attn, vh, preferred_element_type=jnp.float32)
                         .astype(jnp.bfloat16))
    ctx = jnp.concatenate(ctx_parts, axis=-1)                               # (tile_m, inner_p)
    attn_out = jnp.dot(ctx, wout_ref[...], preferred_element_type=jnp.float32)

    y = attn_out + med            # tanh(attn_gate) already folded into w_out

    # --- FeedForward: LayerNorm -> Linear -> GELU(tanh) -> Linear, chunked over ff_inner ---
    # tanh(ff_gate) is folded into w_ff2 (wrapper).
    # TODO(synk): when w_ff1/w_ff2 exceed the per-core VMEM budget (v7x, very large dim_text),
    #             stream their ff_chunk slabs from HBM with pltpu.emit_pipeline instead of
    #             keeping them fully VMEM-resident.
    f_in = _layernorm(y, ln2g_ref[...], ln2b_ref[...]).astype(jnp.bfloat16)
    ffp = wff1_ref.shape[1]
    ff_out = jnp.zeros((tile_m, dim_text), jnp.float32)
    for c0 in range(0, ffp, ff_chunk):
        h1 = jnp.dot(f_in, wff1_ref[:, c0:c0 + ff_chunk],
                     preferred_element_type=jnp.float32)
        h1 = _gelu_tanh(h1).astype(jnp.bfloat16)
        ff_out = ff_out + jnp.dot(h1, wff2_ref[c0:c0 + ff_chunk, :],
                                  preferred_element_type=jnp.float32)

    out_ref[0] = (ff_out + y).astype(out_ref.dtype)


def gated_cross_attention_block(x, media, params, *, heads, head_dim,
                                tile_m_max=256, ff_chunk_max=2048, out_dtype=None):
    b, n_text, dim_text = x.shape
    _, m_seq, dim_media = media.shape
    inner = heads * head_dim
    ff_inner = params["w_ff1"].shape[1]
    out_dtype = x.dtype if out_dtype is None else out_dtype
    # dim_text should be a multiple of 128 for lane-dense layout; other sizes still compile
    # (blocks equal the full dim) but pay masked-lane cost.

    # ----- lane/sublane friendly padded sizes (all zero padding is semantics preserving) -----
    dm_p = _round_up(dim_media, 128)              # contraction dim of w_proj
    hd_p = _round_up(head_dim, 128)               # per-head lane block -> 128-aligned slices
    inner_p = heads * hd_p
    ff_chunk = min(ff_chunk_max, _round_up(ff_inner, 128))
    ffp = _round_up(ff_inner, ff_chunk)           # GELU(0)=0 and zero rows of w_ff2 -> no effect
    tile_m = min(_round_up(m_seq, 8), tile_m_max)
    m_pad = _round_up(m_seq, tile_m)
    m_tiles = m_pad // tile_m                     # NOTE(v7x): prefer even b*m_tiles so both
                                                  # TensorCores get work on the parallel axes.

    wdt = jnp.bfloat16
    f32 = jnp.float32
    scale = head_dim ** -0.5
    attn_gate_t = jnp.tanh(params["attn_gate"]).astype(f32).reshape(())
    ff_gate_t = jnp.tanh(params["ff_gate"]).astype(f32).reshape(())

    def pad_heads_cols(w):                        # (dim_text, inner) -> (dim_text, inner_p)
        w = w.reshape(dim_text, heads, head_dim)
        w = jnp.pad(w, ((0, 0), (0, 0), (0, hd_p - head_dim)))
        return w.reshape(dim_text, inner_p)

    # ----- weight prep (bf16 for the MXU; scales/gates folded in) -----
    w_proj = jnp.pad(params["w_proj"].astype(f32),
                     ((0, dm_p - dim_media), (0, 0))).astype(wdt)
    b_proj = params["b_proj"].reshape(1, dim_text).astype(f32)
    ln1_g = params["ln1_g"].reshape(1, dim_text).astype(f32)
    ln1_b = params["ln1_b"].reshape(1, dim_text).astype(f32)
    ln2_g = params["ln2_g"].reshape(1, dim_text).astype(f32)
    ln2_b = params["ln2_b"].reshape(1, dim_text).astype(f32)

    w_q = pad_heads_cols(params["w_q"].astype(f32) * scale).astype(wdt)
    w_out = params["w_out"].astype(f32).reshape(heads, head_dim, dim_text)
    w_out = jnp.pad(w_out, ((0, 0), (0, hd_p - head_dim), (0, 0))).reshape(inner_p, dim_text)
    w_out = (w_out * attn_gate_t).astype(wdt)
    w_ff1 = jnp.pad(params["w_ff1"].astype(f32), ((0, 0), (0, ffp - ff_inner))).astype(wdt)
    w_ff2 = jnp.pad(params["w_ff2"].astype(f32), ((0, ffp - ff_inner), (0, 0)))
    w_ff2 = (w_ff2 * ff_gate_t).astype(wdt)

    # K/V are identical for every m-tile of a batch -> project once per batch here, as one
    # fused (dim_text, 2*inner_p) matmul, instead of recomputing per grid step in the kernel.
    w_kv_p = jnp.concatenate([pad_heads_cols(params["w_kv"][:, :inner].astype(f32)),
                              pad_heads_cols(params["w_kv"][:, inner:].astype(f32))], axis=1)
    kv = jnp.einsum("bnd,de->bne", x.astype(f32), w_kv_p)
    k_p = kv[..., :inner_p].astype(wdt)
    v_p = kv[..., inner_p:].astype(wdt)

    media_p = jnp.pad(media.astype(f32),
                      ((0, 0), (0, m_pad - m_seq), (0, dm_p - dim_media))).astype(wdt)

    # ----- device-derived VMEM budget (fits v7x's 64 MiB as well as v5e/v6e's 128 MiB) -----
    out_bytes = jnp.dtype(out_dtype).itemsize
    weight_bytes = 2 * (dm_p * dim_text + dim_text * inner_p + inner_p * dim_text
                        + 2 * dim_text * ffp) + 4 * 5 * dim_text
    io_bytes = 2 * (tile_m * dm_p * 2 + 2 * n_text * inner_p * 2
                    + tile_m * dim_text * out_bytes)
    interm_bytes = 4 * tile_m * (2 * inner_p + n_text + 6 * dim_text + 2 * ff_chunk)
    vmem_need = int(1.3 * (weight_bytes + io_bytes + interm_bytes)) + (8 << 20)
    vmem_cap = _device_vmem_bytes()
    vmem_limit = int(min(vmem_cap - (2 << 20), max(32 << 20, vmem_need)))

    kernel = functools.partial(_gca_kernel, heads=heads, hd_p=hd_p, ff_chunk=ff_chunk)

    def run(single_buffer_weights):
        def resident(shape):
            # Constant block over the whole grid -> fetched once; single-buffered when supported.
            idx = lambda i, j, _r=len(shape): (0,) * _r
            if single_buffer_weights:
                return pl.BlockSpec(shape, idx, pipeline_mode=pl.Buffered(1))
            return pl.BlockSpec(shape, idx)

        def io_spec(shape, index_map, constant_when_b1=False):
            # K/V blocks never change when b == 1 -> drop the unused second pipeline buffer.
            if single_buffer_weights and constant_when_b1 and b == 1:
                return pl.BlockSpec(shape, index_map, pipeline_mode=pl.Buffered(1))
            return pl.BlockSpec(shape, index_map)

        grid_spec = pltpu.PrefetchScalarGridSpec(
            num_scalar_prefetch=0,
            grid=(b, m_tiles),
            in_specs=[
                io_spec((1, tile_m, dm_p), lambda i, j: (i, j, 0)),               # media (q)
                io_spec((1, n_text, inner_p), lambda i, j: (i, 0, 0), True),      # K
                io_spec((1, n_text, inner_p), lambda i, j: (i, 0, 0), True),      # V
                resident((dm_p, dim_text)),                                       # w_proj
                resident((1, dim_text)),                                          # b_proj
                resident((1, dim_text)),                                          # ln1 gamma
                resident((1, dim_text)),                                          # ln1 beta
                resident((dim_text, inner_p)),                                    # w_q (scaled)
                resident((inner_p, dim_text)),                                    # w_out (gated)
                resident((1, dim_text)),                                          # ln2 gamma
                resident((1, dim_text)),                                          # ln2 beta
                resident((dim_text, ffp)),                                        # w_ff1
                resident((ffp, dim_text)),                                        # w_ff2 (gated)
            ],
            out_specs=pl.BlockSpec((1, tile_m, dim_text), lambda i, j: (i, j, 0)),
        )
        return pl.pallas_call(
            kernel,
            out_shape=jax.ShapeDtypeStruct((b, m_pad, dim_text), out_dtype),
            grid_spec=grid_spec,
            compiler_params=pltpu.CompilerParams(
                dimension_semantics=("parallel", "parallel"),
                vmem_limit_bytes=vmem_limit),
        )(media_p, k_p, v_p, w_proj, b_proj, ln1_g, ln1_b,
          w_q, w_out, ln2_g, ln2_b, w_ff1, w_ff2)

    try:
        out = run(True)
    except Exception:
        # Fallback for toolchains where pipeline_mode=pl.Buffered(1) is not supported.
        out = run(False)

    return out[:, :m_seq, :]


def reference(x, media, params, *, heads, head_dim):
    """Pure-JAX f32 reference mirroring the PyTorch forward (exact-erf GELU)."""
    b, n, dt = x.shape
    _, m, dm = media.shape
    inner = heads * head_dim

    def ln(z, g, bb):
        mu = z.mean(-1, keepdims=True)
        var = ((z - mu) ** 2).mean(-1, keepdims=True)
        return (z - mu) / jnp.sqrt(var + 1e-5) * g + bb

    med = media @ params["w_proj"] + params["b_proj"]
    q = ln(med, params["ln1_g"], params["ln1_b"]) @ params["w_q"] * head_dim ** -0.5
    kv = x @ params["w_kv"]
    k, v = kv[..., :inner], kv[..., inner:]

    def split_heads(z):
        return z.reshape(b, -1, heads, head_dim).transpose(0, 2, 1, 3)

    qh, kh, vh = split_heads(q), split_heads(k), split_heads(v)
    sim = jnp.einsum("bhid,bhjd->bhij", qh, kh)
    sim = sim - sim.max(-1, keepdims=True)
    attn = jax.nn.softmax(sim, axis=-1)
    o = jnp.einsum("bhij,bhjd->bhid", attn, vh)
    o = o.transpose(0, 2, 1, 3).reshape(b, m, inner)
    y = o @ params["w_out"] * jnp.tanh(params["attn_gate"]) + med

    f = ln(y, params["ln2_g"], params["ln2_b"]) @ params["w_ff1"]
    f = 0.5 * f * (1.0 + lax.erf(f * (2.0 ** -0.5)))
    return f @ params["w_ff2"] * jnp.tanh(params["ff_gate"]) + y


if __name__ == "__main__":
    # Small, module-consistent shapes (dim_text a 128-multiple; dim_media / m_seq deliberately
    # non-aligned to exercise the wrapper-side padding; dim_text != dim_media so the media
    # projection is a real Linear).
    B, N_TEXT, M_SEQ = 2, 16, 12
    DIM_TEXT, DIM_MEDIA = 128, 96
    HEADS, HEAD_DIM, FF_MULT = 4, 32, 4
    INNER = HEADS * HEAD_DIM
    FF_INNER = DIM_TEXT * FF_MULT

    key = jax.random.PRNGKey(0)
    ks = jax.random.split(key, 12)

    params = {
        "w_proj": 0.05 * jax.random.normal(ks[0], (DIM_MEDIA, DIM_TEXT), jnp.float32),
        "b_proj": 0.05 * jax.random.normal(ks[1], (DIM_TEXT,), jnp.float32),
        "ln1_g": 1.0 + 0.05 * jax.random.normal(ks[2], (DIM_TEXT,), jnp.float32),
        "ln1_b": 0.05 * jax.random.normal(ks[3], (DIM_TEXT,), jnp.float32),
        "w_q": 0.05 * jax.random.normal(ks[4], (DIM_TEXT, INNER), jnp.float32),
        "w_kv": 0.05 * jax.random.normal(ks[5], (DIM_TEXT, 2 * INNER), jnp.float32),
        "w_out": 0.05 * jax.random.normal(ks[6], (INNER, DIM_TEXT), jnp.float32),
        "ln2_g": 1.0 + 0.05 * jax.random.normal(ks[7], (DIM_TEXT,), jnp.float32),
        "ln2_b": 0.05 * jax.random.normal(ks[8], (DIM_TEXT,), jnp.float32),
        "w_ff1": 0.05 * jax.random.normal(ks[9], (DIM_TEXT, FF_INNER), jnp.float32),
        "w_ff2": 0.05 * jax.random.normal(ks[10], (FF_INNER, DIM_TEXT), jnp.float32),
        # Module __init__ sets both gates to 0.0 (tanh(0)=0 would zero the gated branches);
        # use deterministic non-zero values so the attention / FF paths are exercised.
        "attn_gate": jnp.float32(0.5),
        "ff_gate": jnp.float32(-0.25),
    }

    kx, km = jax.random.split(ks[11])
    x = jax.random.normal(kx, (B, N_TEXT, DIM_TEXT), jnp.float32)       # text (k/v stream)
    media = jax.random.normal(km, (B, M_SEQ, DIM_MEDIA), jnp.float32)   # media (query stream)

    out = gated_cross_attention_block(x, media, params, heads=HEADS, head_dim=HEAD_DIM)
    out = jax.block_until_ready(out)

    ref = reference(x, media, params, heads=HEADS, head_dim=HEAD_DIM)
    assert out.shape == (B, M_SEQ, DIM_TEXT)
    # bf16 weights/activations + tanh-approx GELU + approx reciprocal inside the kernel vs.
    # an f32 exact-erf reference -> loose tolerance.
    assert jnp.allclose(out, ref, atol=3e-2, rtol=3e-2), "Pallas output mismatch vs JAX reference"

    print("KERNEL_OK")
</pallas_src>

<mosaic_0001>
module attributes {stable_mosaic.version = 11 : i64} {
  func.func @_gca_kernel(%arg0: i32, %arg1: i32, %arg2: memref<1x16x128xbf16, #tpu.memory_space<vmem>>, %arg3: memref<1x16x512xbf16, #tpu.memory_space<vmem>>, %arg4: memref<1x16x512xbf16, #tpu.memory_space<vmem>>, %arg5: memref<128x128xbf16, #tpu.memory_space<vmem>>, %arg6: memref<1x128xf32, #tpu.memory_space<vmem>>, %arg7: memref<1x128xf32, #tpu.memory_space<vmem>>, %arg8: memref<1x128xf32, #tpu.memory_space<vmem>>, %arg9: memref<128x512xbf16, #tpu.memory_space<vmem>>, %arg10: memref<512x128xbf16, #tpu.memory_space<vmem>>, %arg11: memref<1x128xf32, #tpu.memory_space<vmem>>, %arg12: memref<1x128xf32, #tpu.memory_space<vmem>>, %arg13: memref<128x512xbf16, #tpu.memory_space<vmem>>, %arg14: memref<512x128xbf16, #tpu.memory_space<vmem>>, %arg15: memref<1x16x128xf32, #tpu.memory_space<vmem>>) attributes {dimension_semantics = [#tpu.dimension_semantics<parallel>, #tpu.dimension_semantics<parallel>], iteration_bounds = array<i64: 2, 1>, scalar_prefetch = 0 : i64, scratch_operands = 0 : i64, tpu.core_type = #tpu.core_type<tc>, window_params = [{transform_indices = @transform_0, window_bounds = array<i64: 1, 16, 128>}, {transform_indices = @transform_1, window_bounds = array<i64: 1, 16, 512>}, {transform_indices = @transform_2, window_bounds = array<i64: 1, 16, 512>}, {pipeline_mode = #tpu.pipeline_mode<synchronous>, transform_indices = @transform_3, window_bounds = array<i64: 128, 128>}, {pipeline_mode = #tpu.pipeline_mode<synchronous>, transform_indices = @transform_4, window_bounds = array<i64: 1, 128>}, {pipeline_mode = #tpu.pipeline_mode<synchronous>, transform_indices = @transform_5, window_bounds = array<i64: 1, 128>}, {pipeline_mode = #tpu.pipeline_mode<synchronous>, transform_indices = @transform_6, window_bounds = array<i64: 1, 128>}, {pipeline_mode = #tpu.pipeline_mode<synchronous>, transform_indices = @transform_7, window_bounds = array<i64: 128, 512>}, {pipeline_mode = #tpu.pipeline_mode<synchronous>, transform_indices = @transform_8, window_bounds = array<i64: 512, 128>}, {pipeline_mode = #tpu.pipeline_mode<synchronous>, transform_indices = @transform_9, window_bounds = array<i64: 1, 128>}, {pipeline_mode = #tpu.pipeline_mode<synchronous>, transform_indices = @transform_10, window_bounds = array<i64: 1, 128>}, {pipeline_mode = #tpu.pipeline_mode<synchronous>, transform_indices = @transform_11, window_bounds = array<i64: 128, 512>}, {pipeline_mode = #tpu.pipeline_mode<synchronous>, transform_indices = @transform_12, window_bounds = array<i64: 512, 128>}, {transform_indices = @transform_13, window_bounds = array<i64: 1, 16, 128>}]} {
    %c0 = arith.constant 0 : index
    %c0_0 = arith.constant 0 : index
    %c0_1 = arith.constant 0 : index
    %0 = vector.load %arg2[%c0, %c0_0, %c0_1] : memref<1x16x128xbf16, #tpu.memory_space<vmem>>, vector<1x16x128xbf16>
    %1 = vector.shape_cast %0 : vector<1x16x128xbf16> to vector<16x128xbf16>
    %c0_2 = arith.constant 0 : index
    %c0_3 = arith.constant 0 : index
    %c0_4 = arith.constant 0 : index
    %2 = vector.load %arg3[%c0_2, %c0_3, %c0_4] : memref<1x16x512xbf16, #tpu.memory_space<vmem>>, vector<1x16x512xbf16>
    %3 = vector.shape_cast %2 : vector<1x16x512xbf16> to vector<16x512xbf16>
    %c0_5 = arith.constant 0 : index
    %c0_6 = arith.constant 0 : index
    %c0_7 = arith.constant 0 : index
    %4 = vector.load %arg4[%c0_5, %c0_6, %c0_7] : memref<1x16x512xbf16, #tpu.memory_space<vmem>>, vector<1x16x512xbf16>
    %5 = vector.shape_cast %4 : vector<1x16x512xbf16> to vector<16x512xbf16>
    %c0_8 = arith.constant 0 : index
    %c0_9 = arith.constant 0 : index
    %6 = vector.load %arg5[%c0_8, %c0_9] : memref<128x128xbf16, #tpu.memory_space<vmem>>, vector<128x128xbf16>
    %cst = arith.constant dense<0.000000e+00> : vector<16x128xf32>
    %7 = tpu.matmul %1, %6, %cst {dimension_numbers = #tpu.dot_dimension_numbers<[1], [0], [0], [1], [0, 0, 1, 1], [], []>} : vector<16x128xbf16>, vector<128x128xbf16>, vector<16x128xf32> -> vector<16x128xf32>
    %c0_10 = arith.constant 0 : index
    %c0_11 = arith.constant 0 : index
    %8 = vector.load %arg6[%c0_10, %c0_11] : memref<1x128xf32, #tpu.memory_space<vmem>>, vector<1x128xf32>
    %9 = vector.broadcast %8 : vector<1x128xf32> to vector<16x128xf32>
    %10 = arith.addf %7, %9 : vector<16x128xf32>
    %c0_12 = arith.constant 0 : index
    %c0_13 = arith.constant 0 : index
    %11 = vector.load %arg7[%c0_12, %c0_13] : memref<1x128xf32, #tpu.memory_space<vmem>>, vector<1x128xf32>
    %c0_14 = arith.constant 0 : index
    %c0_15 = arith.constant 0 : index
    %12 = vector.load %arg8[%c0_14, %c0_15] : memref<1x128xf32, #tpu.memory_space<vmem>>, vector<1x128xf32>
    %cst_16 = arith.constant dense<0.000000e+00> : vector<16xf32>
    %13 = vector.multi_reduction <add>, %10, %cst_16 [1] : vector<16x128xf32> to vector<16xf32>
    %14 = vector.shape_cast %13 : vector<16xf32> to vector<16x1xf32>
    %cst_17 = arith.constant 1.280000e+02 : f32
    %15 = vector.broadcast %cst_17 : f32 to vector<16x1xf32>
    %16 = arith.divf %14, %15 : vector<16x1xf32>
    %17 = vector.broadcast %16 : vector<16x1xf32> to vector<16x128xf32>
    %18 = arith.subf %10, %17 : vector<16x128xf32>
    %19 = arith.mulf %18, %18 : vector<16x128xf32>
    %cst_18 = arith.constant dense<0.000000e+00> : vector<16xf32>
    %20 = vector.multi_reduction <add>, %19, %cst_18 [1] : vector<16x128xf32> to vector<16xf32>
    %21 = vector.shape_cast %20 : vector<16xf32> to vector<16x1xf32>
    %cst_19 = arith.constant 1.280000e+02 : f32
    %22 = vector.broadcast %cst_19 : f32 to vector<16x1xf32>
    %23 = arith.divf %21, %22 : vector<16x1xf32>
    %24 = vector.broadcast %16 : vector<16x1xf32> to vector<16x128xf32>
    %25 = arith.subf %10, %24 : vector<16x128xf32>
    %cst_20 = arith.constant 9.99999974E-6 : f32
    %26 = vector.broadcast %cst_20 : f32 to vector<16x1xf32>
    %27 = arith.addf %23, %26 : vector<16x1xf32>
    %28 = math.rsqrt %27 : vector<16x1xf32>
    %29 = vector.broadcast %28 : vector<16x1xf32> to vector<16x128xf32>
    %30 = arith.mulf %25, %29 : vector<16x128xf32>
    %31 = vector.broadcast %11 : vector<1x128xf32> to vector<16x128xf32>
    %32 = arith.mulf %30, %31 : vector<16x128xf32>
    %33 = vector.broadcast %12 : vector<1x128xf32> to vector<16x128xf32>
    %34 = arith.addf %32, %33 : vector<16x128xf32>
    %35 = arith.truncf %34 : vector<16x128xf32> to vector<16x128xbf16>
    %c0_21 = arith.constant 0 : index
    %c0_22 = arith.constant 0 : index
    %36 = vector.load %arg9[%c0_21, %c0_22] : memref<128x512xbf16, #tpu.memory_space<vmem>>, vector<128x512xbf16>
    %cst_23 = arith.constant dense<0.000000e+00> : vector<16x512xf32>
    %37 = tpu.matmul %35, %36, %cst_23 {dimension_numbers = #tpu.dot_dimension_numbers<[1], [0], [0], [1], [0, 0, 1, 1], [], []>} : vector<16x128xbf16>, vector<128x512xbf16>, vector<16x512xf32> -> vector<16x512xf32>
    %38 = arith.truncf %37 : vector<16x512xf32> to vector<16x512xbf16>
    %39 = vector.extract_strided_slice %38 {offsets = [0, 0], sizes = [16, 128], strides = [1, 1]} : vector<16x512xbf16> to vector<16x128xbf16>
    %40 = vector.extract_strided_slice %3 {offsets = [0, 0], sizes = [16, 128], strides = [1, 1]} : vector<16x512xbf16> to vector<16x128xbf16>
    %41 = vector.extract_strided_slice %5 {offsets = [0, 0], sizes = [16, 128], strides = [1, 1]} : vector<16x512xbf16> to vector<16x128xbf16>
    %cst_24 = arith.constant dense<0.000000e+00> : vector<16x16xf32>
    %42 = tpu.matmul %39, %40, %cst_24 {dimension_numbers = #tpu.dot_dimension_numbers<[1], [1], [0], [0], [0, 0, 1, 0], [], []>} : vector<16x128xbf16>, vector<16x128xbf16>, vector<16x16xf32> -> vector<16x16xf32>
    %cst_25 = arith.constant dense<0xFF800000> : vector<16xf32>
    %43 = vector.multi_reduction <maximumf>, %42, %cst_25 [1] : vector<16x16xf32> to vector<16xf32>
    %44 = vector.shape_cast %43 : vector<16xf32> to vector<16x1xf32>
    %45 = vector.broadcast %44 : vector<16x1xf32> to vector<16x16xf32>
    %46 = arith.subf %42, %45 : vector<16x16xf32>
    %47 = math.exp %46 : vector<16x16xf32>
    %cst_26 = arith.constant dense<0.000000e+00> : vector<16xf32>
    %48 = vector.multi_reduction <add>, %47, %cst_26 [1] : vector<16x16xf32> to vector<16xf32>
    %49 = vector.shape_cast %48 : vector<16xf32> to vector<16x1xf32>
    %50 = tpu.reciprocal %49 {approx = true} : vector<16x1xf32> -> vector<16x1xf32>
    %51 = vector.broadcast %50 : vector<16x1xf32> to vector<16x16xf32>
    %52 = arith.mulf %47, %51 : vector<16x16xf32>
    %53 = arith.truncf %52 : vector<16x16xf32> to vector<16x16xbf16>
    %cst_27 = arith.constant dense<0.000000e+00> : vector<16x128xf32>
    %54 = tpu.matmul %53, %41, %cst_27 {dimension_numbers = #tpu.dot_dimension_numbers<[1], [0], [0], [1], [0, 0, 1, 1], [], []>} : vector<16x16xbf16>, vector<16x128xbf16>, vector<16x128xf32> -> vector<16x128xf32>
    %55 = arith.truncf %54 : vector<16x128xf32> to vector<16x128xbf16>
    %56 = vector.extract_strided_slice %38 {offsets = [0, 128], sizes = [16, 128], strides = [1, 1]} : vector<16x512xbf16> to vector<16x128xbf16>
    %57 = vector.extract_strided_slice %3 {offsets = [0, 128], sizes = [16, 128], strides = [1, 1]} : vector<16x512xbf16> to vector<16x128xbf16>
    %58 = vector.extract_strided_slice %5 {offsets = [0, 128], sizes = [16, 128], strides = [1, 1]} : vector<16x512xbf16> to vector<16x128xbf16>
    %cst_28 = arith.constant dense<0.000000e+00> : vector<16x16xf32>
    %59 = tpu.matmul %56, %57, %cst_28 {dimension_numbers = #tpu.dot_dimension_numbers<[1], [1], [0], [0], [0, 0, 1, 0], [], []>} : vector<16x128xbf16>, vector<16x128xbf16>, vector<16x16xf32> -> vector<16x16xf32>
    %cst_29 = arith.constant dense<0xFF800000> : vector<16xf32>
    %60 = vector.multi_reduction <maximumf>, %59, %cst_29 [1] : vector<16x16xf32> to vector<16xf32>
    %61 = vector.shape_cast %60 : vector<16xf32> to vector<16x1xf32>
    %62 = vector.broadcast %61 : vector<16x1xf32> to vector<16x16xf32>
    %63 = arith.subf %59, %62 : vector<16x16xf32>
    %64 = math.exp %63 : vector<16x16xf32>
    %cst_30 = arith.constant dense<0.000000e+00> : vector<16xf32>
    %65 = vector.multi_reduction <add>, %64, %cst_30 [1] : vector<16x16xf32> to vector<16xf32>
    %66 = vector.shape_cast %65 : vector<16xf32> to vector<16x1xf32>
    %67 = tpu.reciprocal %66 {approx = true} : vector<16x1xf32> -> vector<16x1xf32>
    %68 = vector.broadcast %67 : vector<16x1xf32> to vector<16x16xf32>
    %69 = arith.mulf %64, %68 : vector<16x16xf32>
    %70 = arith.truncf %69 : vector<16x16xf32> to vector<16x16xbf16>
    %cst_31 = arith.constant dense<0.000000e+00> : vector<16x128xf32>
    %71 = tpu.matmul %70, %58, %cst_31 {dimension_numbers = #tpu.dot_dimension_numbers<[1], [0], [0], [1], [0, 0, 1, 1], [], []>} : vector<16x16xbf16>, vector<16x128xbf16>, vector<16x128xf32> -> vector<16x128xf32>
    %72 = arith.truncf %71 : vector<16x128xf32> to vector<16x128xbf16>
    %73 = vector.extract_strided_slice %38 {offsets = [0, 256], sizes = [16, 128], strides = [1, 1]} : vector<16x512xbf16> to vector<16x128xbf16>
    %74 = vector.extract_strided_slice %3 {offsets = [0, 256], sizes = [16, 128], strides = [1, 1]} : vector<16x512xbf16> to vector<16x128xbf16>
    %75 = vector.extract_strided_slice %5 {offsets = [0, 256], sizes = [16, 128], strides = [1, 1]} : vector<16x512xbf16> to vector<16x128xbf16>
    %cst_32 = arith.constant dense<0.000000e+00> : vector<16x16xf32>
    %76 = tpu.matmul %73, %74, %cst_32 {dimension_numbers = #tpu.dot_dimension_numbers<[1], [1], [0], [0], [0, 0, 1, 0], [], []>} : vector<16x128xbf16>, vector<16x128xbf16>, vector<16x16xf32> -> vector<16x16xf32>
    %cst_33 = arith.constant dense<0xFF800000> : vector<16xf32>
    %77 = vector.multi_reduction <maximumf>, %76, %cst_33 [1] : vector<16x16xf32> to vector<16xf32>
    %78 = vector.shape_cast %77 : vector<16xf32> to vector<16x1xf32>
    %79 = vector.broadcast %78 : vector<16x1xf32> to vector<16x16xf32>
    %80 = arith.subf %76, %79 : vector<16x16xf32>
    %81 = math.exp %80 : vector<16x16xf32>
    %cst_34 = arith.constant dense<0.000000e+00> : vector<16xf32>
    %82 = vector.multi_reduction <add>, %81, %cst_34 [1] : vector<16x16xf32> to vector<16xf32>
    %83 = vector.shape_cast %82 : vector<16xf32> to vector<16x1xf32>
    %84 = tpu.reciprocal %83 {approx = true} : vector<16x1xf32> -> vector<16x1xf32>
    %85 = vector.broadcast %84 : vector<16x1xf32> to vector<16x16xf32>
    %86 = arith.mulf %81, %85 : vector<16x16xf32>
    %87 = arith.truncf %86 : vector<16x16xf32> to vector<16x16xbf16>
    %cst_35 = arith.constant dense<0.000000e+00> : vector<16x128xf32>
    %88 = tpu.matmul %87, %75, %cst_35 {dimension_numbers = #tpu.dot_dimension_numbers<[1], [0], [0], [1], [0, 0, 1, 1], [], []>} : vector<16x16xbf16>, vector<16x128xbf16>, vector<16x128xf32> -> vector<16x128xf32>
    %89 = arith.truncf %88 : vector<16x128xf32> to vector<16x128xbf16>
    %90 = vector.extract_strided_slice %38 {offsets = [0, 384], sizes = [16, 128], strides = [1, 1]} : vector<16x512xbf16> to vector<16x128xbf16>
    %91 = vector.extract_strided_slice %3 {offsets = [0, 384], sizes = [16, 128], strides = [1, 1]} : vector<16x512xbf16> to vector<16x128xbf16>
    %92 = vector.extract_strided_slice %5 {offsets = [0, 384], sizes = [16, 128], strides = [1, 1]} : vector<16x512xbf16> to vector<16x128xbf16>
    %cst_36 = arith.constant dense<0.000000e+00> : vector<16x16xf32>
    %93 = tpu.matmul %90, %91, %cst_36 {dimension_numbers = #tpu.dot_dimension_numbers<[1], [1], [0], [0], [0, 0, 1, 0], [], []>} : vector<16x128xbf16>, vector<16x128xbf16>, vector<16x16xf32> -> vector<16x16xf32>
    %cst_37 = arith.constant dense<0xFF800000> : vector<16xf32>
    %94 = vector.multi_reduction <maximumf>, %93, %cst_37 [1] : vector<16x16xf32> to vector<16xf32>
    %95 = vector.shape_cast %94 : vector<16xf32> to vector<16x1xf32>
    %96 = vector.broadcast %95 : vector<16x1xf32> to vector<16x16xf32>
    %97 = arith.subf %93, %96 : vector<16x16xf32>
    %98 = math.exp %97 : vector<16x16xf32>
    %cst_38 = arith.constant dense<0.000000e+00> : vector<16xf32>
    %99 = vector.multi_reduction <add>, %98, %cst_38 [1] : vector<16x16xf32> to vector<16xf32>
    %100 = vector.shape_cast %99 : vector<16xf32> to vector<16x1xf32>
    %101 = tpu.reciprocal %100 {approx = true} : vector<16x1xf32> -> vector<16x1xf32>
    %102 = vector.broadcast %101 : vector<16x1xf32> to vector<16x16xf32>
    %103 = arith.mulf %98, %102 : vector<16x16xf32>
    %104 = arith.truncf %103 : vector<16x16xf32> to vector<16x16xbf16>
    %cst_39 = arith.constant dense<0.000000e+00> : vector<16x128xf32>
    %105 = tpu.matmul %104, %92, %cst_39 {dimension_numbers = #tpu.dot_dimension_numbers<[1], [0], [0], [1], [0, 0, 1, 1], [], []>} : vector<16x16xbf16>, vector<16x128xbf16>, vector<16x128xf32> -> vector<16x128xf32>
    %106 = arith.truncf %105 : vector<16x128xf32> to vector<16x128xbf16>
    %107 = tpu.concatenate %55, %72, %89, %106 in 1 : vector<16x128xbf16>, vector<16x128xbf16>, vector<16x128xbf16>, vector<16x128xbf16> -> vector<16x512xbf16>
    %c0_40 = arith.constant 0 : index
    %c0_41 = arith.constant 0 : index
    %108 = vector.load %arg10[%c0_40, %c0_41] : memref<512x128xbf16, #tpu.memory_space<vmem>>, vector<512x128xbf16>
    %cst_42 = arith.constant dense<0.000000e+00> : vector<16x128xf32>
    %109 = tpu.matmul %107, %108, %cst_42 {dimension_numbers = #tpu.dot_dimension_numbers<[1], [0], [0], [1], [0, 0, 1, 1], [], []>} : vector<16x512xbf16>, vector<512x128xbf16>, vector<16x128xf32> -> vector<16x128xf32>
    %110 = arith.addf %109, %10 : vector<16x128xf32>
    %c0_43 = arith.constant 0 : index
    %c0_44 = arith.constant 0 : index
    %111 = vector.load %arg11[%c0_43, %c0_44] : memref<1x128xf32, #tpu.memory_space<vmem>>, vector<1x128xf32>
    %c0_45 = arith.constant 0 : index
    %c0_46 = arith.constant 0 : index
    %112 = vector.load %arg12[%c0_45, %c0_46] : memref<1x128xf32, #tpu.memory_space<vmem>>, vector<1x128xf32>
    %cst_47 = arith.constant dense<0.000000e+00> : vector<16xf32>
    %113 = vector.multi_reduction <add>, %110, %cst_47 [1] : vector<16x128xf32> to vector<16xf32>
    %114 = vector.shape_cast %113 : vector<16xf32> to vector<16x1xf32>
    %cst_48 = arith.constant 1.280000e+02 : f32
    %115 = vector.broadcast %cst_48 : f32 to vector<16x1xf32>
    %116 = arith.divf %114, %115 : vector<16x1xf32>
    %117 = vector.broadcast %116 : vector<16x1xf32> to vector<16x128xf32>
    %118 = arith.subf %110, %117 : vector<16x128xf32>
    %119 = arith.mulf %118, %118 : vector<16x128xf32>
    %cst_49 = arith.constant dense<0.000000e+00> : vector<16xf32>
    %120 = vector.multi_reduction <add>, %119, %cst_49 [1] : vector<16x128xf32> to vector<16xf32>
    %121 = vector.shape_cast %120 : vector<16xf32> to vector<16x1xf32>
    %cst_50 = arith.constant 1.280000e+02 : f32
    %122 = vector.broadcast %cst_50 : f32 to vector<16x1xf32>
    %123 = arith.divf %121, %122 : vector<16x1xf32>
    %124 = vector.broadcast %116 : vector<16x1xf32> to vector<16x128xf32>
    %125 = arith.subf %110, %124 : vector<16x128xf32>
    %cst_51 = arith.constant 9.99999974E-6 : f32
    %126 = vector.broadcast %cst_51 : f32 to vector<16x1xf32>
    %127 = arith.addf %123, %126 : vector<16x1xf32>
    %128 = math.rsqrt %127 : vector<16x1xf32>
    %129 = vector.broadcast %128 : vector<16x1xf32> to vector<16x128xf32>
    %130 = arith.mulf %125, %129 : vector<16x128xf32>
    %131 = vector.broadcast %111 : vector<1x128xf32> to vector<16x128xf32>
    %132 = arith.mulf %130, %131 : vector<16x128xf32>
    %133 = vector.broadcast %112 : vector<1x128xf32> to vector<16x128xf32>
    %134 = arith.addf %132, %133 : vector<16x128xf32>
    %135 = arith.truncf %134 : vector<16x128xf32> to vector<16x128xbf16>
    %cst_52 = arith.constant 0.000000e+00 : f32
    %136 = vector.broadcast %cst_52 : f32 to vector<16x128xf32>
    %c0_53 = arith.constant 0 : index
    %c0_54 = arith.constant 0 : index
    %137 = vector.load %arg13[%c0_53, %c0_54] : memref<128x512xbf16, #tpu.memory_space<vmem>>, vector<128x512xbf16>
    %cst_55 = arith.constant dense<0.000000e+00> : vector<16x512xf32>
    %138 = tpu.matmul %135, %137, %cst_55 {dimension_numbers = #tpu.dot_dimension_numbers<[1], [0], [0], [1], [0, 0, 1, 1], [], []>} : vector<16x128xbf16>, vector<128x512xbf16>, vector<16x512xf32> -> vector<16x512xf32>
    %cst_56 = arith.constant 5.000000e-01 : f32
    %139 = vector.broadcast %cst_56 : f32 to vector<16x512xf32>
    %140 = arith.mulf %139, %138 : vector<16x512xf32>
    %cst_57 = arith.constant 4.471500e-02 : f32
    %141 = vector.broadcast %cst_57 : f32 to vector<16x512xf32>
    %142 = arith.mulf %141, %138 : vector<16x512xf32>
    %143 = arith.mulf %142, %138 : vector<16x512xf32>
    %144 = arith.mulf %143, %138 : vector<16x512xf32>
    %145 = arith.addf %138, %144 : vector<16x512xf32>
    %cst_58 = arith.constant 0.797884583 : f32
    %146 = vector.broadcast %cst_58 : f32 to vector<16x512xf32>
    %147 = arith.mulf %146, %145 : vector<16x512xf32>
    %148 = math.tanh %147 : vector<16x512xf32>
    %cst_59 = arith.constant 1.000000e+00 : f32
    %149 = vector.broadcast %cst_59 : f32 to vector<16x512xf32>
    %150 = arith.addf %149, %148 : vector<16x512xf32>
    %151 = arith.mulf %140, %150 : vector<16x512xf32>
    %152 = arith.truncf %151 : vector<16x512xf32> to vector<16x512xbf16>
    %c0_60 = arith.constant 0 : index
    %c0_61 = arith.constant 0 : index
    %153 = vector.load %arg14[%c0_60, %c0_61] : memref<512x128xbf16, #tpu.memory_space<vmem>>, vector<512x128xbf16>
    %cst_62 = arith.constant dense<0.000000e+00> : vector<16x128xf32>
    %154 = tpu.matmul %152, %153, %cst_62 {dimension_numbers = #tpu.dot_dimension_numbers<[1], [0], [0], [1], [0, 0, 1, 1], [], []>} : vector<16x512xbf16>, vector<512x128xbf16>, vector<16x128xf32> -> vector<16x128xf32>
    %155 = arith.addf %136, %154 : vector<16x128xf32>
    %156 = arith.addf %155, %110 : vector<16x128xf32>
    %c0_63 = arith.constant 0 : index
    %c0_64 = arith.constant 0 : index
    %c0_65 = arith.constant 0 : index
    %157 = vector.load %arg15[%c0_63, %c0_64, %c0_65] : memref<1x16x128xf32, #tpu.memory_space<vmem>>, vector<1x16x128xf32>
    %158 = vector.shape_cast %157 : vector<1x16x128xf32> to vector<16x128xf32>
    %159 = vector.shape_cast %156 : vector<16x128xf32> to vector<1x16x128xf32>
    tpu.vector_store %arg15[%c0_63, %c0_64, %c0_65], %159 {strides = array<i32>} : memref<1x16x128xf32, #tpu.memory_space<vmem>>, vector<1x16x128xf32>,
    return
  }
  func.func @transform_0(%arg0: i32, %arg1: i32) -> (i32, i32, i32) {
    %c0_i32 = arith.constant 0 : i32
    %c0_i32_0 = arith.constant 0 : i32
    return %arg0, %arg1, %c0_i32 : i32, i32, i32
  }
  func.func @transform_1(%arg0: i32, %arg1: i32) -> (i32, i32, i32) {
    %c0_i32 = arith.constant 0 : i32
    %c0_i32_0 = arith.constant 0 : i32
    %c0_i32_1 = arith.constant 0 : i32
    return %arg0, %c0_i32, %c0_i32_0 : i32, i32, i32
  }
  func.func @transform_2(%arg0: i32, %arg1: i32) -> (i32, i32, i32) {
    %c0_i32 = arith.constant 0 : i32
    %c0_i32_0 = arith.constant 0 : i32
    %c0_i32_1 = arith.constant 0 : i32
    return %arg0, %c0_i32, %c0_i32_0 : i32, i32, i32
  }
  func.func @transform_3(%arg0: i32, %arg1: i32) -> (i32, i32) {
    %c0_i32 = arith.constant 0 : i32
    %c0_i32_0 = arith.constant 0 : i32
    %c0_i32_1 = arith.constant 0 : i32
    return %c0_i32, %c0_i32_0 : i32, i32
  }
  func.func @transform_4(%arg0: i32, %arg1: i32) -> (i32, i32) {
    %c0_i32 = arith.constant 0 : i32
    %c0_i32_0 = arith.constant 0 : i32
    %c0_i32_1 = arith.constant 0 : i32
    return %c0_i32, %c0_i32_0 : i32, i32
  }
  func.func @transform_5(%arg0: i32, %arg1: i32) -> (i32, i32) {
    %c0_i32 = arith.constant 0 : i32
    %c0_i32_0 = arith.constant 0 : i32
    %c0_i32_1 = arith.constant 0 : i32
    return %c0_i32, %c0_i32_0 : i32, i32
  }
  func.func @transform_6(%arg0: i32, %arg1: i32) -> (i32, i32) {
    %c0_i32 = arith.constant 0 : i32
    %c0_i32_0 = arith.constant 0 : i32
    %c0_i32_1 = arith.constant 0 : i32
    return %c0_i32, %c0_i32_0 : i32, i32
  }
  func.func @transform_7(%arg0: i32, %arg1: i32) -> (i32, i32) {
    %c0_i32 = arith.constant 0 : i32
    %c0_i32_0 = arith.constant 0 : i32
    %c0_i32_1 = arith.constant 0 : i32
    return %c0_i32, %c0_i32_0 : i32, i32
  }
  func.func @transform_8(%arg0: i32, %arg1: i32) -> (i32, i32) {
    %c0_i32 = arith.constant 0 : i32
    %c0_i32_0 = arith.constant 0 : i32
    %c0_i32_1 = arith.constant 0 : i32
    return %c0_i32, %c0_i32_0 : i32, i32
  }
  func.func @transform_9(%arg0: i32, %arg1: i32) -> (i32, i32) {
    %c0_i32 = arith.constant 0 : i32
    %c0_i32_0 = arith.constant 0 : i32
    %c0_i32_1 = arith.constant 0 : i32
    return %c0_i32, %c0_i32_0 : i32, i32
  }
  func.func @transform_10(%arg0: i32, %arg1: i32) -> (i32, i32) {
    %c0_i32 = arith.constant 0 : i32
    %c0_i32_0 = arith.constant 0 : i32
    %c0_i32_1 = arith.constant 0 : i32
    return %c0_i32, %c0_i32_0 : i32, i32
  }
  func.func @transform_11(%arg0: i32, %arg1: i32) -> (i32, i32) {
    %c0_i32 = arith.constant 0 : i32
    %c0_i32_0 = arith.constant 0 : i32
    %c0_i32_1 = arith.constant 0 : i32
    return %c0_i32, %c0_i32_0 : i32, i32
  }
  func.func @transform_12(%arg0: i32, %arg1: i32) -> (i32, i32) {
    %c0_i32 = arith.constant 0 : i32
    %c0_i32_0 = arith.constant 0 : i32
    %c0_i32_1 = arith.constant 0 : i32
    return %c0_i32, %c0_i32_0 : i32, i32
  }
  func.func @transform_13(%arg0: i32, %arg1: i32) -> (i32, i32, i32) {
    %c0_i32 = arith.constant 0 : i32
    %c0_i32_0 = arith.constant 0 : i32
    return %arg0, %arg1, %c0_i32 : i32, i32, i32
  }
}

module attributes {stable_mosaic.version = 11 : i64} {
  func.func @_gca_kernel(%arg0: i32, %arg1: i32, %arg2: memref<1x16x128xbf16, #tpu.memory_space<vmem>>, %arg3: memref<1x16x512xbf16, #tpu.memory_space<vmem>>, %arg4: memref<1x16x512xbf16, #tpu.memory_space<vmem>>, %arg5: memref<128x128xbf16, #tpu.memory_space<vmem>>, %arg6: memref<1x128xf32, #tpu.memory_space<vmem>>, %arg7: memref<1x128xf32, #tpu.memory_space<vmem>>, %arg8: memref<1x128xf32, #tpu.memory_space<vmem>>, %arg9: memref<128x512xbf16, #tpu.memory_space<vmem>>, %arg10: memref<512x128xbf16, #tpu.memory_space<vmem>>, %arg11: memref<1x128xf32, #tpu.memory_space<vmem>>, %arg12: memref<1x128xf32, #tpu.memory_space<vmem>>, %arg13: memref<128x512xbf16, #tpu.memory_space<vmem>>, %arg14: memref<512x128xbf16, #tpu.memory_space<vmem>>, %arg15: memref<1x16x128xf32, #tpu.memory_space<vmem>>) attributes {dimension_semantics = [#tpu.dimension_semantics<parallel>, #tpu.dimension_semantics<parallel>], iteration_bounds = array<i64: 2, 1>, scalar_prefetch = 0 : i64, scratch_operands = 0 : i64, tpu.core_type = #tpu.core_type<tc>, window_params = [{transform_indices = @transform_0, window_bounds = array<i64: 1, 16, 128>}, {transform_indices = @transform_1, window_bounds = array<i64: 1, 16, 512>}, {transform_indices = @transform_2, window_bounds = array<i64: 1, 16, 512>}, {pipeline_mode = #tpu.pipeline_mode<synchronous>, transform_indices = @transform_3, window_bounds = array<i64: 128, 128>}, {pipeline_mode = #tpu.pipeline_mode<synchronous>, transform_indices = @transform_4, window_bounds = array<i64: 1, 128>}, {pipeline_mode = #tpu.pipeline_mode<synchronous>, transform_indices = @transform_5, window_bounds = array<i64: 1, 128>}, {pipeline_mode = #tpu.pipeline_mode<synchronous>, transform_indices = @transform_6, window_bounds = array<i64: 1, 128>}, {pipeline_mode = #tpu.pipeline_mode<synchronous>, transform_indices = @transform_7, window_bounds = array<i64: 128, 512>}, {pipeline_mode = #tpu.pipeline_mode<synchronous>, transform_indices = @transform_8, window_bounds = array<i64: 512, 128>}, {pipeline_mode = #tpu.pipeline_mode<synchronous>, transform_indices = @transform_9, window_bounds = array<i64: 1, 128>}, {pipeline_mode = #tpu.pipeline_mode<synchronous>, transform_indices = @transform_10, window_bounds = array<i64: 1, 128>}, {pipeline_mode = #tpu.pipeline_mode<synchronous>, transform_indices = @transform_11, window_bounds = array<i64: 128, 512>}, {pipeline_mode = #tpu.pipeline_mode<synchronous>, transform_indices = @transform_12, window_bounds = array<i64: 512, 128>}, {transform_indices = @transform_13, window_bounds = array<i64: 1, 16, 128>}]} {
    %c0 = arith.constant 0 : index
    %c0_0 = arith.constant 0 : index
    %c0_1 = arith.constant 0 : index
    %0 = vector.load %arg2[%c0, %c0_0, %c0_1] : memref<1x16x128xbf16, #tpu.memory_space<vmem>>, vector<1x16x128xbf16>
    %1 = vector.shape_cast %0 : vector<1x16x128xbf16> to vector<16x128xbf16>
    %c0_2 = arith.constant 0 : index
    %c0_3 = arith.constant 0 : index
    %c0_4 = arith.constant 0 : index
    %2 = vector.load %arg3[%c0_2, %c0_3, %c0_4] : memref<1x16x512xbf16, #tpu.memory_space<vmem>>, vector<1x16x512xbf16>
    %3 = vector.shape_cast %2 : vector<1x16x512xbf16> to vector<16x512xbf16>
    %c0_5 = arith.constant 0 : index
    %c0_6 = arith.constant 0 : index
    %c0_7 = arith.constant 0 : index
    %4 = vector.load %arg4[%c0_5, %c0_6, %c0_7] : memref<1x16x512xbf16, #tpu.memory_space<vmem>>, vector<1x16x512xbf16>
    %5 = vector.shape_cast %4 : vector<1x16x512xbf16> to vector<16x512xbf16>
    %c0_8 = arith.constant 0 : index
    %c0_9 = arith.constant 0 : index
    %6 = vector.load %arg5[%c0_8, %c0_9] : memref<128x128xbf16, #tpu.memory_space<vmem>>, vector<128x128xbf16>
    %cst = arith.constant dense<0.000000e+00> : vector<16x128xf32>
    %7 = tpu.matmul %1, %6, %cst {dimension_numbers = #tpu.dot_dimension_numbers<[1], [0], [0], [1], [0, 0, 1, 1], [], []>} : vector<16x128xbf16>, vector<128x128xbf16>, vector<16x128xf32> -> vector<16x128xf32>
    %c0_10 = arith.constant 0 : index
    %c0_11 = arith.constant 0 : index
    %8 = vector.load %arg6[%c0_10, %c0_11] : memref<1x128xf32, #tpu.memory_space<vmem>>, vector<1x128xf32>
    %9 = vector.broadcast %8 : vector<1x128xf32> to vector<16x128xf32>
    %10 = arith.addf %7, %9 : vector<16x128xf32>
    %c0_12 = arith.constant 0 : index
    %c0_13 = arith.constant 0 : index
    %11 = vector.load %arg7[%c0_12, %c0_13] : memref<1x128xf32, #tpu.memory_space<vmem>>, vector<1x128xf32>
    %c0_14 = arith.constant 0 : index
    %c0_15 = arith.constant 0 : index
    %12 = vector.load %arg8[%c0_14, %c0_15] : memref<1x128xf32, #tpu.memory_space<vmem>>, vector<1x128xf32>
    %cst_16 = arith.constant dense<0.000000e+00> : vector<16xf32>
    %13 = vector.multi_reduction <add>, %10, %cst_16 [1] : vector<16x128xf32> to vector<16xf32>
    %14 = vector.shape_cast %13 : vector<16xf32> to vector<16x1xf32>
    %cst_17 = arith.constant 1.280000e+02 : f32
    %15 = vector.broadcast %cst_17 : f32 to vector<16x1xf32>
    %16 = arith.divf %14, %15 : vector<16x1xf32>
    %17 = vector.broadcast %16 : vector<16x1xf32> to vector<16x128xf32>
    %18 = arith.subf %10, %17 : vector<16x128xf32>
    %19 = arith.mulf %18, %18 : vector<16x128xf32>
    %cst_18 = arith.constant dense<0.000000e+00> : vector<16xf32>
    %20 = vector.multi_reduction <add>, %19, %cst_18 [1] : vector<16x128xf32> to vector<16xf32>
    %21 = vector.shape_cast %20 : vector<16xf32> to vector<16x1xf32>
    %cst_19 = arith.constant 1.280000e+02 : f32
    %22 = vector.broadcast %cst_19 : f32 to vector<16x1xf32>
    %23 = arith.divf %21, %22 : vector<16x1xf32>
    %24 = vector.broadcast %16 : vector<16x1xf32> to vector<16x128xf32>
    %25 = arith.subf %10, %24 : vector<16x128xf32>
    %cst_20 = arith.constant 9.99999974E-6 : f32
    %26 = vector.broadcast %cst_20 : f32 to vector<16x1xf32>
    %27 = arith.addf %23, %26 : vector<16x1xf32>
    %28 = math.rsqrt %27 : vector<16x1xf32>
    %29 = vector.broadcast %28 : vector<16x1xf32> to vector<16x128xf32>
    %30 = arith.mulf %25, %29 : vector<16x128xf32>
    %31 = vector.broadcast %11 : vector<1x128xf32> to vector<16x128xf32>
    %32 = arith.mulf %30, %31 : vector<16x128xf32>
    %33 = vector.broadcast %12 : vector<1x128xf32> to vector<16x128xf32>
    %34 = arith.addf %32, %33 : vector<16x128xf32>
    %35 = arith.truncf %34 : vector<16x128xf32> to vector<16x128xbf16>
    %c0_21 = arith.constant 0 : index
    %c0_22 = arith.constant 0 : index
    %36 = vector.load %arg9[%c0_21, %c0_22] : memref<128x512xbf16, #tpu.memory_space<vmem>>, vector<128x512xbf16>
    %cst_23 = arith.constant dense<0.000000e+00> : vector<16x512xf32>
    %37 = tpu.matmul %35, %36, %cst_23 {dimension_numbers = #tpu.dot_dimension_numbers<[1], [0], [0], [1], [0, 0, 1, 1], [], []>} : vector<16x128xbf16>, vector<128x512xbf16>, vector<16x512xf32> -> vector<16x512xf32>
    %38 = arith.truncf %37 : vector<16x512xf32> to vector<16x512xbf16>
    %39 = vector.extract_strided_slice %38 {offsets = [0, 0], sizes = [16, 128], strides = [1, 1]} : vector<16x512xbf16> to vector<16x128xbf16>
    %40 = vector.extract_strided_slice %3 {offsets = [0, 0], sizes = [16, 128], strides = [1, 1]} : vector<16x512xbf16> to vector<16x128xbf16>
    %41 = vector.extract_strided_slice %5 {offsets = [0, 0], sizes = [16, 128], strides = [1, 1]} : vector<16x512xbf16> to vector<16x128xbf16>
    %cst_24 = arith.constant dense<0.000000e+00> : vector<16x16xf32>
    %42 = tpu.matmul %39, %40, %cst_24 {dimension_numbers = #tpu.dot_dimension_numbers<[1], [1], [0], [0], [0, 0, 1, 0], [], []>} : vector<16x128xbf16>, vector<16x128xbf16>, vector<16x16xf32> -> vector<16x16xf32>
    %cst_25 = arith.constant dense<0xFF800000> : vector<16xf32>
    %43 = vector.multi_reduction <maximumf>, %42, %cst_25 [1] : vector<16x16xf32> to vector<16xf32>
    %44 = vector.shape_cast %43 : vector<16xf32> to vector<16x1xf32>
    %45 = vector.broadcast %44 : vector<16x1xf32> to vector<16x16xf32>
    %46 = arith.subf %42, %45 : vector<16x16xf32>
    %47 = math.exp %46 : vector<16x16xf32>
    %cst_26 = arith.constant dense<0.000000e+00> : vector<16xf32>
    %48 = vector.multi_reduction <add>, %47, %cst_26 [1] : vector<16x16xf32> to vector<16xf32>
    %49 = vector.shape_cast %48 : vector<16xf32> to vector<16x1xf32>
    %50 = tpu.reciprocal %49 {approx = true} : vector<16x1xf32> -> vector<16x1xf32>
    %51 = vector.broadcast %50 : vector<16x1xf32> to vector<16x16xf32>
    %52 = arith.mulf %47, %51 : vector<16x16xf32>
    %53 = arith.truncf %52 : vector<16x16xf32> to vector<16x16xbf16>
    %cst_27 = arith.constant dense<0.000000e+00> : vector<16x128xf32>
    %54 = tpu.matmul %53, %41, %cst_27 {dimension_numbers = #tpu.dot_dimension_numbers<[1], [0], [0], [1], [0, 0, 1, 1], [], []>} : vector<16x16xbf16>, vector<16x128xbf16>, vector<16x128xf32> -> vector<16x128xf32>
    %55 = arith.truncf %54 : vector<16x128xf32> to vector<16x128xbf16>
    %56 = vector.extract_strided_slice %38 {offsets = [0, 128], sizes = [16, 128], strides = [1, 1]} : vector<16x512xbf16> to vector<16x128xbf16>
    %57 = vector.extract_strided_slice %3 {offsets = [0, 128], sizes = [16, 128], strides = [1, 1]} : vector<16x512xbf16> to vector<16x128xbf16>
    %58 = vector.extract_strided_slice %5 {offsets = [0, 128], sizes = [16, 128], strides = [1, 1]} : vector<16x512xbf16> to vector<16x128xbf16>
    %cst_28 = arith.constant dense<0.000000e+00> : vector<16x16xf32>
    %59 = tpu.matmul %56, %57, %cst_28 {dimension_numbers = #tpu.dot_dimension_numbers<[1], [1], [0], [0], [0, 0, 1, 0], [], []>} : vector<16x128xbf16>, vector<16x128xbf16>, vector<16x16xf32> -> vector<16x16xf32>
    %cst_29 = arith.constant dense<0xFF800000> : vector<16xf32>
    %60 = vector.multi_reduction <maximumf>, %59, %cst_29 [1] : vector<16x16xf32> to vector<16xf32>
    %61 = vector.shape_cast %60 : vector<16xf32> to vector<16x1xf32>
    %62 = vector.broadcast %61 : vector<16x1xf32> to vector<16x16xf32>
    %63 = arith.subf %59, %62 : vector<16x16xf32>
    %64 = math.exp %63 : vector<16x16xf32>
    %cst_30 = arith.constant dense<0.000000e+00> : vector<16xf32>
    %65 = vector.multi_reduction <add>, %64, %cst_30 [1] : vector<16x16xf32> to vector<16xf32>
    %66 = vector.shape_cast %65 : vector<16xf32> to vector<16x1xf32>
    %67 = tpu.reciprocal %66 {approx = true} : vector<16x1xf32> -> vector<16x1xf32>
    %68 = vector.broadcast %67 : vector<16x1xf32> to vector<16x16xf32>
    %69 = arith.mulf %64, %68 : vector<16x16xf32>
    %70 = arith.truncf %69 : vector<16x16xf32> to vector<16x16xbf16>
    %cst_31 = arith.constant dense<0.000000e+00> : vector<16x128xf32>
    %71 = tpu.matmul %70, %58, %cst_31 {dimension_numbers = #tpu.dot_dimension_numbers<[1], [0], [0], [1], [0, 0, 1, 1], [], []>} : vector<16x16xbf16>, vector<16x128xbf16>, vector<16x128xf32> -> vector<16x128xf32>
    %72 = arith.truncf %71 : vector<16x128xf32> to vector<16x128xbf16>
    %73 = vector.extract_strided_slice %38 {offsets = [0, 256], sizes = [16, 128], strides = [1, 1]} : vector<16x512xbf16> to vector<16x128xbf16>
    %74 = vector.extract_strided_slice %3 {offsets = [0, 256], sizes = [16, 128], strides = [1, 1]} : vector<16x512xbf16> to vector<16x128xbf16>
    %75 = vector.extract_strided_slice %5 {offsets = [0, 256], sizes = [16, 128], strides = [1, 1]} : vector<16x512xbf16> to vector<16x128xbf16>
    %cst_32 = arith.constant dense<0.000000e+00> : vector<16x16xf32>
    %76 = tpu.matmul %73, %74, %cst_32 {dimension_numbers = #tpu.dot_dimension_numbers<[1], [1], [0], [0], [0, 0, 1, 0], [], []>} : vector<16x128xbf16>, vector<16x128xbf16>, vector<16x16xf32> -> vector<16x16xf32>
    %cst_33 = arith.constant dense<0xFF800000> : vector<16xf32>
    %77 = vector.multi_reduction <maximumf>, %76, %cst_33 [1] : vector<16x16xf32> to vector<16xf32>
    %78 = vector.shape_cast %77 : vector<16xf32> to vector<16x1xf32>
    %79 = vector.broadcast %78 : vector<16x1xf32> to vector<16x16xf32>
    %80 = arith.subf %76, %79 : vector<16x16xf32>
    %81 = math.exp %80 : vector<16x16xf32>
    %cst_34 = arith.constant dense<0.000000e+00> : vector<16xf32>
    %82 = vector.multi_reduction <add>, %81, %cst_34 [1] : vector<16x16xf32> to vector<16xf32>
    %83 = vector.shape_cast %82 : vector<16xf32> to vector<16x1xf32>
    %84 = tpu.reciprocal %83 {approx = true} : vector<16x1xf32> -> vector<16x1xf32>
    %85 = vector.broadcast %84 : vector<16x1xf32> to vector<16x16xf32>
    %86 = arith.mulf %81, %85 : vector<16x16xf32>
    %87 = arith.truncf %86 : vector<16x16xf32> to vector<16x16xbf16>
    %cst_35 = arith.constant dense<0.000000e+00> : vector<16x128xf32>
    %88 = tpu.matmul %87, %75, %cst_35 {dimension_numbers = #tpu.dot_dimension_numbers<[1], [0], [0], [1], [0, 0, 1, 1], [], []>} : vector<16x16xbf16>, vector<16x128xbf16>, vector<16x128xf32> -> vector<16x128xf32>
    %89 = arith.truncf %88 : vector<16x128xf32> to vector<16x128xbf16>
    %90 = vector.extract_strided_slice %38 {offsets = [0, 384], sizes = [16, 128], strides = [1, 1]} : vector<16x512xbf16> to vector<16x128xbf16>
    %91 = vector.extract_strided_slice %3 {offsets = [0, 384], sizes = [16, 128], strides = [1, 1]} : vector<16x512xbf16> to vector<16x128xbf16>
    %92 = vector.extract_strided_slice %5 {offsets = [0, 384], sizes = [16, 128], strides = [1, 1]} : vector<16x512xbf16> to vector<16x128xbf16>
    %cst_36 = arith.constant dense<0.000000e+00> : vector<16x16xf32>
    %93 = tpu.matmul %90, %91, %cst_36 {dimension_numbers = #tpu.dot_dimension_numbers<[1], [1], [0], [0], [0, 0, 1, 0], [], []>} : vector<16x128xbf16>, vector<16x128xbf16>, vector<16x16xf32> -> vector<16x16xf32>
    %cst_37 = arith.constant dense<0xFF800000> : vector<16xf32>
    %94 = vector.multi_reduction <maximumf>, %93, %cst_37 [1] : vector<16x16xf32> to vector<16xf32>
    %95 = vector.shape_cast %94 : vector<16xf32> to vector<16x1xf32>
    %96 = vector.broadcast %95 : vector<16x1xf32> to vector<16x16xf32>
    %97 = arith.subf %93, %96 : vector<16x16xf32>
    %98 = math.exp %97 : vector<16x16xf32>
    %cst_38 = arith.constant dense<0.000000e+00> : vector<16xf32>
    %99 = vector.multi_reduction <add>, %98, %cst_38 [1] : vector<16x16xf32> to vector<16xf32>
    %100 = vector.shape_cast %99 : vector<16xf32> to vector<16x1xf32>
    %101 = tpu.reciprocal %100 {approx = true} : vector<16x1xf32> -> vector<16x1xf32>
    %102 = vector.broadcast %101 : vector<16x1xf32> to vector<16x16xf32>
    %103 = arith.mulf %98, %102 : vector<16x16xf32>
    %104 = arith.truncf %103 : vector<16x16xf32> to vector<16x16xbf16>
    %cst_39 = arith.constant dense<0.000000e+00> : vector<16x128xf32>
    %105 = tpu.matmul %104, %92, %cst_39 {dimension_numbers = #tpu.dot_dimension_numbers<[1], [0], [0], [1], [0, 0, 1, 1], [], []>} : vector<16x16xbf16>, vector<16x128xbf16>, vector<16x128xf32> -> vector<16x128xf32>
    %106 = arith.truncf %105 : vector<16x128xf32> to vector<16x128xbf16>
    %107 = tpu.concatenate %55, %72, %89, %106 in 1 : vector<16x128xbf16>, vector<16x128xbf16>, vector<16x128xbf16>, vector<16x128xbf16> -> vector<16x512xbf16>
    %c0_40 = arith.constant 0 : index
    %c0_41 = arith.constant 0 : index
    %108 = vector.load %arg10[%c0_40, %c0_41] : memref<512x128xbf16, #tpu.memory_space<vmem>>, vector<512x128xbf16>
    %cst_42 = arith.constant dense<0.000000e+00> : vector<16x128xf32>
    %109 = tpu.matmul %107, %108, %cst_42 {dimension_numbers = #tpu.dot_dimension_numbers<[1], [0], [0], [1], [0, 0, 1, 1], [], []>} : vector<16x512xbf16>, vector<512x128xbf16>, vector<16x128xf32> -> vector<16x128xf32>
    %110 = arith.addf %109, %10 : vector<16x128xf32>
    %c0_43 = arith.constant 0 : index
    %c0_44 = arith.constant 0 : index
    %111 = vector.load %arg11[%c0_43, %c0_44] : memref<1x128xf32, #tpu.memory_space<vmem>>, vector<1x128xf32>
    %c0_45 = arith.constant 0 : index
    %c0_46 = arith.constant 0 : index
    %112 = vector.load %arg12[%c0_45, %c0_46] : memref<1x128xf32, #tpu.memory_space<vmem>>, vector<1x128xf32>
    %cst_47 = arith.constant dense<0.000000e+00> : vector<16xf32>
    %113 = vector.multi_reduction <add>, %110, %cst_47 [1] : vector<16x128xf32> to vector<16xf32>
    %114 = vector.shape_cast %113 : vector<16xf32> to vector<16x1xf32>
    %cst_48 = arith.constant 1.280000e+02 : f32
    %115 = vector.broadcast %cst_48 : f32 to vector<16x1xf32>
    %116 = arith.divf %114, %115 : vector<16x1xf32>
    %117 = vector.broadcast %116 : vector<16x1xf32> to vector<16x128xf32>
    %118 = arith.subf %110, %117 : vector<16x128xf32>
    %119 = arith.mulf %118, %118 : vector<16x128xf32>
    %cst_49 = arith.constant dense<0.000000e+00> : vector<16xf32>
    %120 = vector.multi_reduction <add>, %119, %cst_49 [1] : vector<16x128xf32> to vector<16xf32>
    %121 = vector.shape_cast %120 : vector<16xf32> to vector<16x1xf32>
    %cst_50 = arith.constant 1.280000e+02 : f32
    %122 = vector.broadcast %cst_50 : f32 to vector<16x1xf32>
    %123 = arith.divf %121, %122 : vector<16x1xf32>
    %124 = vector.broadcast %116 : vector<16x1xf32> to vector<16x128xf32>
    %125 = arith.subf %110, %124 : vector<16x128xf32>
    %cst_51 = arith.constant 9.99999974E-6 : f32
    %126 = vector.broadcast %cst_51 : f32 to vector<16x1xf32>
    %127 = arith.addf %123, %126 : vector<16x1xf32>
    %128 = math.rsqrt %127 : vector<16x1xf32>
    %129 = vector.broadcast %128 : vector<16x1xf32> to vector<16x128xf32>
    %130 = arith.mulf %125, %129 : vector<16x128xf32>
    %131 = vector.broadcast %111 : vector<1x128xf32> to vector<16x128xf32>
    %132 = arith.mulf %130, %131 : vector<16x128xf32>
    %133 = vector.broadcast %112 : vector<1x128xf32> to vector<16x128xf32>
    %134 = arith.addf %132, %133 : vector<16x128xf32>
    %135 = arith.truncf %134 : vector<16x128xf32> to vector<16x128xbf16>
    %cst_52 = arith.constant 0.000000e+00 : f32
    %136 = vector.broadcast %cst_52 : f32 to vector<16x128xf32>
    %c0_53 = arith.constant 0 : index
    %c0_54 = arith.constant 0 : index
    %137 = vector.load %arg13[%c0_53, %c0_54] : memref<128x512xbf16, #tpu.memory_space<vmem>>, vector<128x512xbf16>
    %cst_55 = arith.constant dense<0.000000e+00> : vector<16x512xf32>
    %138 = tpu.matmul %135, %137, %cst_55 {dimension_numbers = #tpu.dot_dimension_numbers<[1], [0], [0], [1], [0, 0, 1, 1], [], []>} : vector<16x128xbf16>, vector<128x512xbf16>, vector<16x512xf32> -> vector<16x512xf32>
    %cst_56 = arith.constant 5.000000e-01 : f32
    %139 = vector.broadcast %cst_56 : f32 to vector<16x512xf32>
    %140 = arith.mulf %139, %138 : vector<16x512xf32>
    %cst_57 = arith.constant 4.471500e-02 : f32
    %141 = vector.broadcast %cst_57 : f32 to vector<16x512xf32>
    %142 = arith.mulf %141, %138 : vector<16x512xf32>
    %143 = arith.mulf %142, %138 : vector<16x512xf32>
    %144 = arith.mulf %143, %138 : vector<16x512xf32>
    %145 = arith.addf %138, %144 : vector<16x512xf32>
    %cst_58 = arith.constant 0.797884583 : f32
    %146 = vector.broadcast %cst_58 : f32 to vector<16x512xf32>
    %147 = arith.mulf %146, %145 : vector<16x512xf32>
    %148 = math.tanh %147 : vector<16x512xf32>
    %cst_59 = arith.constant 1.000000e+00 : f32
    %149 = vector.broadcast %cst_59 : f32 to vector<16x512xf32>
    %150 = arith.addf %149, %148 : vector<16x512xf32>
    %151 = arith.mulf %140, %150 : vector<16x512xf32>
    %152 = arith.truncf %151 : vector<16x512xf32> to vector<16x512xbf16>
    %c0_60 = arith.constant 0 : index
    %c0_61 = arith.constant 0 : index
    %153 = vector.load %arg14[%c0_60, %c0_61] : memref<512x128xbf16, #tpu.memory_space<vmem>>, vector<512x128xbf16>
    %cst_62 = arith.constant dense<0.000000e+00> : vector<16x128xf32>
    %154 = tpu.matmul %152, %153, %cst_62 {dimension_numbers = #tpu.dot_dimension_numbers<[1], [0], [0], [1], [0, 0, 1, 1], [], []>} : vector<16x512xbf16>, vector<512x128xbf16>, vector<16x128xf32> -> vector<16x128xf32>
    %155 = arith.addf %136, %154 : vector<16x128xf32>
    %156 = arith.addf %155, %110 : vector<16x128xf32>
    %c0_63 = arith.constant 0 : index
    %c0_64 = arith.constant 0 : index
    %c0_65 = arith.constant 0 : index
    %157 = vector.load %arg15[%c0_63, %c0_64, %c0_65] : memref<1x16x128xf32, #tpu.memory_space<vmem>>, vector<1x16x128xf32>
    %158 = vector.shape_cast %157 : vector<1x16x128xf32> to vector<16x128xf32>
    %159 = vector.shape_cast %156 : vector<16x128xf32> to vector<1x16x128xf32>
    tpu.vector_store %arg15[%c0_63, %c0_64, %c0_65], %159 {strides = array<i32>} : memref<1x16x128xf32, #tpu.memory_space<vmem>>, vector<1x16x128xf32>,
    return
  }
  func.func @transform_0(%arg0: i32, %arg1: i32) -> (i32, i32, i32) {
    %c0_i32 = arith.constant 0 : i32
    %c0_i32_0 = arith.constant 0 : i32
    return %arg0, %arg1, %c0_i32 : i32, i32, i32
  }
  func.func @transform_1(%arg0: i32, %arg1: i32) -> (i32, i32, i32) {
    %c0_i32 = arith.constant 0 : i32
    %c0_i32_0 = arith.constant 0 : i32
    %c0_i32_1 = arith.constant 0 : i32
    return %arg0, %c0_i32, %c0_i32_0 : i32, i32, i32
  }
  func.func @transform_2(%arg0: i32, %arg1: i32) -> (i32, i32, i32) {
    %c0_i32 = arith.constant 0 : i32
    %c0_i32_0 = arith.constant 0 : i32
    %c0_i32_1 = arith.constant 0 : i32
    return %arg0, %c0_i32, %c0_i32_0 : i32, i32, i32
  }
  func.func @transform_3(%arg0: i32, %arg1: i32) -> (i32, i32) {
    %c0_i32 = arith.constant 0 : i32
    %c0_i32_0 = arith.constant 0 : i32
    %c0_i32_1 = arith.constant 0 : i32
    return %c0_i32, %c0_i32_0 : i32, i32
  }
  func.func @transform_4(%arg0: i32, %arg1: i32) -> (i32, i32) {
    %c0_i32 = arith.constant 0 : i32
    %c0_i32_0 = arith.constant 0 : i32
    %c0_i32_1 = arith.constant 0 : i32
    return %c0_i32, %c0_i32_0 : i32, i32
  }
  func.func @transform_5(%arg0: i32, %arg1: i32) -> (i32, i32) {
    %c0_i32 = arith.constant 0 : i32
    %c0_i32_0 = arith.constant 0 : i32
    %c0_i32_1 = arith.constant 0 : i32
    return %c0_i32, %c0_i32_0 : i32, i32
  }
  func.func @transform_6(%arg0: i32, %arg1: i32) -> (i32, i32) {
    %c0_i32 = arith.constant 0 : i32
    %c0_i32_0 = arith.constant 0 : i32
    %c0_i32_1 = arith.constant 0 : i32
    return %c0_i32, %c0_i32_0 : i32, i32
  }
  func.func @transform_7(%arg0: i32, %arg1: i32) -> (i32, i32) {
    %c0_i32 = arith.constant 0 : i32
    %c0_i32_0 = arith.constant 0 : i32
    %c0_i32_1 = arith.constant 0 : i32
    return %c0_i32, %c0_i32_0 : i32, i32
  }
  func.func @transform_8(%arg0: i32, %arg1: i32) -> (i32, i32) {
    %c0_i32 = arith.constant 0 : i32
    %c0_i32_0 = arith.constant 0 : i32
    %c0_i32_1 = arith.constant 0 : i32
    return %c0_i32, %c0_i32_0 : i32, i32
  }
  func.func @transform_9(%arg0: i32, %arg1: i32) -> (i32, i32) {
    %c0_i32 = arith.constant 0 : i32
    %c0_i32_0 = arith.constant 0 : i32
    %c0_i32_1 = arith.constant 0 : i32
    return %c0_i32, %c0_i32_0 : i32, i32
  }
  func.func @transform_10(%arg0: i32, %arg1: i32) -> (i32, i32) {
    %c0_i32 = arith.constant 0 : i32
    %c0_i32_0 = arith.constant 0 : i32
    %c0_i32_1 = arith.constant 0 : i32
    return %c0_i32, %c0_i32_0 : i32, i32
  }
  func.func @transform_11(%arg0: i32, %arg1: i32) -> (i32, i32) {
    %c0_i32 = arith.constant 0 : i32
    %c0_i32_0 = arith.constant 0 : i32
    %c0_i32_1 = arith.constant 0 : i32
    return %c0_i32, %c0_i32_0 : i32, i32
  }
  func.func @transform_12(%arg0: i32, %arg1: i32) -> (i32, i32) {
    %c0_i32 = arith.constant 0 : i32
    %c0_i32_0 = arith.constant 0 : i32
    %c0_i32_1 = arith.constant 0 : i32
    return %c0_i32, %c0_i32_0 : i32, i32
  }
  func.func @transform_13(%arg0: i32, %arg1: i32) -> (i32, i32, i32) {
    %c0_i32 = arith.constant 0 : i32
    %c0_i32_0 = arith.constant 0 : i32
    return %arg0, %arg1, %c0_i32 : i32, i32, i32
  }
}

</mosaic_0001>

<bundles_post_ra>
// kernel: tpu_custom_call.1
= control target key start
LH: loop header
LB: loop body
LE: loop exit
PB: predicated region body
PF: predicated region fallthrough
CT: control target
= control target key end

     0   :  { %s4589_s0 = inlined_call_operand.hbm [shape: bf16[2,16,128], index: 0, kind: input, shape index: {}]   ;;  %s4590_s1 = inlined_call_operand.hbm [shape: bf16[2,16,512], index: 1, kind: input, shape index: {}]   ;;  %s4591_s2 = inlined_call_operand.hbm [shape: bf16[2,16,512], index: 2, kind: input, shape index: {}]   ;;  %s4592_s3 = inlined_call_operand.hbm [shape: bf16[128,128], index: 3, kind: input, shape index: {}]   ;;  %s4593_s4 = inlined_call_operand.vmem [shape: f32[1,128], index: 4, kind: input, shape index: {}]   ;;  %s4594_s5 = inlined_call_operand.vmem [shape: f32[1,128], index: 5, kind: input, shape index: {}]   ;;  %s4595_s6 = inlined_call_operand.vmem [shape: f32[1,128], index: 6, kind: input, shape index: {}]   ;;  %s4596_s7 = inlined_call_operand.hbm [shape: bf16[128,512], index: 7, kind: input, shape index: {}]   ;;  %s4597_s8 = inlined_call_operand.hbm [shape: bf16[512,128], index: 8, kind: input, shape index: {}]   ;;  %s4598_s9 = inlined_call_operand.vmem [shape: f32[1,128], index: 9, kind: input, shape index: {}]   ;;  %s4599_s10 = inlined_call_operand.vmem [shape: f32[1,128], index: 10, kind: input, shape index: {}]   ;;  %s4600_s11 = inlined_call_operand.hbm [shape: bf16[128,512], index: 11, kind: input, shape index: {}]   ;;  %s4601_s12 = inlined_call_operand.hbm [shape: bf16[512,128], index: 12, kind: input, shape index: {}]   ;;  %s4602_s13 = inlined_call_operand.hbm [shape: f32[2,16,128], index: 13, kind: output, shape index: {}]  }
   0x1   :  { %4636 = sst [smem:[#allocation33_spill]] %s4590_s1 }
   0x2   :  { %4637 = sst [smem:[#allocation34_spill]] %s4592_s3 }
   0x3   :  { %4638 = sst [smem:[#allocation35_spill]] %s4593_s4 }
   0x4   :  { %4639 = sst [smem:[#allocation36_spill]] %s4594_s5 }
   0x5   :  { %4640 = sst [smem:[#allocation37_spill]] %s4595_s6 }
   0x6   :  { %4641 = sst [smem:[#allocation38_spill]] %s4597_s8 }
   0x7   :  { %4642 = sst [smem:[#allocation39_spill]] %s4598_s9 }
   0x8   :  { %4643 = sst [smem:[#allocation40_spill]] %s4599_s10 }
   0x9   :  { %4644 = sst [smem:[#allocation41_spill]] %s4602_s13 }
   0xa   :  { %18 = vsyncpa [#allocation3], 0 }
   0xb   :  { %20 = vsyncpa [#allocation3 + $0x1], 0 }
   0xc   :  { %21 = vsyncpa [#allocation6], 0 }
   0xd   :  { %23 = vsyncpa [#allocation6 + $0x1], 0 }
   0xe   :  { %24 = vsyncpa [#allocation9], 0 }
   0xf   :  { %25 = vsyncpa [#allocation12], 0 }
  0x10   :  { %26 = vsyncpa [#allocation15], 0 }
  0x11   :  { %27 = vsyncpa [#allocation4], 0 }
  0x12   :  { %29 = vsyncpa [#allocation4 + $0x1], 0  ;;  %s3985_s25 = smov 0   ;;  %s3987_s26 = smov 0  }
  0x13   :  { %s3989_s27 = smov 0   ;;  %s3991_s28 = smov 0  }
  0x14   :  { %s3993_s29 = smov 0   ;;  %s3995_s30 = smov 0  }
  0x15 LB: > { %4645 = sst [smem:[#allocation23_spill]] %s3875_s25  ;;  %s4016_s14 = sadd.s32 4294967295, %s3895_s30   ;;  %s3895_s30 = sphi %s3995_s30, %s35_s30   ;;  %s3891_s29 = sphi %s3993_s29, %s4706_s29   ;;  %s3887_s28 = sphi %s3991_s28, %s4705_s28   ;;  %s3883_s27 = sphi %s3989_s27, %s4701_s27   ;;  %s3879_s26 = sphi %s3987_s26, %s4704_s26   ;;  %s3875_s25 = sphi %s3985_s25, %s4703_s25  }
  0x16   : > { %4646 = sst [smem:[#allocation24_spill]] %s3883_s27  ;;  %p2828_p0 = scmp.ge.s32.totalorder %s3895_s30, 1 }
  0x17   : > { %4647 = sst [smem:[#allocation25_spill]] %s3887_s28  ;;  %p4613_p1 = scmp.eq.s32.totalorder %s4016_s14, 0 }
  0x18   : > { %4648 = sst [smem:[#allocation26_spill]] %s3895_s30  ;;  %p370_p3 = scmp.lt.s32.totalorder %s3895_s30, 3 }
  0x19   : > { %4649 = sst [smem:[#allocation27_spill]] %s4016_s14  ;;  %s3897_s16 = smov [#allocation8]  }
  0x1a   : > { %p4022_p4 = pnand %p2828_p0, %p370_p3  ;;  %s382_s17 = sshll.u32 %s3897_s16, 4  ;;  %s4026_s17 = int_to_ptr.vmem [resolvable:$true] %s382_s17 }
  0x1b   : > { %s3898_s19 = smov [#allocation11]   ;;  %s4652_s3 = sld [smem:[#allocation34_spill]] }
  0x1c   : > { %s4650_s15 = scalar_select %p4022_p4, 1, 0 }
  0x1d   : > { %p3226_p5 = pneg %p4022_p4  ;;  %s417_s20 = sshll.u32 %s3898_s19, 4  ;;  %s4037_s20 = int_to_ptr.vmem [resolvable:$true] %s417_s20 }
  0x1f   : > { %p4033_p7 = pnand %p3226_p5, %p4613_p1 }
  0x21   : > { %s4651_s18 = scalar_select %p4033_p7, 1, 0 }
  0x22   : > { %s3567_s23 = scalar_lea.hbm %s4652_s3, 1024  ;;  %p4047_p9 = pneg %p4033_p7 }
  0x23   : > { %p3568_p8 = scmp.ne.s32.totalorder %s4652_s3, %s3567_s23  ;;  %p3574_p12 = scmp.lt.u32.totalorder %s3567_s23, %s4652_s3 }
  0x24   : > { %s4653_s13 = scalar_select %p4047_p9, 1, 0 }
  0x25   : > { %p3570_p10 = pnand %p4047_p9, %p3568_p8 }
  0x27   : > { %p3571_p11 = pneg %p3570_p10 }
  0x29   : > { %p3576_p13 = pnand %p3574_p12, %p3571_p11 }
  0x2b   : > { %3579 = shalt.err (!%p3576_p13)
}
  0x2c   : > { %s3580_s21 = scalar_lea.vmem %s4026_s17, 1024  ;;  %p3588_p6 = scmp.lt.s32.totalorder %s4026_s17, %s4026_s17 }
  0x2d   : > { %p3581_p0 = scmp.ne.s32.totalorder %s4026_s17, %s3580_s21  ;;  %p3589_p2 = scmp.lt.s32.totalorder %s3580_s21, %s3580_s21 }
  0x2f   : > { %p3583_p3 = pnand %p3581_p0, %p4047_p9  ;;  %p3590_p8 = por %p3589_p2, %p3588_p6 }
  0x31   : > { %p3584_p5 = pneg %p3583_p3 }
  0x33   : > { %p3591_p10 = pnand %p3590_p8, %p3584_p5 }
  0x35   : > { %3594 = shalt.err (!%p3591_p10)
}
  0x36   : > { %s4605_s22 = smov 64   ;;  %s4607_s28 = smov 4  }
  0x37   : > { %3229 = dma.hbm_to_vmem [thread:$0]  (!%p4033_p7), %s4652_s3, 1024, %s4026_s17, [#allocation9], %s4605_s22, %s4605_s22, %s4607_s28  }
  0x38   : > { %s4654_s8 = sld [smem:[#allocation38_spill]] }
  0x3e   : > { %s3595_s21 = scalar_lea.hbm %s4654_s8, 4096 }
  0x3f   : > { %p3596_p2 = scmp.ne.s32.totalorder %s4654_s8, %s3595_s21  ;;  %p3602_p12 = scmp.lt.u32.totalorder %s3595_s21, %s4654_s8 }
  0x41   : > { %p3598_p6 = pnand %p3596_p2, %p4047_p9 }
  0x43   : > { %p3599_p11 = pneg %p3598_p6 }
  0x45   : > { %p3604_p13 = pnand %p3602_p12, %p3599_p11 }
  0x47   : > { %3607 = shalt.err (!%p3604_p13)
}
  0x48   : > { %s3608_s17 = scalar_lea.vmem %s4037_s20, 4096  ;;  %p3616_p8 = scmp.lt.s32.totalorder %s4037_s20, %s4037_s20 }
  0x49   : > { %p3609_p0 = scmp.ne.s32.totalorder %s4037_s20, %s3608_s17  ;;  %p3617_p10 = scmp.lt.s32.totalorder %s3608_s17, %s3608_s17 }
  0x4b   : > { %p3611_p3 = pnand %p3609_p0, %p4047_p9  ;;  %p3618_p2 = por %p3617_p10, %p3616_p8 }
  0x4d   : > { %p3612_p5 = pneg %p3611_p3 }
  0x4f   : > { %p3619_p6 = pnand %p3618_p2, %p3612_p5 }
  0x51   : > { %3622 = shalt.err (!%p3619_p6)
}
  0x52   : > { %3235 = dma.hbm_to_vmem [thread:$0]  (!%p4033_p7), %s4654_s8, 4096, %s4037_s20, [#allocation12], %s4605_s22, %s4605_s22, %s4607_s28  }
  0x53   : > { %s2827_s9 = sadd.s32 4294967294, %s3895_s30   ;;  %s47_s10 = sadd.s32 1, %s3891_s29 }
  0x54   : > { %s56_s23 = sadd.s32 1, %s3883_s27  ;;  %p49_p11 = scmp.ge.s32.totalorder %s47_s10, 2 }
  0x55   : > { %p63_p12 = scmp.ne.s32.totalorder %s3883_s27, %s3879_s26  ;;  %p64_p13 = scmp.eq.s32.totalorder %s3895_s30, 0 }
  0x56   : > { %p69_p0 = scmp.ne.s32.totalorder %s3879_s26, %s3875_s25  ;;  %s4708_s10 = smov (%p49_p11, %s47_s10), 0 }
  0x57   : > { %4655 = sst [smem:[#allocation28_spill]] %s4708_s10  ;;  %p65_p3 = por %p64_p13, %p63_p12 }
  0x58   : > { %p4109_p5 = por %p4613_p1, %p69_p0  ;;  %s51_s20 = ssub.s32 %s3891_s29, %s4708_s10 }
  0x59   : > { %p4658_p8 = scmp.eq.s32.totalorder %s4016_s14, 1  ;;  %p54_p2 = scmp.eq.s32.totalorder %s51_s20, 0 }
  0x5a   : > { %s4656_s24 = scalar_select %p4109_p5, 1, 0 }
  0x5b   : > { %p4117_p10 = por %p4658_p8, %p63_p12  ;;  %p363_p6 = scmp.eq.s32.totalorder %s2827_s9, 1 }
  0x5c   : > { %4657 = sst [smem:[#allocation29_spill]] %s4656_s24  ;;  %p3261_p11 = scmp.lt.s32.totalorder %s3895_s30, 2 }
  0x5d   : > { %s4659_s16 = scalar_select %p4117_p10, 1, 0 }
  0x5e   : > { %s4122_s19 = scalar_select %p54_p2, %s3883_s27, %s56_s23  }
  0x5f   : > { %4660 = sst [smem:[#allocation30_spill]] %s4659_s16  ;;  %p4124_p4 = por %p363_p6, %p69_p0 }
  0x60   : > { %4661 = sst [smem:[#allocation31_spill]] %s4122_s19  ;;  %s4130_s17 = sand.u32 1, %s3883_s27  }
  0x61   : > { %s4662_s21 = scalar_select %p4124_p4, 1, 0 }
  0x62   : > { %s486_s5 = sand.u32 1, %s3895_s30   ;;  %p4133_p13 = pnand %p3261_p11, %p65_p3 }
  0x63   : > { %4663 = sst [smem:[#allocation32_spill]] %s4662_s21  ;;  %s4611_s22 = sshll.u32 %s4130_s17, 5 }
  0x64   : > { %s4664_s6 = scalar_select %p4133_p13, 1, 0 }
  0x65   : > { %s4612_s20 = sshll.u32 %s3891_s29, 9  ;;  %s4665_s1 = sld [smem:[#allocation33_spill]] }
  0x66   : > { %s490_s3 = scalar_lea.vmem [#allocation5], %s4611_s22  ;;  %s4150_s10 = scalar_lea.sflag [#allocation6], %s486_s5 }
  0x67   : > { %s497_s8 = sshll.u32 %s490_s3, 4  ;;  %p4156_p0 = pneg %p4133_p13  ;;  %s4148_s8 = int_to_ptr.vmem [resolvable:$true] %s497_s8 }
  0x69   : > { %s4666_s27 = scalar_select %p4156_p0, 1, 0 }
  0x6b   : > { %s4144_s28 = scalar_lea.hbm %s4665_s1, %s4612_s20  ;;  %s3628_s22 = scalar_lea.hbm %s4665_s1, 1024 }
  0x6c   : > { %s3623_s19 = scalar_lea.hbm %s4144_s28, 512  ;;  %p3629_p2 = scmp.lt.u32.totalorder %s4144_s28, %s4665_s1 }
  0x6d   : > { %p3624_p12 = scmp.ne.s32.totalorder %s4144_s28, %s3623_s19  ;;  %p3630_p6 = scmp.lt.u32.totalorder %s3628_s22, %s3623_s19 }
  0x6e   : > { %p3632_p1 = scmp.lt.u32.totalorder %s3623_s19, %s4144_s28 }
  0x6f   : > { %p3626_p3 = pnand %p4156_p0, %p3624_p12  ;;  %p3631_p11 = por %p3630_p6, %p3629_p2 }
  0x71   : > { %p3627_p8 = pneg %p3626_p3  ;;  %p3633_p4 = por %p3632_p1, %p3631_p11 }
  0x73   : > { %p3634_p10 = pnand %p3633_p4, %p3627_p8 }
  0x75   : > { %3637 = shalt.err (!%p3634_p10)
}
  0x76   : > { %s3638_s5 = scalar_lea.vmem %s4148_s8, 512  ;;  %s3901_s9 = smov [#allocation5]  }
  0x77   : > { %p3639_p12 = scmp.ne.s32.totalorder %s4148_s8, %s3638_s5  ;;  %s3643_s23 = sshll.u32 %s3901_s9, 4  ;;  %s3644_s23 = int_to_ptr.vmem [resolvable:$false] %s3643_s23 }
  0x78   : > { %s3645_s20 = scalar_lea.vmem %s3644_s23, 1024  ;;  %p3646_p7 = scmp.lt.s32.totalorder %s4148_s8, %s3644_s23 }
  0x79   : > { %p3641_p3 = pnand %p3639_p12, %p4156_p0  ;;  %p3647_p9 = scmp.lt.s32.totalorder %s3645_s20, %s3638_s5 }
  0x7b   : > { %p3642_p5 = pneg %p3641_p3  ;;  %p3648_p2 = por %p3647_p9, %p3646_p7 }
  0x7d   : > { %p3649_p6 = pnand %p3648_p2, %p3642_p5 }
  0x7f   : > { %3652 = shalt.err (!%p3649_p6)
}
  0x80   : > { %s4630_s22 = smov 256   ;;  %s3903_s19 = smov 16  }
  0x81   : > { %3248 = dma.hbm_to_vmem [thread:$0]  (!%p4133_p13), %s4144_s28, 512, %s4148_s8, %s4150_s10, %s4630_s22, %s4630_s22, %s3903_s19  }
  0x82   : > { %s4667_s3 = sshll.u32 %s3891_s29, 9  ;;  %s4668_s20 = sshll.u32 %s4130_s17, 5 }
  0x83   : > { %s4188_s23 = scalar_lea.hbm %s4591_s2, %s4667_s3  ;;  %s511_s1 = scalar_lea.vmem [#allocation7], %s4668_s20 }
  0x84   : > { %s518_s30 = sshll.u32 %s511_s1, 4  ;;  %s3904_s21 = smov [#allocation10]   ;;  %s4192_s30 = int_to_ptr.vmem [resolvable:$true] %s518_s30 }
  0x85   : > { %s404_s25 = sshll.u32 %s3904_s21, 4  ;;  %s3905_s16 = smov [#allocation13]   ;;  %s405_s25 = int_to_ptr.vmem [resolvable:$true] %s404_s25 }
  0x86   : > { %s436_s4 = sshll.u32 %s3905_s16, 4  ;;  %s3653_s8 = scalar_lea.hbm %s4596_s7, 4096  ;;  %s437_s4 = int_to_ptr.vmem [resolvable:$true] %s436_s4 }
  0x87   : > { %p3654_p1 = scmp.ne.s32.totalorder %s4596_s7, %s3653_s8  ;;  %p4669_p4 = scmp.ne.s32.totalorder %s4653_s13, 0 }
  0x88   : > { %p3660_p5 = scmp.lt.u32.totalorder %s3653_s8, %s4596_s7 }
  0x89   : > { %p3656_p7 = pnand %p3654_p1, %p4669_p4 }
  0x8b   : > { %p3657_p9 = pneg %p3656_p7 }
  0x8d   : > { %p3662_p10 = pnand %p3660_p5, %p3657_p9 }
  0x8f   : > { %3665 = shalt.err (!%p3662_p10)
}
  0x90   : > { %s3666_s21 = scalar_lea.vmem %s405_s25, 4096  ;;  %p3674_p3 = scmp.lt.s32.totalorder %s405_s25, %s405_s25 }
  0x91   : > { %p3667_p8 = scmp.ne.s32.totalorder %s405_s25, %s3666_s21  ;;  %p3675_p2 = scmp.lt.s32.totalorder %s3666_s21, %s3666_s21 }
  0x93   : > { %p3669_p11 = pnand %p3667_p8, %p4669_p4  ;;  %p3676_p6 = por %p3675_p2, %p3674_p3 }
  0x95   : > { %p3670_p12 = pneg %p3669_p11 }
  0x97   : > { %p3677_p13 = pnand %p3676_p6, %p3670_p12 }
  0x99   : > { %3680 = shalt.err (!%p3677_p13)
}
  0x9a   : > { %p4670_p1 = scmp.ne.s32.totalorder %s4651_s18, 0  ;;  %s4671_s14 = smov 256  }
  0x9b   : > { %s3681_s5 = scalar_lea.hbm %s4600_s11, 4096 }
  0x9c   : > { %3232 = dma.hbm_to_vmem [thread:$0]  (!%p4670_p1), %s4596_s7, 4096, %s405_s25, [#allocation9], %s4671_s14, %s4671_s14, %s3903_s19  }
  0x9d   : > { %p3682_p7 = scmp.ne.s32.totalorder %s4600_s11, %s3681_s5  ;;  %p3688_p5 = scmp.lt.u32.totalorder %s3681_s5, %s4600_s11 }
  0x9f   : > { %p3684_p13 = pnand %p3682_p7, %p4669_p4 }
  0xa1   : > { %p3685_p9 = pneg %p3684_p13 }
  0xa3   : > { %p3690_p10 = pnand %p3688_p5, %p3685_p9 }
  0xa5   : > { %3693 = shalt.err (!%p3690_p10)
}
  0xa6   : > { %s3694_s1 = scalar_lea.vmem %s437_s4, 4096  ;;  %p3702_p3 = scmp.lt.s32.totalorder %s437_s4, %s437_s4 }
  0xa7   : > { %p3695_p8 = scmp.ne.s32.totalorder %s437_s4, %s3694_s1  ;;  %p3703_p2 = scmp.lt.s32.totalorder %s3694_s1, %s3694_s1 }
  0xa9   : > { %p3697_p11 = pnand %p3695_p8, %p4669_p4  ;;  %p3704_p6 = por %p3703_p2, %p3702_p3 }
  0xab   : > { %p3698_p12 = pneg %p3697_p11 }
  0xad   : > { %p3705_p0 = pnand %p3704_p6, %p3698_p12 }
  0xaf   : > { %3708 = shalt.err (!%p3705_p0)
}
  0xb0   : > { %3238 = dma.hbm_to_vmem [thread:$0]  (!%p4670_p1), %s4600_s11, 4096, %s437_s4, [#allocation12], %s4671_s14, %s4671_s14, %s3903_s19  }
  0xb1   : > { %s3906_s24 = smov [#allocation14]   ;;  %s2835_s22 = sshll.u32 %s4130_s17, 3 }
  0xb2   : > { %s449_s16 = sshll.u32 %s3906_s24, 4  ;;  %s3709_s20 = scalar_lea.hbm %s4601_s12, 4096  ;;  %s450_s16 = int_to_ptr.vmem [resolvable:$true] %s449_s16 }
  0xb3   : > { %p3710_p0 = scmp.ne.s32.totalorder %s4601_s12, %s3709_s20  ;;  %p3716_p9 = scmp.lt.u32.totalorder %s3709_s20, %s4601_s12 }
  0xb5   : > { %p3712_p7 = pnand %p3710_p0, %p4669_p4 }
  0xb7   : > { %p3713_p13 = pneg %p3712_p7 }
  0xb9   : > { %p3718_p5 = pnand %p3716_p9, %p3713_p13 }
  0xbb   : > { %3721 = shalt.err (!%p3718_p5)
}
  0xbc   : > { %s3722_s4 = scalar_lea.vmem %s450_s16, 4096  ;;  %p3730_p12 = scmp.lt.s32.totalorder %s450_s16, %s450_s16 }
  0xbd   : > { %p3723_p10 = scmp.ne.s32.totalorder %s450_s16, %s3722_s4  ;;  %p3731_p3 = scmp.lt.s32.totalorder %s3722_s4, %s3722_s4 }
  0xbf   : > { %p3725_p8 = pnand %p3723_p10, %p4669_p4  ;;  %p3732_p2 = por %p3731_p3, %p3730_p12 }
  0xc1   : > { %p3726_p11 = pneg %p3725_p8 }
  0xc3   : > { %p3733_p6 = pnand %p3732_p2, %p3726_p11 }
  0xc5   : > { %3736 = shalt.err (!%p3733_p6)
}
  0xc6   : > { %s4672_s25 = smov 4   ;;  %s4673_s21 = smov 64  }
  0xc7   : > { %3241 = dma.hbm_to_vmem [thread:$0]  (!%p4670_p1), %s4601_s12, 4096, %s450_s16, [#allocation15], %s4673_s21, %s4673_s21, %s4672_s25  }
  0xc8   : > { %s3013_s13 = sshll.u32 %s3891_s29, 7  ;;  %s467_s18 = scalar_lea.vmem [#allocation2], %s2835_s22 }
  0xc9   : > { %s4262_s8 = scalar_lea.hbm %s4589_s0, %s3013_s13  ;;  %s476_s28 = sshll.u32 %s467_s18, 4  ;;  %s4264_s28 = int_to_ptr.vmem [resolvable:$true] %s476_s28 }
  0xca   : > { %s464_s3 = scalar_lea.sflag [#allocation3], %s4130_s17  ;;  %s3737_s1 = scalar_lea.hbm %s4262_s8, 128 }
  0xcb   : > { %p3738_p4 = scmp.ne.s32.totalorder %s4262_s8, %s3737_s1  ;;  %p4674_p0 = scmp.ne.s32.totalorder %s4666_s27, 0 }
  0xcc   : > { %s3742_s24 = scalar_lea.hbm %s4589_s0, 256  ;;  %p3743_p13 = scmp.lt.u32.totalorder %s4262_s8, %s4589_s0 }
  0xcd   : > { %p3740_p7 = pnand %p3738_p4, %p4674_p0  ;;  %p3744_p9 = scmp.lt.u32.totalorder %s3742_s24, %s3737_s1 }
  0xce   : > { %p3746_p10 = scmp.lt.u32.totalorder %s3737_s1, %s4262_s8 }
  0xcf   : > { %p3741_p1 = pneg %p3740_p7  ;;  %p3745_p5 = por %p3744_p9, %p3743_p13 }
  0xd1   : > { %p3747_p8 = por %p3746_p10, %p3745_p5 }
  0xd3   : > { %p3748_p11 = pnand %p3747_p8, %p3741_p1 }
  0xd5   : > { %3751 = shalt.err (!%p3748_p11)
}
  0xd6   : > { %s3752_s22 = scalar_lea.vmem %s4264_s28, 128  ;;  %s3907_s5 = smov [#allocation2]  }
  0xd7   : > { %p3753_p12 = scmp.ne.s32.totalorder %s4264_s28, %s3752_s22  ;;  %s3757_s20 = sshll.u32 %s3907_s5, 4  ;;  %s3758_s20 = int_to_ptr.vmem [resolvable:$false] %s3757_s20 }
  0xd8   : > { %s3759_s18 = scalar_lea.vmem %s3758_s20, 256  ;;  %p3760_p6 = scmp.lt.s32.totalorder %s4264_s28, %s3758_s20 }
  0xd9   : > { %p3755_p3 = pnand %p3753_p12, %p4674_p0  ;;  %p3761_p4 = scmp.lt.s32.totalorder %s3759_s18, %s3752_s22 }
  0xdb   : > { %p3756_p2 = pneg %p3755_p3  ;;  %p3762_p7 = por %p3761_p4, %p3760_p6 }
  0xdd   : > { %p3763_p13 = pnand %p3762_p7, %p3756_p2 }
  0xdf   : > { %3766 = shalt.err (!%p3763_p13)
}
  0xe0   : > { %p4675_p1 = scmp.ne.s32.totalorder %s4664_s6, 0  ;;  %s3767_s1 = scalar_lea.hbm %s4188_s23, 512 }
  0xe1   : > { %p3768_p9 = scmp.ne.s32.totalorder %s4188_s23, %s3767_s1  ;;  %s3772_s24 = scalar_lea.hbm %s4591_s2, 1024 }
  0xe2   : > { %3245 = dma.hbm_to_vmem [thread:$0]  (!%p4675_p1), %s4262_s8, 128, %s4264_s28, %s464_s3, %s4673_s21, %s4673_s21, %s4672_s25  }
  0xe3   : > { %p3770_p5 = pnand %p3768_p9, %p4674_p0  ;;  %p3773_p8 = scmp.lt.u32.totalorder %s4188_s23, %s4591_s2 }
  0xe4   : > { %p3774_p11 = scmp.lt.u32.totalorder %s3772_s24, %s3767_s1  ;;  %p3776_p3 = scmp.lt.u32.totalorder %s3767_s1, %s4188_s23 }
  0xe5   : > { %p3771_p10 = pneg %p3770_p5 }
  0xe6   : > { %p3775_p12 = por %p3774_p11, %p3773_p8 }
  0xe8   : > { %p3777_p2 = por %p3776_p3, %p3775_p12 }
  0xea   : > { %p3778_p6 = pnand %p3777_p2, %p3771_p10 }
  0xec   : > { %3781 = shalt.err (!%p3778_p6)
}
  0xed   : > { %s3782_s17 = scalar_lea.vmem %s4192_s30, 512  ;;  %s3908_s25 = smov [#allocation7]  }
  0xee   : > { %p3783_p4 = scmp.ne.s32.totalorder %s4192_s30, %s3782_s17  ;;  %s3787_s21 = sshll.u32 %s3908_s25, 4  ;;  %s3788_s21 = int_to_ptr.vmem [resolvable:$false] %s3787_s21 }
  0xef   : > { %s3789_s8 = scalar_lea.vmem %s3788_s21, 1024  ;;  %p3790_p9 = scmp.lt.s32.totalorder %s4192_s30, %s3788_s21 }
  0xf0   : > { %p3785_p7 = pnand %p3783_p4, %p4674_p0  ;;  %p3791_p5 = scmp.lt.s32.totalorder %s3789_s8, %s3782_s17 }
  0xf2   : > { %p3786_p13 = pneg %p3785_p7  ;;  %p3792_p8 = por %p3791_p5, %p3790_p9 }
  0xf4   : > { %p3793_p11 = pnand %p3792_p8, %p3786_p13 }
  0xf6   : > { %3796 = shalt.err (!%p3793_p11)
}
  0xf7   : > { %3251 = dma.hbm_to_vmem [thread:$0]  (!%p4675_p1), %s4188_s23, 512, %s4192_s30, %s4150_s10, %s4671_s14, %s4671_s14, %s3903_s19  }
  0xf8   : > { %p4676_p0 = scmp.ne.s32.totalorder %s4650_s15, 0 }
  0xf9   : > { %s4677_s27 = sld [smem:[#allocation29_spill]] (!%p4676_p0)  ;;  %s4321_s28 = sand.u32 (!%p4676_p0), 1, %s3879_s26  }
  0xfa   : > { %530 = sbr.rel (%p4676_p0) target bundleno = 3371 (0xd2b), region = 72  ;;  %s2845_s3 = sshll.u32 (!%p4676_p0), %s4321_s28, 3 }
  0xfb   : > { %s533_s22 = scalar_lea.sflag (!%p4676_p0), [#allocation3], %s4321_s28  ;;  %s4325_s5 = scalar_lea.vmem (!%p4676_p0), [#allocation2], %s2845_s3 }
  0xff   : > { %p4678_p10 = scmp.ne.s32.totalorder (!%p4676_p0), %s4677_s27, 0 }
 0x101   : > { %3850 = dma.done.wait (%p4678_p10), %s533_s22, 128  }
 0x102   : > { %3852 = vsyncadd (%p4678_p10), %s533_s22, 4294967168  ;;  %s4679_s6 = sld [smem:[#allocation27_spill]]  ;;  %s2846_s15 = sshll.u32 %s4321_s28, 5 }
 0x103   : > { %s4333_s19 = scalar_lea.vmem [#allocation5], %s2846_s15 }
 0x108   : > { %s541_s30 = sand.u32 1, %s4679_s6  }
 0x109   : > { %s542_s10 = scalar_lea.sflag [#allocation6], %s541_s30 }
 0x10a   : > { %3854 = dma.done.wait (%p4678_p10), %s542_s10, 1024  }
 0x10b   : > { %3856 = vsyncadd (%p4678_p10), %s542_s10, 4294966272  ;;  %s4339_s23 = scalar_lea.vmem [#allocation7], %s2846_s15  ;;  %p4680_p1 = scmp.eq.s32.totalorder %s4679_s6, 0 }
 0x10d   : > { %3858 = dma.done.wait (%p4680_p1), [#allocation9], 5120   ;;  %p4681_p12 = pmov %p4680_p1 }
 0x10e   : > { %p4682_p3 = pmov %p4680_p1 }
 0x10f   : > { %3860 = vsyncadd (%p4681_p12), [#allocation9], 4294962176 }
 0x110   : > { %3862 = dma.done.wait (%p4682_p3), [#allocation12], 8192   ;;  %p4683_p2 = pmov %p4680_p1 }
 0x111   : > { %p4684_p6 = pmov %p4680_p1 }
 0x112   : > { %3864 = vsyncadd (%p4683_p2), [#allocation12], 4294959104 }
 0x113   : > { %3866 = dma.done.wait (%p4684_p6), [#allocation15], 4096   ;;  %p4685_p4 = pmov %p4680_p1 }
 0x114   : > { %v3909_v0 = vmov 0.0   ;;  %vm3910_vm0 = vmmov 0   ;;  %v3330_v1 = vld [vmem:[#allocation8] sm:$0xff]   ;;  %v3331_v2 = vld [vmem:[#allocation8 + $0x8] sm:$0xff]   ;;  %v3332_v3 = vld [vmem:[#allocation8 + $0x10] sm:$0xff]   ;;  %s4686_s18 = sld [smem:[#allocation35_spill]] }
 0x115   : > { %3868 = vsyncadd (%p4685_p4), [#allocation15], 4294963200  ;;  %3130 = vmatprep.subr.bf16.mxu0 %v3909_v0  ;;  %3146 = vmatprep.mubr.msk.bf16.mxu0 %vm3910_vm0, %v3909_v0  ;;  %v3333_v4 = vld [vmem:[#allocation8 + $0x18] sm:$0xff]   ;;  %v3334_v5 = vld [vmem:[#allocation8 + $0x20] sm:$0xff]   ;;  %v3911_v51 = vmov 0   ;;  %s4687_s4 = sld [smem:[#allocation36_spill]] }
 0x116   : > { %3131 = vmatpush3.bf16.msra.mxu0 %v3330_v1  ;;  %v3335_v6 = vld [vmem:[#allocation8 + $0x28] sm:$0xff]   ;;  %v3336_v7 = vld [vmem:[#allocation8 + $0x30] sm:$0xff]   ;;  %v3337_v8 = vld [vmem:[#allocation8 + $0x38] sm:$0xff]   ;;  %1024 = vmatprep.mubr.bf16.mxu1 %v3911_v51  ;;  %s4688_s13 = sld [smem:[#allocation37_spill]]  ;;  %vm1129_vm1 = vcmask 130048   ;;  %s4689_s21 = sld [smem:[#allocation39_spill]] }
 0x117   : > { %3132 = vmatprep.subr.bf16.mxu0 %v3909_v0  ;;  %v3338_v9 = vld [vmem:[%s4325_s5] sm:$0xff]   ;;  %s4690_s3 = sld [smem:[#allocation40_spill]]  ;;  %s4691_s22 = sld [smem:[#allocation25_spill]] }
 0x118   : > { %v3339_v17 = vld [vmem:[#allocation10 + $0x4] ss:$16 sps:$4 sm:$0xff]   ;;  %v3341_v18 = vld [vmem:[#allocation10 + $0x8] ss:$16 sps:$4 sm:$0xff]   ;;  %v3343_v19 = vld [vmem:[#allocation10 + $0xc] ss:$16 sps:$4 sm:$0xff]  }
 0x119   : > { %v3344_v20 = vld [vmem:[#allocation10] ss:$16 sps:$4 sm:$0xff]   ;;  %v3345_v21 = vld [vmem:[#allocation10 + $0x24] ss:$16 sps:$4 sm:$0xff]   ;;  %992 = vmatprep.subr.bf16.mxu1 %v3339_v17  ;;  %v3349_v22 = vld [vmem:[#allocation10 + $0x2c] ss:$16 sps:$4 sm:$0xff]  }
 0x11a   : > { %3133 = vmatpush3.bf16.msra.mxu0 %v3331_v2  ;;  %v2854_v10 = vld [vmem:[%s4686_s18] ss:$0 sm:$0xff]  ;;  %993 = vmatpush1.bf16.msra.mxu1 %v3344_v20  ;;  %v3347_v23 = vld [vmem:[#allocation10 + $0x28] ss:$16 sps:$4 sm:$0xff]   ;;  %v3351_v33 = vld [vmem:[#allocation10 + $0x44] ss:$16 sps:$4 sm:$0xff]  }
 0x11b   : > { %3134 = vmatprep.subr.bf16.mxu0 %v3909_v0  ;;  %994 = vmatprep.subr.bf16.mxu1 %v3345_v21  ;;  %v3350_v32 = vld [vmem:[#allocation10 + $0x20] ss:$16 sps:$4 sm:$0xff]   ;;  %v3355_v34 = vld [vmem:[#allocation10 + $0x4c] ss:$16 sps:$4 sm:$0xff]   ;;  %v3353_v35 = vld [vmem:[#allocation10 + $0x48] ss:$16 sps:$4 sm:$0xff]  }
 0x11c   : > { %v3356_v36 = vld [vmem:[#allocation10 + $0x40] ss:$16 sps:$4 sm:$0xff]   ;;  %v3357_v37 = vld [vmem:[#allocation10 + $0x64] ss:$16 sps:$4 sm:$0xff]   ;;  %v3361_v38 = vld [vmem:[#allocation10 + $0x6c] ss:$16 sps:$4 sm:$0xff]  }
 0x11d   : > { %v3359_v39 = vld [vmem:[#allocation10 + $0x68] ss:$16 sps:$4 sm:$0xff]   ;;  %v3362_v40 = vld [vmem:[#allocation10 + $0x60] ss:$16 sps:$4 sm:$0xff]   ;;  %v3363_v41 = vld [vmem:[#allocation10 + $0x84] ss:$16 sps:$4 sm:$0xff]  }
 0x11e   : > { %3135 = vmatpush3.bf16.msra.mxu0 %v3332_v3  ;;  %995 = vmatpush1.bf16.msra.mxu1 %v3350_v32  ;;  %v3365_v42 = vld [vmem:[#allocation10 + $0x88] ss:$16 sps:$4 sm:$0xff]   ;;  %v3367_v43 = vld [vmem:[#allocation10 + $0x8c] ss:$16 sps:$4 sm:$0xff]   ;;  %v3368_v44 = vld [vmem:[#allocation10 + $0x80] ss:$16 sps:$4 sm:$0xff]  }
 0x11f   : > { %3136 = vmatprep.subr.bf16.mxu0 %v3909_v0  ;;  %996 = vmatprep.subr.bf16.mxu1 %v3351_v33  ;;  %v3369_v45 = vld [vmem:[#allocation10 + $0xa4] ss:$16 sps:$4 sm:$0xff]   ;;  %v3373_v46 = vld [vmem:[#allocation10 + $0xac] ss:$16 sps:$4 sm:$0xff]   ;;  %v3371_v47 = vld [vmem:[#allocation10 + $0xa8] ss:$16 sps:$4 sm:$0xff]  }
 0x120   : > { %v3374_v48 = vld [vmem:[#allocation10 + $0xa0] ss:$16 sps:$4 sm:$0xff]   ;;  %v3375_v49 = vld [vmem:[#allocation10 + $0xc4] ss:$16 sps:$4 sm:$0xff]   ;;  %v3379_v50 = vld [vmem:[#allocation10 + $0xcc] ss:$16 sps:$4 sm:$0xff]  }
 0x121   : > { %v3377_v52 = vld [vmem:[#allocation10 + $0xc8] ss:$16 sps:$4 sm:$0xff]   ;;  %v3380_v53 = vld [vmem:[#allocation10 + $0xc0] ss:$16 sps:$4 sm:$0xff]   ;;  %v3381_v54 = vld [vmem:[#allocation10 + $0xe4] ss:$16 sps:$4 sm:$0xff]  }
 0x122   : > { %3137 = vmatpush3.bf16.msra.mxu0 %v3333_v4  ;;  %997 = vmatpush1.bf16.msra.mxu1 %v3356_v36  ;;  %v3385_v55 = vld [vmem:[#allocation10 + $0xec] ss:$16 sps:$4 sm:$0xff]   ;;  %v3383_v56 = vld [vmem:[#allocation10 + $0xe8] ss:$16 sps:$4 sm:$0xff]   ;;  %v3386_v57 = vld [vmem:[#allocation10 + $0xe0] ss:$16 sps:$4 sm:$0xff]  }
 0x123   : > { %3138 = vmatprep.subr.bf16.mxu0 %v3909_v0  ;;  %998 = vmatprep.subr.bf16.mxu1 %v3357_v37  ;;  %v2864_v3 = vld [vmem:[%s4687_s4] ss:$0 sm:$0xff]  ;;  %s2853_s5 = sshll.u32 %s4321_s28, 4  ;;  %s4692_s15 = sld [smem:[#allocation30_spill]] }
 0x124   : > { %s626_s6 = scalar_lea.vmem [#allocation16], %s2853_s5  ;;  %s3016_s10 = sshll.u32 %s4691_s22, 8 }
 0x125   : > { %s2648_s30 = sshll.u32 %s626_s6, 4  ;;  %s4693_s14 = sld [smem:[#allocation41_spill]]  ;;  %s4534_s30 = int_to_ptr.vmem [resolvable:$true] %s2648_s30 }
 0x126   : > { %3139 = vmatpush3.bf16.msra.mxu0 %v3334_v5  ;;  %999 = vmatpush1.bf16.msra.mxu1 %v3362_v40  ;;  %s2633_s18 = scalar_lea.sflag [#allocation4], %s4321_s28  ;;  %s3797_s1 = scalar_lea.vmem %s4534_s30, 256 }
 0x127   : > { %3140 = vmatprep.subr.bf16.mxu0 %v3909_v0  ;;  %1000 = vmatprep.subr.bf16.mxu1 %v3363_v41  ;;  %p3798_p7 = scmp.ne.s32.totalorder %s4534_s30, %s3797_s1  ;;  %s3912_s16 = smov [#allocation16]  }
 0x128   : > { %s3801_s4 = sshll.u32 %s3912_s16, 4  ;;  %s3802_s4 = int_to_ptr.vmem [resolvable:$false] %s3801_s4 }
 0x129   : > { %p4694_p13 = scmp.ne.s32.totalorder %s4692_s15, 0  ;;  %s3803_s24 = scalar_lea.vmem %s3802_s4, 512 }
 0x12a   : > { %3141 = vmatpush3.bf16.msra.mxu0 %v3335_v6  ;;  %1001 = vmatpush1.bf16.msra.mxu1 %v3368_v44  ;;  %p3804_p8 = scmp.lt.s32.totalorder %s4534_s30, %s3802_s4  ;;  %p3805_p11 = scmp.lt.s32.totalorder %s3803_s24, %s3797_s1 }
 0x12b   : > { %3142 = vmatprep.subr.bf16.mxu0 %v3909_v0  ;;  %1002 = vmatprep.subr.bf16.mxu1 %v3369_v45  ;;  %s4540_s20 = scalar_lea.hbm %s4693_s14, %s3016_s10  ;;  %p3799_p9 = pnand %p3798_p7, %p4694_p13 }
 0x12c   : > { %p3806_p0 = por %p3805_p11, %p3804_p8 }
 0x12d   : > { %p3800_p5 = pneg %p3799_p9 }
 0x12e   : > { %3143 = vmatpush3.bf16.msra.mxu0 %v3336_v7  ;;  %1003 = vmatpush1.bf16.msra.mxu1 %v3374_v48  ;;  %v2865_v7 = vld [vmem:[%s4688_s13] ss:$0 sm:$0xff] }
 0x12f   : > { %3144 = vmatprep.subr.bf16.mxu0 %v3909_v0  ;;  %1004 = vmatprep.subr.bf16.mxu1 %v3375_v49  ;;  %p3807_p10 = pnand %p3806_p0, %p3800_p5 }
 0x132   : > { %3145 = vmatpush3.bf16.msra.mxu0 %v3337_v8  ;;  %1005 = vmatpush1.bf16.msra.mxu1 %v3380_v53 }
 0x133   : > { %1035 = vmatprep.subr.bf16.mxu0 %v3343_v19  ;;  %1006 = vmatprep.subr.bf16.mxu1 %v3381_v54  ;;  %v3392_v54 = vld [vmem:[%s4339_s23] ss:$16 sps:$4 sm:$0xff]  }
 0x135   : > { %3147 = vmatmul.mubr.bf16.vlgmr.msra.gmra.mrb[0].mxu0 %v3338_v9 }
 0x136   : > { %1036 = vmatpush1.bf16.msra.mxu0 %v3341_v18  ;;  %1067 = vmatprep.mubr.bf16.mxu0 %v3911_v51 }
 0x137   : > { %1037 = vmatprep.subr.bf16.mxu0 %v3349_v22  ;;  %1007 = vmatpush1.bf16.msra.mxu1 %v3386_v57  ;;  %v3391_v22 = vld [vmem:[%s4333_s19 + $0xc] ss:$16 sps:$4 sm:$0xff]  }
 0x138   : > { %3150 = vmatprep.subr.bf16.mxu1 %v3909_v0 }
 0x13a   : > { %1038 = vmatpush1.bf16.msra.mxu0 %v3347_v23 }
 0x13b   : > { %1039 = vmatprep.subr.bf16.mxu0 %v3355_v34 }
 0x13e   : > { %1040 = vmatpush1.bf16.msra.mxu0 %v3353_v35 }
 0x13f   : > { %1041 = vmatprep.subr.bf16.mxu0 %v3361_v38 }
 0x142   : > { %1042 = vmatpush1.bf16.msra.mxu0 %v3359_v39 }
 0x143   : > { %1043 = vmatprep.subr.bf16.mxu0 %v3367_v43 }
 0x146   : > { %1044 = vmatpush1.bf16.msra.mxu0 %v3365_v42 }
 0x147   : > { %1045 = vmatprep.subr.bf16.mxu0 %v3373_v46 }
 0x14a   : > { %1046 = vmatpush1.bf16.msra.mxu0 %v3371_v47 }
 0x14b   : > { %1047 = vmatprep.subr.bf16.mxu0 %v3379_v50 }
 0x14e   : > { %1048 = vmatpush1.bf16.msra.mxu0 %v3377_v52 }
 0x14f   : > { %1049 = vmatprep.subr.bf16.mxu0 %v3385_v55 }
 0x152   : > { %1050 = vmatpush1.bf16.msra.mxu0 %v3383_v56 }
 0x153   : > { %3174 = vmatprep.subr.bf16.mxu0 %v3909_v0 }
 0x208   : > { %v751_v11 = vpop.f32.mrb[0].mxu0 }
 0x209   : > { %v4367_v12 = vadd.f32 %v2854_v10, %v751_v11  ;;  %v3148_v13 = vpop.f32.mrb[1].mxu0  ;;  %v3387_v11 = vld [vmem:[%s4333_s19] ss:$16 sps:$4 sm:$0xff]  }
 0x20a   : > { %v754_v14 = vpop.f32.mrb[2].mxu0  ;;  %v3389_v13 = vld [vmem:[%s4333_s19 + $0x8] ss:$16 sps:$4 sm:$0xff]  }
 0x20b   : > { %760 = vadd.xlane.f32.xlu0 %v4367_v12  ;;  %v3149_v15 = vpop.f32.mrb[3].mxu0  ;;  %v4370_v16 = vadd.f32 %v2854_v10, %v754_v14 }
 0x20f   : > { %762 = vadd.xlane.f32.xlu0 %v4370_v16 }
 0x298   : > { %v761_v24 = vpop.xlane.xlu0 %760 }
 0x299   : > { %v765_v25 = vmul.f32 0.0078125, %v761_v24 }
 0x29b   : > { %v4374_v26 = vsub.f32 %v4367_v12, %v765_v25 }
 0x29c   : > { %v763_v27 = vpop.xlane.xlu0 %762 }
 0x29d   : > { %v766_v28 = vmul.f32 0.0078125, %v763_v27  ;;  %v769_v29 = vmul.f32 %v4374_v26, %v4374_v26 }
 0x29f   : > { %v4379_v30 = vsub.f32 %v4370_v16, %v766_v28  ;;  %771 = vadd.xlane.f32.xlu1 %v769_v29 }
 0x2a1   : > { %v770_v31 = vmul.f32 %v4379_v30, %v4379_v30 }
 0x2a3   : > { %773 = vadd.xlane.f32.xlu1 %v770_v31 }
 0x32c   : > { %v772_v58 = vpop.xlane.xlu1 %771 }
 0x32d   : > { %v775_v59 = vmul.f32 0.0078125, %v772_v58 }
 0x32f   : > { %v777_v60 = vadd.f32 1e-05, %v775_v59 }
 0x330   : > { %v774_v61 = vpop.xlane.xlu1 %773 }
 0x331   : > { %3511 = vrsqrt.f32 %v777_v60  ;;  %v776_v62 = vmul.f32 0.0078125, %v774_v61  ;;  %v3394_v61 = vld [vmem:[%s4333_s19 + $0x4] ss:$16 sps:$4 sm:$0xff]  }
 0x333   : > { %v778_v63 = vadd.f32 1e-05, %v776_v62 }
 0x335   : > { %3513 = vrsqrt.f32 %v778_v63 }
 0x33b   : > { %v3512_v1 = vpop.eup %3511 }
 0x33c   : > { %v781_v2 = vmul.f32 %v3512_v1, %v4374_v26 }
 0x33e   : > { %v789_v6 = vmul.f32 %v2864_v3, %v781_v2 }
 0x33f   : > { %v3514_v4 = vpop.eup %3513 }
 0x340   : > { %v782_v5 = vmul.f32 %v3514_v4, %v4379_v30  ;;  %v797_v9 = vadd.f32 %v2865_v7, %v789_v6 }
 0x342   : > { %v790_v8 = vmul.f32 %v2864_v3, %v782_v5 }
 0x344   : > { %v798_v10 = vadd.f32 %v2865_v7, %v790_v8 }
 0x346   : > { %v799_v14 = vpack.c.bf16 %v798_v10, %v797_v9 }
 0x348   : > { %1025 = vmatmul.mubr.bf16.vlgmr.msra.gmra.mrb[0].mxu1 %v799_v14  ;;  %1068 = vmatmul.mubr.bf16.vlgmr.msra.gmra.mrb[4].mxu0 %v799_v14 }
 0x349   : > { %3151 = vmatpush3.bf16.xpose.msra.mxu1 %v3387_v11  ;;  %3175 = vmatpush3.bf16.xpose.msra.mxu0 %v3389_v13 }
 0x34a   : > { %3152 = vmatprep.mubr.msk.bf16.mxu1 %vm3910_vm0, %v3909_v0  ;;  %3176 = vmatprep.mubr.msk.bf16.mxu0 %vm3910_vm0, %v3909_v0 }
 0x34b   : > { %3186 = vmatprep.subr.bf16.mxu0 %v3909_v0  ;;  %3156 = vmatprep.subr.bf16.mxu1 %v3909_v0 }
 0x41b   : > { %v1026_v15 = vpop.f32.mrb[0].mxu1  ;;  %v1069_v17 = vpop.f32.mrb[4].mxu0 }
 0x41c   : > { %v4403_v18 = vpop.f32.mrb[1].mxu1  ;;  %v1071_v19 = vpop.f32.mrb[5].mxu0 }
 0x41d   : > { %v1030_v20 = vpop.f32.mrb[2].mxu1  ;;  %v1073_v21 = vpop.f32.mrb[6].mxu0 }
 0x41e   : > { %v1078_v23 = vpack.c.bf16 %v1030_v20, %v1026_v15  ;;  %v1080_v24 = vpack.c.bf16 %v1073_v21, %v1069_v17  ;;  %v1032_v25 = vpop.f32.mrb[3].mxu1  ;;  %v1075_v26 = vpop.f32.mrb[7].mxu0 }
 0x41f   : > { %v1079_v27 = vpack.c.bf16 %v1032_v25, %v4403_v18  ;;  %v1081_v28 = vpack.c.bf16 %v1075_v26, %v1071_v19 }
 0x420   : > { %3153 = vmatmul.mubr.bf16.vlgmr.msra.gmra.mrb[4].mxu1 %v1078_v23  ;;  %3177 = vmatmul.mubr.bf16.vlgmr.msra.gmra.mrb[8].mxu0 %v1080_v24 }
 0x421   : > { %3187 = vmatpush3.bf16.xpose.msra.mxu0 %v3391_v22  ;;  %3188 = vmatprep.mubr.msk.bf16.mxu0 %vm3910_vm0, %v3909_v0 }
 0x422   : > { %3158 = vmatprep.mubr.msk.bf16.mxu1 %vm3910_vm0, %v3909_v0  ;;  %3157 = vmatpush3.bf16.msra.mxu1 %v3392_v54  ;;  %v3404_v54 = vld [vmem:[#allocation11 + $0x10] sm:$0xff]  }
 0x423   : > { %3162 = vmatprep.subr.bf16.mxu1 %v3909_v0 }
 0x428   : > { %3189 = vmatmul.mubr.bf16.vlgmr.msra.gmra.mrb[12].mxu0 %v1081_v28 }
 0x4f3   : > { %v1122_v29 = vpop.f32.mrb[4].mxu1  ;;  %v4411_v30 = vpop.f32.mrb[8].mxu0 }
 0x4f4   : > { %v3154_v31 = vpop.f32.mrb[5].mxu1  ;;  %v3178_v32 = vpop.f32.mrb[9].mxu0  ;;  %v1130_v33 = vsel %vm1129_vm1, %v1122_v29, -inf  ;;  %v1368_v11 = vsel %vm1129_vm1, %v4411_v30, -inf }
 0x4f5   : > { %1131 = vmax.xlane.f32.xlu0 %v1130_v33  ;;  %v1125_v34 = vpop.f32.mrb[6].mxu1  ;;  %v4414_v35 = vpop.f32.mrb[10].mxu0 }
 0x4f6   : > { %v3155_v36 = vpop.f32.mrb[7].mxu1  ;;  %v3179_v37 = vpop.f32.mrb[11].mxu0  ;;  %v1133_v38 = vsel %vm1129_vm1, %v1125_v34, -inf  ;;  %v1371_v13 = vsel %vm1129_vm1, %v4414_v35, -inf }
 0x4f7   : > { %1134 = vmax.xlane.f32.xlu1 %v1133_v38 }
 0x4fb   : > { %v4417_v39 = vpop.f32.mrb[12].mxu0 }
 0x4fc   : > { %v3190_v40 = vpop.f32.mrb[13].mxu0  ;;  %v1487_v14 = vsel %vm1129_vm1, %v4417_v39, -inf }
 0x4fd   : > { %v4419_v41 = vpop.f32.mrb[14].mxu0 }
 0x4fe   : > { %v3191_v42 = vpop.f32.mrb[15].mxu0  ;;  %v1490_v15 = vsel %vm1129_vm1, %v4419_v41, -inf }
 0x582   : > { %v1132_v43 = vpop.xlane.xlu0 %1131 }
 0x583   : > { %v1136_v44 = vsub.f32 %v1122_v29, %v1132_v43 }
 0x584   : > { %v1135_v45 = vpop.xlane.xlu1 %1134 }
 0x585   : > { %v1138_v46 = vmul.f32 1.442695, %v1136_v44  ;;  %v1137_v47 = vsub.f32 %v1125_v34, %v1135_v45 }
 0x587   : > { %3515 = vpow2.f32 %v1138_v46  ;;  %v1140_v48 = vmul.f32 1.442695, %v1137_v47  ;;  %v3395_v47 = vld [vmem:[%s4339_s23 + $0x4] ss:$16 sps:$4 sm:$0xff]  }
 0x589   : > { %3517 = vpow2.f32 %v1140_v48  ;;  %v3399_v48 = vld [vmem:[#allocation11 + $0x40] sm:$0xff]  }
 0x58a   : > { %3042 = vmatprep.subr.bf16.mxu0 %v3399_v48 }
 0x591   : > { %v3516_v49 = vpop.eup %3515 }
 0x592   : > { %v1142_v50 = vsel %vm1129_vm1, %v3516_v49, 0.0 }
 0x593   : > { %v3518_v52 = vpop.eup %3517  ;;  %1143 = vadd.xlane.f32.xlu0 %v1142_v50  ;;  %v3401_v50 = vld [vmem:[#allocation11 + $0x48] sm:$0xff]  }
 0x594   : > { %v1145_v53 = vsel %vm1129_vm1, %v3518_v52, 0.0 }
 0x595   : > { %1146 = vadd.xlane.f32.xlu1 %v1145_v53  ;;  %v3403_v53 = vld [vmem:[#allocation11 + $0x50] sm:$0xff]  }
 0x620   : > { %v1144_v55 = vpop.xlane.xlu0 %1143 }
 0x621   : > { %3519 = vrcp.f32 %v1144_v55  ;;  %v3405_v55 = vld [vmem:[#allocation11 + $0x58] sm:$0xff]  }
 0x622   : > { %v1147_v56 = vpop.xlane.xlu1 %1146 }
 0x623   : > { %3521 = vrcp.f32 %v1147_v56  ;;  %v3406_v56 = vld [vmem:[#allocation11 + $0x18] sm:$0xff]  }
 0x62b   : > { %v3520_v57 = vpop.eup %3519 }
 0x62c   : > { %v1150_v59 = vmul.f32 %v3520_v57, %v3516_v49  ;;  %v3400_v49 = vld [vmem:[#allocation11] sm:$0xff]  }
 0x62d   : > { %v3522_v58 = vpop.eup %3521  ;;  %3043 = vmatpush3.bf16.msra.mxu0 %v3400_v49  ;;  %v3407_v57 = vld [vmem:[#allocation11 + $0x60] sm:$0xff]  }
 0x62e   : > { %v1151_v60 = vmul.f32 %v3522_v58, %v3518_v52  ;;  %v3402_v52 = vld [vmem:[#allocation11 + $0x8] sm:$0xff]   ;;  %3044 = vmatprep.subr.bf16.mxu0 %v3401_v50  ;;  %v3409_v58 = vld [vmem:[#allocation11 + $0x20] sm:$0xff]  }
 0x630   : > { %v1152_v62 = vpack.c.bf16 %v1151_v60, %v1150_v59  ;;  %v3411_v59 = vld [vmem:[#allocation11 + $0x68] sm:$0xff]  }
 0x631   : > { %3045 = vmatpush3.bf16.msra.mxu0 %v3402_v52  ;;  %v3413_v60 = vld [vmem:[#allocation11 + $0x28] sm:$0xff]  }
 0x632   : > { %3159 = vmatmul.mubr.msk.bf16.vlgmr.msra.gmra.mrb[8].mxu1 %vm1129_vm1, %v1152_v62  ;;  %3046 = vmatprep.subr.bf16.mxu0 %v3403_v53  ;;  %v3417_v62 = vld [vmem:[#allocation11 + $0x30] sm:$0xff]  }
 0x633   : > { %3163 = vmatpush3.bf16.xpose.msra.mxu1 %v3394_v61  ;;  %3164 = vmatprep.mubr.msk.bf16.mxu1 %vm3910_vm0, %v3909_v0  ;;  %v3415_v61 = vld [vmem:[#allocation11 + $0x70] sm:$0xff]  }
 0x634   : > { %3168 = vmatprep.subr.bf16.mxu1 %v3909_v0 }
 0x635   : > { %3047 = vmatpush3.bf16.msra.mxu0 %v3404_v54 }
 0x636   : > { %3048 = vmatprep.subr.bf16.mxu0 %v3405_v55 }
 0x639   : > { %3049 = vmatpush3.bf16.msra.mxu0 %v3406_v56 }
 0x63a   : > { %3165 = vmatmul.mubr.bf16.vlgmr.msra.gmra.mrb[12].mxu1 %v1079_v27  ;;  %3050 = vmatprep.subr.bf16.mxu0 %v3407_v57 }
 0x63b   : > { %3170 = vmatprep.mubr.msk.bf16.mxu1 %vm3910_vm0, %v3909_v0  ;;  %3169 = vmatpush3.bf16.msra.mxu1 %v3395_v47 }
 0x63c   : > { %3180 = vmatprep.subr.bf16.mxu1 %v3909_v0 }
 0x63d   : > { %3051 = vmatpush3.bf16.msra.mxu0 %v3409_v58 }
 0x63e   : > { %3052 = vmatprep.subr.bf16.mxu0 %v3411_v59 }
 0x641   : > { %3053 = vmatpush3.bf16.msra.mxu0 %v3413_v60 }
 0x642   : > { %3054 = vmatprep.subr.bf16.mxu0 %v3415_v61 }
 0x645   : > { %3055 = vmatpush3.bf16.msra.mxu0 %v3417_v62 }
 0x705   : > { %v4432_v63 = vpop.f32.mrb[8].mxu1 }
 0x706   : > { %v3160_v1 = vpop.f32.mrb[9].mxu1 }
 0x707   : > { %v4434_v2 = vpop.f32.mrb[10].mxu1 }
 0x708   : > { %v1203_v3 = vpack.c.bf16 %v4434_v2, %v4432_v63  ;;  %v3161_v4 = vpop.f32.mrb[11].mxu1 }
 0x70d   : > { %v1242_v5 = vpop.f32.mrb[12].mxu1 }
 0x70e   : > { %v3166_v6 = vpop.f32.mrb[13].mxu1  ;;  %v1249_v7 = vsel %vm1129_vm1, %v1242_v5, -inf }
 0x70f   : > { %1250 = vmax.xlane.f32.xlu0 %v1249_v7  ;;  %v1245_v8 = vpop.f32.mrb[14].mxu1 }
 0x710   : > { %v3167_v9 = vpop.f32.mrb[15].mxu1  ;;  %v1252_v10 = vsel %vm1129_vm1, %v1245_v8, -inf }
 0x711   : > { %1253 = vmax.xlane.f32.xlu1 %v1252_v10 }
 0x713   : > { %1369 = vmax.xlane.f32.xlu0 %v1368_v11 }
 0x715   : > { %1372 = vmax.xlane.f32.xlu1 %v1371_v13 }
 0x717   : > { %1488 = vmax.xlane.f32.xlu0 %v1487_v14  ;;  %v3396_v14 = vld [vmem:[%s4339_s23 + $0x8] ss:$16 sps:$4 sm:$0xff]  }
 0x719   : > { %1491 = vmax.xlane.f32.xlu1 %v1490_v15 }
 0x79c   : > { %v1251_v17 = vpop.xlane.xlu0 %1250 }
 0x79d   : > { %v1255_v18 = vsub.f32 %v1242_v5, %v1251_v17 }
 0x79e   : > { %v1254_v19 = vpop.xlane.xlu1 %1253 }
 0x79f   : > { %v1257_v20 = vmul.f32 1.442695, %v1255_v18  ;;  %v1256_v21 = vsub.f32 %v1245_v8, %v1254_v19 }
 0x7a0   : > { %v1370_v22 = vpop.xlane.xlu0 %1369 }
 0x7a1   : > { %3523 = vpow2.f32 %v1257_v20  ;;  %v1259_v23 = vmul.f32 1.442695, %v1256_v21  ;;  %v1374_v24 = vsub.f32 %v4411_v30, %v1370_v22  ;;  %v3398_v21 = vld [vmem:[%s4339_s23 + $0xc] ss:$16 sps:$4 sm:$0xff]  }
 0x7a2   : > { %v1373_v25 = vpop.xlane.xlu1 %1372 }
 0x7a3   : > { %3525 = vpow2.f32 %v1259_v23  ;;  %v1376_v26 = vmul.f32 1.442695, %v1374_v24  ;;  %v1375_v27 = vsub.f32 %v4414_v35, %v1373_v25  ;;  %v3408_v23 = vld [vmem:[#allocation11 + $0xc0] sm:$0xff]  }
 0x7a4   : > { %v1489_v28 = vpop.xlane.xlu0 %1488 }
 0x7a5   : > { %3527 = vpow2.f32 %v1376_v26  ;;  %v1378_v29 = vmul.f32 1.442695, %v1375_v27  ;;  %v1493_v31 = vsub.f32 %v4417_v39, %v1489_v28  ;;  %v3410_v28 = vld [vmem:[#allocation11 + $0x80] sm:$0xff]  }
 0x7a6   : > { %v1492_v32 = vpop.xlane.xlu1 %1491 }
 0x7a7   : > { %3529 = vpow2.f32 %v1378_v29  ;;  %v1495_v33 = vmul.f32 1.442695, %v1493_v31  ;;  %v1494_v34 = vsub.f32 %v4419_v41, %v1492_v32  ;;  %v3412_v31 = vld [vmem:[#allocation11 + $0xc8] sm:$0xff]  }
 0x7a8   : > { %v3414_v32 = vld [vmem:[#allocation11 + $0x88] sm:$0xff]  }
 0x7a9   : > { %3531 = vpow2.f32 %v1495_v33  ;;  %v1497_v36 = vmul.f32 1.442695, %v1494_v34  ;;  %v3416_v33 = vld [vmem:[#allocation11 + $0xd0] sm:$0xff]  }
 0x7aa   : > { %v3418_v34 = vld [vmem:[#allocation11 + $0x90] sm:$0xff]  }
 0x7ab   : > { %v3524_v37 = vpop.eup %3523  ;;  %3533 = vpow2.f32 %v1497_v36  ;;  %v3419_v36 = vld [vmem:[#allocation11 + $0x78] sm:$0xff]  }
 0x7ac   : > { %v1261_v30 = vsel %vm1129_vm1, %v3524_v37, 0.0  ;;  %3056 = vmatprep.subr.bf16.mxu0 %v3419_v36  ;;  %v3454_v36 = vld [vmem:[#allocation13 + $0x6c] ss:$16 sps:$4 sm:$0xff]  }
 0x7ad   : > { %v3526_v38 = vpop.eup %3525  ;;  %1262 = vadd.xlane.f32.xlu0 %v1261_v30  ;;  %v3422_v30 = vld [vmem:[#allocation11 + $0x98] sm:$0xff]  }
 0x7ae   : > { %v1264_v35 = vsel %vm1129_vm1, %v3526_v38, 0.0 }
 0x7af   : > { %v4454_v40 = vpop.eup %3527  ;;  %1265 = vadd.xlane.f32.xlu1 %v1264_v35  ;;  %v3424_v35 = vld [vmem:[#allocation11 + $0xa0] sm:$0xff]  }
 0x7b0   : > { %v1380_v39 = vsel %vm1129_vm1, %v4454_v40, 0.0 }
 0x7b1   : > { %v4458_v42 = vpop.eup %3529  ;;  %1381 = vadd.xlane.f32.xlu0 %v1380_v39  ;;  %v3426_v39 = vld [vmem:[#allocation11 + $0xa8] sm:$0xff]  }
 0x7b2   : > { %v1383_v41 = vsel %vm1129_vm1, %v4458_v42, 0.0 }
 0x7b3   : > { %v4462_v43 = vpop.eup %3531  ;;  %1384 = vadd.xlane.f32.xlu1 %v1383_v41  ;;  %v3428_v41 = vld [vmem:[#allocation11 + $0xb0] sm:$0xff]  }
 0x7b4   : > { %v1499_v44 = vsel %vm1129_vm1, %v4462_v43, 0.0 }
 0x7b5   : > { %v4466_v45 = vpop.eup %3533  ;;  %1500 = vadd.xlane.f32.xlu0 %v1499_v44  ;;  %v3430_v44 = vld [vmem:[#allocation11 + $0xb8] sm:$0xff]  }
 0x7b6   : > { %v1502_v46 = vsel %vm1129_vm1, %v4466_v45, 0.0 }
 0x7b7   : > { %1503 = vadd.xlane.f32.xlu1 %v1502_v46 }
 0x83a   : > { %v1263_v1 = vpop.xlane.xlu0 %1262 }
 0x83b   : > { %3535 = vrcp.f32 %v1263_v1 }
 0x83c   : > { %v1266_v4 = vpop.xlane.xlu1 %1265 }
 0x83d   : > { %3537 = vrcp.f32 %v1266_v4 }
 0x83e   : > { %v1382_v5 = vpop.xlane.xlu0 %1381 }
 0x840   : > { %v1385_v6 = vpop.xlane.xlu1 %1384 }
 0x841   : > { %3539 = vrcp.f32 %v1385_v6 }
 0x842   : > { %3541 = vrcp.f32 %v1382_v5  ;;  %v1501_v13 = vpop.xlane.xlu0 %1500 }
 0x844   : > { %v1504_v8 = vpop.xlane.xlu1 %1503 }
 0x845   : > { %v3536_v7 = vpop.eup %3535  ;;  %3543 = vrcp.f32 %v1504_v8 }
 0x846   : > { %v1269_v10 = vmul.f32 %v3536_v7, %v3524_v37  ;;  %3545 = vrcp.f32 %v1501_v13  ;;  %v3421_v37 = vld [vmem:[#allocation11 + $0x38] sm:$0xff]  }
 0x847   : > { %v3538_v9 = vpop.eup %3537  ;;  %3057 = vmatpush3.bf16.msra.mxu0 %v3421_v37  ;;  %v3452_v37 = vld [vmem:[#allocation13 + $0x68] ss:$16 sps:$4 sm:$0xff]  }
 0x848   : > { %v1270_v11 = vmul.f32 %v3538_v9, %v3526_v38  ;;  %v3423_v38 = vld [vmem:[#allocation11 + $0xe0] sm:$0xff]  }
 0x84a   : > { %v1271_v15 = vpack.c.bf16 %v1270_v11, %v1269_v10 }
 0x84b   : > { %v3540_v17 = vpop.eup %3539 }
 0x84c   : > { %3171 = vmatmul.mubr.msk.bf16.vlgmr.msra.gmra.mrb[16].mxu1 %vm1129_vm1, %v1271_v15  ;;  %v3542_v18 = vpop.eup %3541  ;;  %v1389_v19 = vmul.f32 %v3540_v17, %v4458_v42  ;;  %v3427_v42 = vld [vmem:[#allocation11 + $0xf0] sm:$0xff]   ;;  %v3434_v17 = vld [vmem:[#allocation13 + $0x8] ss:$16 sps:$4 sm:$0xff]  }
 0x84d   : > { %3181 = vmatpush3.bf16.msra.mxu1 %v3396_v14  ;;  %3182 = vmatprep.mubr.msk.bf16.mxu1 %vm3910_vm0, %v3909_v0  ;;  %v1388_v20 = vmul.f32 %v3542_v18, %v4454_v40  ;;  %v3425_v40 = vld [vmem:[#allocation11 + $0xe8] sm:$0xff]   ;;  %v3433_v15 = vld [vmem:[#allocation13 + $0x4] ss:$16 sps:$4 sm:$0xff]  }
 0x84e   : > { %3192 = vmatprep.subr.bf16.mxu1 %v3909_v0  ;;  %v3436_v18 = vld [vmem:[#allocation13 + $0xc] ss:$16 sps:$4 sm:$0xff]   ;;  %2130 = vmatprep.subr.bf16.mxu0 %v3433_v15 }
 0x84f   : > { %v1390_v22 = vpack.c.bf16 %v1389_v19, %v1388_v20  ;;  %v3544_v24 = vpop.eup %3543  ;;  %v3439_v19 = vld [vmem:[#allocation13 + $0x24] ss:$16 sps:$4 sm:$0xff]   ;;  %v3437_v20 = vld [vmem:[#allocation13 + $0x20] ss:$16 sps:$4 sm:$0xff]   ;;  %v3485_v15 = vld [vmem:[#allocation14 + $0x8] sm:$0xff]  }
 0x850   : > { %v3546_v25 = vpop.eup %3545  ;;  %v1508_v26 = vmul.f32 %v3544_v24, %v4466_v45 }
 0x851   : > { %v1507_v27 = vmul.f32 %v3546_v25, %v4462_v43  ;;  %v3429_v43 = vld [vmem:[#allocation11 + $0xf8] sm:$0xff]  }
 0x853   : > { %v1509_v29 = vpack.c.bf16 %v1508_v26, %v1507_v27 }
 0x854   : > { %3183 = vmatmul.mubr.msk.bf16.vlgmr.msra.gmra.mrb[20].mxu1 %vm1129_vm1, %v1390_v22 }
 0x855   : > { %3193 = vmatpush3.bf16.msra.mxu1 %v3398_v21  ;;  %3194 = vmatprep.mubr.msk.bf16.mxu1 %vm3910_vm0, %v3909_v0  ;;  %v3420_v0 = vld [vmem:[#allocation11 + $0xd8] sm:$0xff]  }
 0x856   : > { %3064 = vmatprep.subr.bf16.mxu1 %v3408_v23 }
 0x85c   : > { %3195 = vmatmul.mubr.msk.bf16.vlgmr.msra.gmra.mrb[24].mxu1 %vm1129_vm1, %v1509_v29  ;;  %v3445_v29 = vld [vmem:[#allocation13 + $0x44] ss:$16 sps:$4 sm:$0xff]  }
 0x85d   : > { %3065 = vmatpush3.bf16.msra.mxu1 %v3410_v28 }
 0x85e   : > { %3066 = vmatprep.subr.bf16.mxu1 %v3412_v31  ;;  %v3448_v31 = vld [vmem:[#allocation13 + $0x4c] ss:$16 sps:$4 sm:$0xff]  }
 0x861   : > { %3067 = vmatpush3.bf16.msra.mxu1 %v3414_v32  ;;  %v3443_v32 = vld [vmem:[#allocation13 + $0x40] ss:$16 sps:$4 sm:$0xff]  }
 0x862   : > { %3068 = vmatprep.subr.bf16.mxu1 %v3416_v33  ;;  %v3446_v33 = vld [vmem:[#allocation13 + $0x48] ss:$16 sps:$4 sm:$0xff]  }
 0x865   : > { %3069 = vmatpush3.bf16.msra.mxu1 %v3418_v34  ;;  %v3451_v34 = vld [vmem:[#allocation13 + $0x64] ss:$16 sps:$4 sm:$0xff]  }
 0x866   : > { %3070 = vmatprep.subr.bf16.mxu1 %v3420_v0  ;;  %v3449_v0 = vld [vmem:[#allocation13 + $0x60] ss:$16 sps:$4 sm:$0xff]  }
 0x869   : > { %3071 = vmatpush3.bf16.msra.mxu1 %v3422_v30  ;;  %v3457_v30 = vld [vmem:[#allocation13 + $0x84] ss:$16 sps:$4 sm:$0xff]  }
 0x86a   : > { %3072 = vmatprep.subr.bf16.mxu1 %v3423_v38  ;;  %v3460_v38 = vld [vmem:[#allocation13 + $0x8c] ss:$16 sps:$4 sm:$0xff]  }
 0x86d   : > { %3073 = vmatpush3.bf16.msra.mxu1 %v3424_v35  ;;  %v3455_v35 = vld [vmem:[#allocation13 + $0x80] ss:$16 sps:$4 sm:$0xff]  }
 0x86e   : > { %3074 = vmatprep.subr.bf16.mxu1 %v3425_v40  ;;  %v3458_v40 = vld [vmem:[#allocation13 + $0x88] ss:$16 sps:$4 sm:$0xff]  }
 0x871   : > { %3075 = vmatpush3.bf16.msra.mxu1 %v3426_v39  ;;  %v3463_v39 = vld [vmem:[#allocation13 + $0xa4] ss:$16 sps:$4 sm:$0xff]  }
 0x872   : > { %3076 = vmatprep.subr.bf16.mxu1 %v3427_v42  ;;  %v3466_v42 = vld [vmem:[#allocation13 + $0xac] ss:$16 sps:$4 sm:$0xff]  }
 0x875   : > { %3077 = vmatpush3.bf16.msra.mxu1 %v3428_v41  ;;  %v3461_v41 = vld [vmem:[#allocation13 + $0xa0] ss:$16 sps:$4 sm:$0xff]  }
 0x876   : > { %3078 = vmatprep.subr.bf16.mxu1 %v3429_v43  ;;  %v3464_v43 = vld [vmem:[#allocation13 + $0xa8] ss:$16 sps:$4 sm:$0xff]  }
 0x879   : > { %3079 = vmatpush3.bf16.msra.mxu1 %v3430_v44  ;;  %v3469_v44 = vld [vmem:[#allocation13 + $0xc4] ss:$16 sps:$4 sm:$0xff]  }
 0x87a   : > { %2173 = vmatprep.subr.bf16.mxu1 %v3436_v18  ;;  %v3487_v18 = vld [vmem:[#allocation14 + $0x50] sm:$0xff]  }
 0x91f   : > { %v1313_v45 = vpop.f32.mrb[16].mxu1 }
 0x920   : > { %v3172_v46 = vpop.f32.mrb[17].mxu1 }
 0x921   : > { %v1316_v47 = vpop.f32.mrb[18].mxu1  ;;  %v3467_v46 = vld [vmem:[#allocation13 + $0xc0] ss:$16 sps:$4 sm:$0xff]  }
 0x922   : > { %v1320_v48 = vpack.c.bf16 %v1316_v47, %v1313_v45  ;;  %v3173_v49 = vpop.f32.mrb[19].mxu1  ;;  %v3472_v45 = vld [vmem:[#allocation13 + $0xcc] ss:$16 sps:$4 sm:$0xff]   ;;  %v3470_v47 = vld [vmem:[#allocation13 + $0xc8] ss:$16 sps:$4 sm:$0xff]  }
 0x923   : > { %v3473_v49 = vld [vmem:[#allocation13 + $0xe0] ss:$16 sps:$4 sm:$0xff]  }
 0x924   : > { %1847 = vmatprep.mubr.bf16.mxu0 %v1320_v48  ;;  %v3475_v48 = vld [vmem:[#allocation13 + $0xe4] ss:$16 sps:$4 sm:$0xff]  }
 0x925   : > { %1848 = vmatmul.mubr.bf16.vlgmr.msra.gmra.mrb[16].mxu0 %v1203_v3 }
 0x926   : > { %2162 = vmatprep.mubr.bf16.mxu0 %v3911_v51 }
 0x927   : > { %v1434_v50 = vpop.f32.mrb[20].mxu1 }
 0x928   : > { %v3184_v52 = vpop.f32.mrb[21].mxu1 }
 0x929   : > { %v1437_v53 = vpop.f32.mrb[22].mxu1  ;;  %v3478_v52 = vld [vmem:[#allocation13 + $0xec] ss:$16 sps:$4 sm:$0xff]  }
 0x92a   : > { %v1441_v54 = vpack.c.bf16 %v1437_v53, %v1434_v50  ;;  %v3185_v55 = vpop.f32.mrb[23].mxu1  ;;  %v3476_v50 = vld [vmem:[#allocation13 + $0xe8] ss:$16 sps:$4 sm:$0xff]  }
 0x92f   : > { %v1551_v56 = vpop.f32.mrb[24].mxu1 }
 0x930   : > { %v3196_v57 = vpop.f32.mrb[25].mxu1 }
 0x931   : > { %v1554_v58 = vpop.f32.mrb[26].mxu1 }
 0x932   : > { %v1558_v59 = vpack.c.bf16 %v1554_v58, %v1551_v56  ;;  %v3197_v60 = vpop.f32.mrb[27].mxu1 }
 0x933   : > { %v2942_v60 = vld [vmem:[%s4689_s21] ss:$0 sm:$0xff] }
 0x934   : > { %1888 = vmatprep.mubr.bf16.mxu1 %v1558_v59 }
 0x935   : > { %1889 = vmatmul.mubr.bf16.vlgmr.msra.gmra.mrb[28].mxu1 %v1441_v54 }
 0x936   : > { %2205 = vmatprep.mubr.bf16.mxu1 %v3911_v51  ;;  %v3431_v51 = vld [vmem:[#allocation13] ss:$16 sps:$4 sm:$0xff]   ;;  %2174 = vmatpush1.bf16.msra.mxu1 %v3434_v17  ;;  %v3486_v17 = vld [vmem:[#allocation14 + $0x88] sm:$0xff]  }
 0x937   : > { %2131 = vmatpush1.bf16.msra.mxu0 %v3431_v51  ;;  %v3484_v51 = vld [vmem:[#allocation14 + $0xc8] sm:$0xff]  }
 0x938   : > { %2132 = vmatprep.subr.bf16.mxu0 %v3439_v19  ;;  %v3488_v19 = vld [vmem:[#allocation14 + $0xd0] sm:$0xff]  }
 0x93b   : > { %2133 = vmatpush1.bf16.msra.mxu0 %v3437_v20  ;;  %v3490_v20 = vld [vmem:[#allocation14 + $0x90] sm:$0xff]  }
 0x93c   : > { %2134 = vmatprep.subr.bf16.mxu0 %v3445_v29  ;;  %v3500_v29 = vld [vmem:[#allocation14 + $0xe8] sm:$0xff]  }
 0x93f   : > { %2135 = vmatpush1.bf16.msra.mxu0 %v3443_v32  ;;  %v3502_v32 = vld [vmem:[#allocation14 + $0xa8] sm:$0xff]  }
 0x940   : > { %2136 = vmatprep.subr.bf16.mxu0 %v3451_v34  ;;  %v3504_v34 = vld [vmem:[#allocation14 + $0xf0] sm:$0xff]  }
 0x943   : > { %2137 = vmatpush1.bf16.msra.mxu0 %v3449_v0  ;;  %v3506_v0 = vld [vmem:[#allocation14 + $0xb0] sm:$0xff]  }
 0x944   : > { %2138 = vmatprep.subr.bf16.mxu0 %v3457_v30  ;;  %v3508_v30 = vld [vmem:[#allocation14 + $0xf8] sm:$0xff]  }
 0x947   : > { %2139 = vmatpush1.bf16.msra.mxu0 %v3455_v35  ;;  %v3510_v35 = vld [vmem:[#allocation14 + $0xb8] sm:$0xff]  }
 0x948   : > { %2140 = vmatprep.subr.bf16.mxu0 %v3463_v39 }
 0x94b   : > { %2141 = vmatpush1.bf16.msra.mxu0 %v3461_v41 }
 0x94c   : > { %2142 = vmatprep.subr.bf16.mxu0 %v3469_v44 }
 0x94f   : > { %2143 = vmatpush1.bf16.msra.mxu0 %v3467_v46 }
 0x950   : > { %2144 = vmatprep.subr.bf16.mxu0 %v3475_v48 }
 0x953   : > { %2145 = vmatpush1.bf16.msra.mxu0 %v3473_v49 }
 0x9f8   : > { %v3058_v61 = vpop.f32.mrb[16].mxu0 }
 0x9f9   : > { %v3059_v62 = vpop.f32.mrb[17].mxu0 }
 0x9fa   : > { %v3060_v63 = vadd.f32 %v3059_v62, %v3058_v61  ;;  %v3061_v2 = vpop.f32.mrb[18].mxu0 }
 0x9fb   : > { %v3062_v3 = vpop.f32.mrb[19].mxu0 }
 0x9fc   : > { %v3063_v1 = vadd.f32 %v3062_v3, %v3061_v2  ;;  %v1850_v6 = vadd.f32 %v3060_v63, %v4367_v12  ;;  %v3442_v12 = vld [vmem:[#allocation13 + $0x2c] ss:$16 sps:$4 sm:$0xff]   ;;  %v2943_v3 = vld [vmem:[%s4690_s3] ss:$0 sm:$0xff] }
 0x9fd   : > { %2175 = vmatprep.subr.bf16.mxu1 %v3442_v12  ;;  %v3489_v12 = vld [vmem:[#allocation14 + $0x10] sm:$0xff]  }
 0x9fe   : > { %v1853_v10 = vadd.f32 %v3063_v1, %v4370_v16  ;;  %v3440_v16 = vld [vmem:[#allocation13 + $0x28] ss:$16 sps:$4 sm:$0xff]  }
 0x9ff   : > { %2176 = vmatpush1.bf16.msra.mxu1 %v3440_v16  ;;  %v3491_v16 = vld [vmem:[#allocation14 + $0x58] sm:$0xff]  }
 0xa00   : > { %2177 = vmatprep.subr.bf16.mxu1 %v3448_v31  ;;  %v3501_v31 = vld [vmem:[#allocation14 + $0x28] sm:$0xff]  }
 0xa03   : > { %2178 = vmatpush1.bf16.msra.mxu1 %v3446_v33  ;;  %v3503_v33 = vld [vmem:[#allocation14 + $0x70] sm:$0xff]  }
 0xa04   : > { %2179 = vmatprep.subr.bf16.mxu1 %v3454_v36  ;;  %v3505_v36 = vld [vmem:[#allocation14 + $0x30] sm:$0xff]  }
 0xa07   : > { %2180 = vmatpush1.bf16.msra.mxu1 %v3452_v37  ;;  %v3507_v37 = vld [vmem:[#allocation14 + $0x78] sm:$0xff]  }
 0xa08   : > { %v3080_v4 = vpop.f32.mrb[28].mxu1  ;;  %2181 = vmatprep.subr.bf16.mxu1 %v3460_v38  ;;  %v3509_v38 = vld [vmem:[#allocation14 + $0x38] sm:$0xff]  }
 0xa09   : > { %v3081_v5 = vpop.f32.mrb[29].mxu1 }
 0xa0a   : > { %v3082_v7 = vadd.f32 %v3081_v5, %v3080_v4  ;;  %v3083_v8 = vpop.f32.mrb[30].mxu1 }
 0xa0b   : > { %v3084_v9 = vpop.f32.mrb[31].mxu1  ;;  %2182 = vmatpush1.bf16.msra.mxu1 %v3458_v40 }
 0xa0c   : > { %v4493_v11 = vadd.f32 %v3082_v7, %v1850_v6  ;;  %v3085_v13 = vadd.f32 %v3084_v9, %v3083_v8  ;;  %2183 = vmatprep.subr.bf16.mxu1 %v3466_v42  ;;  %v3479_v7 = vld [vmem:[#allocation14 + $0x40] sm:$0xff]  }
 0xa0d   : > { %v3480_v8 = vld [vmem:[#allocation14 + $0xc0] sm:$0xff]   ;;  %3086 = vmatprep.subr.bf16.mxu0 %v3479_v7 }
 0xa0e   : > { %v4495_v14 = vadd.f32 %v3085_v13, %v1853_v10  ;;  %1899 = vadd.xlane.f32.xlu0 %v4493_v11  ;;  %v3481_v9 = vld [vmem:[#allocation14] sm:$0xff]   ;;  %v3483_v13 = vld [vmem:[#allocation14 + $0x48] sm:$0xff]  }
 0xa0f   : > { %2184 = vmatpush1.bf16.msra.mxu1 %v3464_v43  ;;  %v3482_v10 = vld [vmem:[#allocation14 + $0x80] sm:$0xff]  }
 0xa10   : > { %1901 = vadd.xlane.f32.xlu1 %v4495_v14  ;;  %2185 = vmatprep.subr.bf16.mxu1 %v3472_v45 }
 0xa13   : > { %2186 = vmatpush1.bf16.msra.mxu1 %v3470_v47 }
 0xa14   : > { %2187 = vmatprep.subr.bf16.mxu1 %v3478_v52 }
 0xa17   : > { %2188 = vmatpush1.bf16.msra.mxu1 %v3476_v50 }
 0xa18   : > { %3108 = vmatprep.subr.bf16.mxu1 %v3480_v8 }
 0xa9b   : > { %v1900_v21 = vpop.xlane.xlu0 %1899 }
 0xa9c   : > { %v1903_v22 = vmul.f32 0.0078125, %v1900_v21  ;;  %v3492_v21 = vld [vmem:[#allocation14 + $0xd8] sm:$0xff]  }
 0xa9d   : > { %v1902_v23 = vpop.xlane.xlu1 %1901 }
 0xa9e   : > { %v4500_v24 = vsub.f32 %v4493_v11, %v1903_v22  ;;  %v1904_v25 = vmul.f32 0.0078125, %v1902_v23  ;;  %v3493_v22 = vld [vmem:[#allocation14 + $0x18] sm:$0xff]  }
 0xa9f   : > { %v3494_v23 = vld [vmem:[#allocation14 + $0x98] sm:$0xff]  }
 0xaa0   : > { %v4503_v26 = vsub.f32 %v4495_v14, %v1904_v25  ;;  %v1907_v27 = vmul.f32 %v4500_v24, %v4500_v24  ;;  %v3496_v25 = vld [vmem:[#allocation14 + $0xe0] sm:$0xff]  }
 0xaa2   : > { %1909 = vadd.xlane.f32.xlu0 %v1907_v27  ;;  %v1908_v28 = vmul.f32 %v4503_v26, %v4503_v26  ;;  %v3498_v27 = vld [vmem:[#allocation14 + $0xa0] sm:$0xff]  }
 0xaa4   : > { %1911 = vadd.xlane.f32.xlu1 %v1908_v28  ;;  %v3499_v28 = vld [vmem:[#allocation14 + $0x68] sm:$0xff]  }
 0xb2f   : > { %v1910_v53 = vpop.xlane.xlu0 %1909 }
 0xb30   : > { %v1913_v54 = vmul.f32 0.0078125, %v1910_v53 }
 0xb31   : > { %v1912_v55 = vpop.xlane.xlu1 %1911 }
 0xb32   : > { %v1915_v56 = vadd.f32 1e-05, %v1913_v54  ;;  %v1914_v57 = vmul.f32 0.0078125, %v1912_v55 }
 0xb34   : > { %3547 = vrsqrt.f32 %v1915_v56  ;;  %v1916_v58 = vadd.f32 1e-05, %v1914_v57 }
 0xb36   : > { %3549 = vrsqrt.f32 %v1916_v58 }
 0xb3e   : > { %v3548_v59 = vpop.eup %3547 }
 0xb3f   : > { %v1919_v61 = vmul.f32 %v3548_v59, %v4500_v24  ;;  %v3495_v24 = vld [vmem:[#allocation14 + $0x60] sm:$0xff]  }
 0xb40   : > { %v3550_v62 = vpop.eup %3549 }
 0xb41   : > { %v1920_v63 = vmul.f32 %v3550_v62, %v4503_v26  ;;  %v1927_v2 = vmul.f32 %v2942_v60, %v1919_v61  ;;  %v3497_v26 = vld [vmem:[#allocation14 + $0x20] sm:$0xff]  }
 0xb43   : > { %v1928_v1 = vmul.f32 %v2942_v60, %v1920_v63  ;;  %v1935_v4 = vadd.f32 %v2943_v3, %v1927_v2 }
 0xb45   : > { %v1936_v5 = vadd.f32 %v2943_v3, %v1928_v1 }
 0xb47   : > { %v1937_v6 = vpack.c.bf16 %v1936_v5, %v1935_v4 }
 0xb49   : > { %2163 = vmatmul.mubr.bf16.vlgmr.msra.gmra.mrb[20].mxu0 %v1937_v6  ;;  %2206 = vmatmul.mubr.bf16.vlgmr.msra.gmra.mrb[32].mxu1 %v1937_v6 }
 0xb4a   : > { %3087 = vmatpush3.bf16.msra.mxu0 %v3481_v9  ;;  %3109 = vmatpush3.bf16.msra.mxu1 %v3482_v10 }
 0xb4b   : > { %3088 = vmatprep.subr.bf16.mxu0 %v3483_v13  ;;  %3110 = vmatprep.subr.bf16.mxu1 %v3484_v51 }
 0xb4e   : > { %3089 = vmatpush3.bf16.msra.mxu0 %v3485_v15  ;;  %3111 = vmatpush3.bf16.msra.mxu1 %v3486_v17 }
 0xb4f   : > { %3090 = vmatprep.subr.bf16.mxu0 %v3487_v18  ;;  %3112 = vmatprep.subr.bf16.mxu1 %v3488_v19 }
 0xb52   : > { %3091 = vmatpush3.bf16.msra.mxu0 %v3489_v12  ;;  %3113 = vmatpush3.bf16.msra.mxu1 %v3490_v20 }
 0xb53   : > { %3092 = vmatprep.subr.bf16.mxu0 %v3491_v16  ;;  %3114 = vmatprep.subr.bf16.mxu1 %v3492_v21 }
 0xb56   : > { %3093 = vmatpush3.bf16.msra.mxu0 %v3493_v22  ;;  %3115 = vmatpush3.bf16.msra.mxu1 %v3494_v23 }
 0xb57   : > { %3094 = vmatprep.subr.bf16.mxu0 %v3495_v24  ;;  %3116 = vmatprep.subr.bf16.mxu1 %v3496_v25 }
 0xb5a   : > { %3095 = vmatpush3.bf16.msra.mxu0 %v3497_v26  ;;  %3117 = vmatpush3.bf16.msra.mxu1 %v3498_v27 }
 0xb5b   : > { %3096 = vmatprep.subr.bf16.mxu0 %v3499_v28  ;;  %3118 = vmatprep.subr.bf16.mxu1 %v3500_v29 }
 0xb5e   : > { %3097 = vmatpush3.bf16.msra.mxu0 %v3501_v31  ;;  %3119 = vmatpush3.bf16.msra.mxu1 %v3502_v32 }
 0xb5f   : > { %3098 = vmatprep.subr.bf16.mxu0 %v3503_v33  ;;  %3120 = vmatprep.subr.bf16.mxu1 %v3504_v34 }
 0xb62   : > { %3099 = vmatpush3.bf16.msra.mxu0 %v3505_v36  ;;  %3121 = vmatpush3.bf16.msra.mxu1 %v3506_v0 }
 0xb63   : > { %3100 = vmatprep.subr.bf16.mxu0 %v3507_v37  ;;  %3122 = vmatprep.subr.bf16.mxu1 %v3508_v30 }
 0xb66   : > { %3101 = vmatpush3.bf16.msra.mxu0 %v3509_v38  ;;  %3123 = vmatpush3.bf16.msra.mxu1 %v3510_v35 }
 0xc1c   : > { %v2164_v40 = vpop.f32.mrb[20].mxu0  ;;  %v2207_v39 = vpop.f32.mrb[32].mxu1 }
 0xc1d   : > { %v2224_v42 = vmul.f32 0.044715, %v2164_v40  ;;  %v2226_v41 = vmul.f32 0.044715, %v2207_v39  ;;  %v4517_v43 = vpop.f32.mrb[21].mxu0  ;;  %v4519_v44 = vpop.f32.mrb[33].mxu1 }
 0xc1e   : > { %v2225_v47 = vmul.f32 0.044715, %v4517_v43  ;;  %v2227_v48 = vmul.f32 0.044715, %v4519_v44  ;;  %v2168_v49 = vpop.f32.mrb[22].mxu0  ;;  %v2211_v50 = vpop.f32.mrb[34].mxu1 }
 0xc1f   : > { %v2232_v45 = vmul.f32 %v2224_v42, %v2164_v40  ;;  %v2234_v46 = vmul.f32 %v2226_v41, %v2207_v39  ;;  %v2228_v52 = vmul.f32 0.044715, %v2168_v49  ;;  %v2230_v53 = vmul.f32 0.044715, %v2211_v50  ;;  %v2170_v58 = vpop.f32.mrb[23].mxu0  ;;  %v2213_v59 = vpop.f32.mrb[35].mxu1 }
 0xc20   : > { %v2233_v56 = vmul.f32 %v2225_v47, %v4517_v43  ;;  %v2235_v57 = vmul.f32 %v2227_v48, %v4519_v44  ;;  %v2229_v62 = vmul.f32 0.044715, %v2170_v58  ;;  %v2231_v63 = vmul.f32 0.044715, %v2213_v59 }
 0xc21   : > { %v2240_v54 = vmul.f32 %v2232_v45, %v2164_v40  ;;  %v2242_v55 = vmul.f32 %v2234_v46, %v2207_v39  ;;  %v2236_v60 = vmul.f32 %v2228_v52, %v2168_v49  ;;  %v2238_v61 = vmul.f32 %v2230_v53, %v2211_v50 }
 0xc22   : > { %v2241_v1 = vmul.f32 %v2233_v56, %v4517_v43  ;;  %v2243_v4 = vmul.f32 %v2235_v57, %v4519_v44  ;;  %v2237_v7 = vmul.f32 %v2229_v62, %v2170_v58  ;;  %v2239_v8 = vmul.f32 %v2231_v63, %v2213_v59 }
 0xc23   : > { %v2248_v2 = vadd.f32 %v2240_v54, %v2164_v40  ;;  %v2250_v3 = vadd.f32 %v2242_v55, %v2207_v39  ;;  %v2244_v5 = vmul.f32 %v2236_v60, %v2168_v49  ;;  %v2246_v6 = vmul.f32 %v2238_v61, %v2211_v50 }
 0xc24   : > { %v2249_v13 = vadd.f32 %v2241_v1, %v4517_v43  ;;  %v2251_v51 = vadd.f32 %v2243_v4, %v4519_v44  ;;  %v2245_v18 = vmul.f32 %v2237_v7, %v2170_v58  ;;  %v2247_v19 = vmul.f32 %v2239_v8, %v2213_v59 }
 0xc25   : > { %v2256_v9 = vmul.f32 0.7978846, %v2248_v2  ;;  %v2258_v10 = vmul.f32 0.7978846, %v2250_v3  ;;  %v2252_v15 = vadd.f32 %v2244_v5, %v2168_v49  ;;  %v2254_v17 = vadd.f32 %v2246_v6, %v2211_v50 }
 0xc26   : > { %v2257_v12 = vmul.f32 0.7978846, %v2249_v13  ;;  %v2259_v20 = vmul.f32 0.7978846, %v2251_v51  ;;  %v2253_v22 = vadd.f32 %v2245_v18, %v2170_v58  ;;  %v2255_v23 = vadd.f32 %v2247_v19, %v2213_v59 }
 0xc27   : > { %3551 = vtanh.f32 %v2256_v9  ;;  %v2260_v16 = vmul.f32 0.7978846, %v2252_v15  ;;  %v2262_v21 = vmul.f32 0.7978846, %v2254_v17  ;;  %v2216_v33 = vmul.f32 0.5, %v2164_v40 }
 0xc28   : > { %3553 = vtanh.f32 %v2258_v10  ;;  %v2261_v24 = vmul.f32 0.7978846, %v2253_v22  ;;  %v2263_v25 = vmul.f32 0.7978846, %v2255_v23  ;;  %v2218_v34 = vmul.f32 0.5, %v2207_v39 }
 0xc29   : > { %3555 = vtanh.f32 %v2257_v12  ;;  %v2220_v37 = vmul.f32 0.5, %v2168_v49  ;;  %v2222_v30 = vmul.f32 0.5, %v2211_v50  ;;  %v2217_v41 = vmul.f32 0.5, %v4517_v43 }
 0xc2a   : > { %3557 = vtanh.f32 %v2259_v20  ;;  %v2221_v45 = vmul.f32 0.5, %v2170_v58  ;;  %v2219_v53 = vmul.f32 0.5, %v4519_v44  ;;  %v2223_v40 = vmul.f32 0.5, %v2213_v59 }
 0xc2b   : > { %3559 = vtanh.f32 %v2260_v16 }
 0xc2c   : > { %3561 = vtanh.f32 %v2262_v21 }
 0xc2d   : > { %3563 = vtanh.f32 %v2261_v24 }
 0xc2e   : > { %3565 = vtanh.f32 %v2263_v25 }
 0xc31   : > { %v3552_v26 = vpop.eup %3551 }
 0xc32   : > { %v3554_v27 = vpop.eup %3553  ;;  %v2272_v31 = vadd.f32 1.0, %v3552_v26 }
 0xc33   : > { %v3556_v28 = vpop.eup %3555  ;;  %v2274_v36 = vadd.f32 1.0, %v3554_v27 }
 0xc34   : > { %v3558_v29 = vpop.eup %3557  ;;  %v2273_v38 = vadd.f32 1.0, %v3556_v28  ;;  %v2280_v54 = vmul.f32 %v2272_v31, %v2216_v33 }
 0xc35   : > { %v3560_v32 = vpop.eup %3559  ;;  %v2275_v46 = vadd.f32 1.0, %v3558_v29  ;;  %v2282_v56 = vmul.f32 %v2274_v36, %v2218_v34 }
 0xc36   : > { %v3562_v0 = vpop.eup %3561  ;;  %v2276_v35 = vadd.f32 1.0, %v3560_v32  ;;  %v2281_v50 = vmul.f32 %v2273_v38, %v2217_v41 }
 0xc37   : > { %v3564_v42 = vpop.eup %3563  ;;  %v2278_v47 = vadd.f32 1.0, %v3562_v0  ;;  %v2283_v61 = vmul.f32 %v2275_v46, %v2219_v53 }
 0xc38   : > { %v3566_v48 = vpop.eup %3565  ;;  %v2277_v52 = vadd.f32 1.0, %v3564_v42  ;;  %v2284_v55 = vmul.f32 %v2276_v35, %v2220_v37 }
 0xc39   : > { %v2279_v39 = vadd.f32 1.0, %v3566_v48  ;;  %v2286_v49 = vmul.f32 %v2278_v47, %v2222_v30 }
 0xc3a   : > { %v2285_v57 = vmul.f32 %v2277_v52, %v2221_v45  ;;  %v2288_v60 = vpack.c.bf16 %v2284_v55, %v2280_v54 }
 0xc3b   : > { %v2287_v62 = vmul.f32 %v2279_v39, %v2223_v40  ;;  %v2290_v43 = vpack.c.bf16 %v2286_v49, %v2282_v56 }
 0xc3c   : > { %v2289_v58 = vpack.c.bf16 %v2285_v57, %v2281_v50 }
 0xc3d   : > { %v2291_v63 = vpack.c.bf16 %v2287_v62, %v2283_v61 }
 0xc3e   : > { %2580 = vmatprep.mubr.bf16.mxu0 %v2289_v58 }
 0xc3f   : > { %2621 = vmatprep.mubr.bf16.mxu1 %v2291_v63  ;;  %2581 = vmatmul.mubr.bf16.vlgmr.msra.gmra.mrb[24].mxu0 %v2288_v60 }
 0xc40   : > { %2622 = vmatmul.mubr.bf16.vlgmr.msra.gmra.mrb[36].mxu1 %v2290_v43 }
 0xd12   : > { %v3102_v44 = vpop.f32.mrb[24].mxu0 }
 0xd13   : > { %v3124_v59 = vpop.f32.mrb[36].mxu1  ;;  %v3103_v2 = vpop.f32.mrb[25].mxu0 }
 0xd14   : > { %v3104_v3 = vadd.f32 %v3103_v2, %v3102_v44  ;;  %v3125_v1 = vpop.f32.mrb[37].mxu1  ;;  %v3105_v4 = vpop.f32.mrb[26].mxu0 }
 0xd15   : > { %v3126_v5 = vadd.f32 %v3125_v1, %v3124_v59  ;;  %v3127_v6 = vpop.f32.mrb[38].mxu1  ;;  %v3106_v7 = vpop.f32.mrb[27].mxu0 }
 0xd16   : > { %v2583_v8 = vadd.f32 %v3104_v3, %v4493_v11  ;;  %v3107_v9 = vadd.f32 %v3106_v7, %v3105_v4  ;;  %v3128_v10 = vpop.f32.mrb[39].mxu1 }
 0xd17   : > { %v3129_v13 = vadd.f32 %v3128_v10, %v3127_v6 }
 0xd18   : > { %v2624_v51 = vadd.f32 %v3126_v5, %v2583_v8  ;;  %v2586_v15 = vadd.f32 %v3107_v9, %v4495_v14 }
 0xd1a   : > { %2630 = vst [vmem:[%s626_s6] sm:$0xff] %v2624_v51  ;;  %v2627_v17 = vadd.f32 %v3129_v13, %v2586_v15 }
 0xd1c   : > { %2631 = vst [vmem:[%s626_s6 + $0x8] sm:$0xff] %v2627_v17 }
 0xd1d   : > { %3810 = shalt.err (!%p3807_p10)
}
 0xd1e   : > { %s3811_s9 = scalar_lea.hbm %s4540_s20, 256  ;;  %s3815_s25 = scalar_lea.hbm %s4693_s14, 512 }
 0xd1f   : > { %p3812_p1 = scmp.ne.s32.totalorder %s4540_s20, %s3811_s9  ;;  %p3816_p2 = scmp.lt.u32.totalorder %s4540_s20, %s4693_s14 }
 0xd20   : > { %p3817_p6 = scmp.lt.u32.totalorder %s3815_s25, %s3811_s9  ;;  %p3819_p7 = scmp.lt.u32.totalorder %s3811_s9, %s4540_s20 }
 0xd21   : > { %p3813_p12 = pnand %p3812_p1, %p4694_p13 }
 0xd22   : > { %p3818_p4 = por %p3817_p6, %p3816_p2 }
 0xd23   : > { %p3814_p3 = pneg %p3813_p12 }
 0xd24   : > { %p3820_p9 = por %p3819_p7, %p3818_p4 }
 0xd26   : > { %p3821_p5 = pnand %p3820_p9, %p3814_p3 }
 0xd28   : > { %3824 = shalt.err (!%p3821_p5)
}
 0xd29   : > { %s3913_s27 = smov 128   ;;  %s3914_s3 = smov 8  }
 0xd2a   : > { %3224 = dma.vmem_to_hbm [thread:$0]  (%p4694_p13), %s4534_s30, 256, %s4540_s20, %s2633_s18, %s3913_s27, %s3913_s27, %s3914_s3  }
 0xd2b PF: > { %s4695_s22 = sld [smem:[#allocation23_spill]]  ;;  %s4696_s5 = sld [smem:[#allocation32_spill]] }
 0xd2c   : > { %s4697_s6 = sld [smem:[#allocation26_spill]] }
 0xd31   : > { %s2663_s10 = sand.u32 1, %s4695_s22   ;;  %p4698_p8 = scmp.ne.s32.totalorder %s4696_s5, 0 }
 0xd32   : > { %p4699_p11 = scmp.ge.s32.totalorder %s4697_s6, 2  ;;  %s2664_s19 = scalar_lea.sflag [#allocation4], %s2663_s10 }
 0xd34   : > { %p3253_p0 = pnand %p4699_p11, %p4698_p8 }
 0xd36   : > { %3870 = dma.done.wait (!%p3253_p0), %s2664_s19, 256  }
 0xd37   : > { %3872 = vsyncadd (!%p3253_p0), %s2664_s19, 4294967040  ;;  %s35_s30 = sadd.s32 1, %s4697_s6   ;;  %s4700_s23 = sld [smem:[#allocation24_spill]] }
 0xd38   : > { %p32_p10 = scmp.ge.s32.totalorder %s35_s30, 4   ;;  %s4701_s27 = sld [smem:[#allocation31_spill]] }
 0xd39   : > { %s4702_s15 = sld [smem:[#allocation28_spill]]  ;;  %s4703_s25 = smov %s3879_s26 }
 0xd3a   : > { %s4705_s28 = smov %s3891_s29  ;;  %34 = sbr.rel (!%p32_p10) target bundleno = 21 (0x15), region = 161 }
 0xd3d   : > { %s4704_s26 = smov %s4700_s23 }
 0xd3f   : > { %s4706_s29 = smov %s4702_s15 }
 0xd41   :  { %2669 = vsyncpa [#allocation3], 1 }
 0xd42   :  { %2671 = vsyncpa [#allocation3 + $0x1], 1 }
 0xd43   :  { %2672 = vsyncpa [#allocation6], 1 }
 0xd44   :  { %2674 = vsyncpa [#allocation6 + $0x1], 1 }
 0xd45   :  { %2675 = vsyncpa [#allocation9], 1 }
 0xd46   :  { %2676 = vsyncpa [#allocation12], 1 }
 0xd47   :  { %2677 = vsyncpa [#allocation15], 1 }
 0xd48   :  { %2678 = vsyncpa [#allocation4], 1 }
 0xd49   :  { %2680 = vsyncpa [#allocation4 + $0x1], 1 }

// kernel: tpu_custom_call.1
= control target key start
LH: loop header
LB: loop body
LE: loop exit
PB: predicated region body
PF: predicated region fallthrough
CT: control target
= control target key end

     0   :  { %s4589_s0 = inlined_call_operand.hbm [shape: bf16[2,16,128], index: 0, kind: input, shape index: {}]   ;;  %s4590_s1 = inlined_call_operand.hbm [shape: bf16[2,16,512], index: 1, kind: input, shape index: {}]   ;;  %s4591_s2 = inlined_call_operand.hbm [shape: bf16[2,16,512], index: 2, kind: input, shape index: {}]   ;;  %s4592_s3 = inlined_call_operand.hbm [shape: bf16[128,128], index: 3, kind: input, shape index: {}]   ;;  %s4593_s4 = inlined_call_operand.vmem [shape: f32[1,128], index: 4, kind: input, shape index: {}]   ;;  %s4594_s5 = inlined_call_operand.vmem [shape: f32[1,128], index: 5, kind: input, shape index: {}]   ;;  %s4595_s6 = inlined_call_operand.vmem [shape: f32[1,128], index: 6, kind: input, shape index: {}]   ;;  %s4596_s7 = inlined_call_operand.hbm [shape: bf16[128,512], index: 7, kind: input, shape index: {}]   ;;  %s4597_s8 = inlined_call_operand.hbm [shape: bf16[512,128], index: 8, kind: input, shape index: {}]   ;;  %s4598_s9 = inlined_call_operand.vmem [shape: f32[1,128], index: 9, kind: input, shape index: {}]   ;;  %s4599_s10 = inlined_call_operand.vmem [shape: f32[1,128], index: 10, kind: input, shape index: {}]   ;;  %s4600_s11 = inlined_call_operand.hbm [shape: bf16[128,512], index: 11, kind: input, shape index: {}]   ;;  %s4601_s12 = inlined_call_operand.hbm [shape: bf16[512,128], index: 12, kind: input, shape index: {}]   ;;  %s4602_s13 = inlined_call_operand.hbm [shape: f32[2,16,128], index: 13, kind: output, shape index: {}]  }
   0x1   :  { %4636 = sst [smem:[#allocation33_spill]] %s4590_s1 }
   0x2   :  { %4637 = sst [smem:[#allocation34_spill]] %s4592_s3 }
   0x3   :  { %4638 = sst [smem:[#allocation35_spill]] %s4593_s4 }
   0x4   :  { %4639 = sst [smem:[#allocation36_spill]] %s4594_s5 }
   0x5   :  { %4640 = sst [smem:[#allocation37_spill]] %s4595_s6 }
   0x6   :  { %4641 = sst [smem:[#allocation38_spill]] %s4597_s8 }
   0x7   :  { %4642 = sst [smem:[#allocation39_spill]] %s4598_s9 }
   0x8   :  { %4643 = sst [smem:[#allocation40_spill]] %s4599_s10 }
   0x9   :  { %4644 = sst [smem:[#allocation41_spill]] %s4602_s13 }
   0xa   :  { %18 = vsyncpa [#allocation3], 0 }
   0xb   :  { %20 = vsyncpa [#allocation3 + $0x1], 0 }
   0xc   :  { %21 = vsyncpa [#allocation6], 0 }
   0xd   :  { %23 = vsyncpa [#allocation6 + $0x1], 0 }
   0xe   :  { %24 = vsyncpa [#allocation9], 0 }
   0xf   :  { %25 = vsyncpa [#allocation12], 0 }
  0x10   :  { %26 = vsyncpa [#allocation15], 0 }
  0x11   :  { %27 = vsyncpa [#allocation4], 0 }
  0x12   :  { %29 = vsyncpa [#allocation4 + $0x1], 0  ;;  %s3985_s25 = smov 0   ;;  %s3987_s26 = smov 0  }
  0x13   :  { %s3989_s27 = smov 0   ;;  %s3991_s28 = smov 0  }
  0x14   :  { %s3993_s29 = smov 0   ;;  %s3995_s30 = smov 0  }
  0x15 LB: > { %4645 = sst [smem:[#allocation23_spill]] %s3875_s25  ;;  %s4016_s14 = sadd.s32 4294967295, %s3895_s30   ;;  %s3895_s30 = sphi %s3995_s30, %s35_s30   ;;  %s3891_s29 = sphi %s3993_s29, %s4706_s29   ;;  %s3887_s28 = sphi %s3991_s28, %s4705_s28   ;;  %s3883_s27 = sphi %s3989_s27, %s4701_s27   ;;  %s3879_s26 = sphi %s3987_s26, %s4704_s26   ;;  %s3875_s25 = sphi %s3985_s25, %s4703_s25  }
  0x16   : > { %4646 = sst [smem:[#allocation24_spill]] %s3883_s27  ;;  %p2828_p0 = scmp.ge.s32.totalorder %s3895_s30, 1 }
  0x17   : > { %4647 = sst [smem:[#allocation25_spill]] %s3887_s28  ;;  %p4613_p1 = scmp.eq.s32.totalorder %s4016_s14, 0 }
  0x18   : > { %4648 = sst [smem:[#allocation26_spill]] %s3895_s30  ;;  %p370_p3 = scmp.lt.s32.totalorder %s3895_s30, 3 }
  0x19   : > { %4649 = sst [smem:[#allocation27_spill]] %s4016_s14  ;;  %s3897_s16 = smov [#allocation8]  }
  0x1a   : > { %p4022_p4 = pnand %p2828_p0, %p370_p3  ;;  %s382_s17 = sshll.u32 %s3897_s16, 4  ;;  %s4026_s17 = int_to_ptr.vmem [resolvable:$true] %s382_s17 }
  0x1b   : > { %s3898_s19 = smov [#allocation11]   ;;  %s4652_s3 = sld [smem:[#allocation34_spill]] }
  0x1c   : > { %s4650_s15 = scalar_select %p4022_p4, 1, 0 }
  0x1d   : > { %p3226_p5 = pneg %p4022_p4  ;;  %s417_s20 = sshll.u32 %s3898_s19, 4  ;;  %s4037_s20 = int_to_ptr.vmem [resolvable:$true] %s417_s20 }
  0x1f   : > { %p4033_p7 = pnand %p3226_p5, %p4613_p1 }
  0x21   : > { %s4651_s18 = scalar_select %p4033_p7, 1, 0 }
  0x22   : > { %s3567_s23 = scalar_lea.hbm %s4652_s3, 1024  ;;  %p4047_p9 = pneg %p4033_p7 }
  0x23   : > { %p3568_p8 = scmp.ne.s32.totalorder %s4652_s3, %s3567_s23  ;;  %p3574_p12 = scmp.lt.u32.totalorder %s3567_s23, %s4652_s3 }
  0x24   : > { %s4653_s13 = scalar_select %p4047_p9, 1, 0 }
  0x25   : > { %p3570_p10 = pnand %p4047_p9, %p3568_p8 }
  0x27   : > { %p3571_p11 = pneg %p3570_p10 }
  0x29   : > { %p3576_p13 = pnand %p3574_p12, %p3571_p11 }
  0x2b   : > { %3579 = shalt.err (!%p3576_p13)
}
  0x2c   : > { %s3580_s21 = scalar_lea.vmem %s4026_s17, 1024  ;;  %p3588_p6 = scmp.lt.s32.totalorder %s4026_s17, %s4026_s17 }
  0x2d   : > { %p3581_p0 = scmp.ne.s32.totalorder %s4026_s17, %s3580_s21  ;;  %p3589_p2 = scmp.lt.s32.totalorder %s3580_s21, %s3580_s21 }
  0x2f   : > { %p3583_p3 = pnand %p3581_p0, %p4047_p9  ;;  %p3590_p8 = por %p3589_p2, %p3588_p6 }
  0x31   : > { %p3584_p5 = pneg %p3583_p3 }
  0x33   : > { %p3591_p10 = pnand %p3590_p8, %p3584_p5 }
  0x35   : > { %3594 = shalt.err (!%p3591_p10)
}
  0x36   : > { %s4605_s22 = smov 64   ;;  %s4607_s28 = smov 4  }
  0x37   : > { %3229 = dma.hbm_to_vmem [thread:$0]  (!%p4033_p7), %s4652_s3, 1024, %s4026_s17, [#allocation9], %s4605_s22, %s4605_s22, %s4607_s28  }
  0x38   : > { %s4654_s8 = sld [smem:[#allocation38_spill]] }
  0x3e   : > { %s3595_s21 = scalar_lea.hbm %s4654_s8, 4096 }
  0x3f   : > { %p3596_p2 = scmp.ne.s32.totalorder %s4654_s8, %s3595_s21  ;;  %p3602_p12 = scmp.lt.u32.totalorder %s3595_s21, %s4654_s8 }
  0x41   : > { %p3598_p6 = pnand %p3596_p2, %p4047_p9 }
  0x43   : > { %p3599_p11 = pneg %p3598_p6 }
  0x45   : > { %p3604_p13 = pnand %p3602_p12, %p3599_p11 }
  0x47   : > { %3607 = shalt.err (!%p3604_p13)
}
  0x48   : > { %s3608_s17 = scalar_lea.vmem %s4037_s20, 4096  ;;  %p3616_p8 = scmp.lt.s32.totalorder %s4037_s20, %s4037_s20 }
  0x49   : > { %p3609_p0 = scmp.ne.s32.totalorder %s4037_s20, %s3608_s17  ;;  %p3617_p10 = scmp.lt.s32.totalorder %s3608_s17, %s3608_s17 }
  0x4b   : > { %p3611_p3 = pnand %p3609_p0, %p4047_p9  ;;  %p3618_p2 = por %p3617_p10, %p3616_p8 }
  0x4d   : > { %p3612_p5 = pneg %p3611_p3 }
  0x4f   : > { %p3619_p6 = pnand %p3618_p2, %p3612_p5 }
  0x51   : > { %3622 = shalt.err (!%p3619_p6)
}
  0x52   : > { %3235 = dma.hbm_to_vmem [thread:$0]  (!%p4033_p7), %s4654_s8, 4096, %s4037_s20, [#allocation12], %s4605_s22, %s4605_s22, %s4607_s28  }
  0x53   : > { %s2827_s9 = sadd.s32 4294967294, %s3895_s30   ;;  %s47_s10 = sadd.s32 1, %s3891_s29 }
  0x54   : > { %s56_s23 = sadd.s32 1, %s3883_s27  ;;  %p49_p11 = scmp.ge.s32.totalorder %s47_s10, 2 }
  0x55   : > { %p63_p12 = scmp.ne.s32.totalorder %s3883_s27, %s3879_s26  ;;  %p64_p13 = scmp.eq.s32.totalorder %s3895_s30, 0 }
  0x56   : > { %p69_p0 = scmp.ne.s32.totalorder %s3879_s26, %s3875_s25  ;;  %s4708_s10 = smov (%p49_p11, %s47_s10), 0 }
  0x57   : > { %4655 = sst [smem:[#allocation28_spill]] %s4708_s10  ;;  %p65_p3 = por %p64_p13, %p63_p12 }
  0x58   : > { %p4109_p5 = por %p4613_p1, %p69_p0  ;;  %s51_s20 = ssub.s32 %s3891_s29, %s4708_s10 }
  0x59   : > { %p4658_p8 = scmp.eq.s32.totalorder %s4016_s14, 1  ;;  %p54_p2 = scmp.eq.s32.totalorder %s51_s20, 0 }
  0x5a   : > { %s4656_s24 = scalar_select %p4109_p5, 1, 0 }
  0x5b   : > { %p4117_p10 = por %p4658_p8, %p63_p12  ;;  %p363_p6 = scmp.eq.s32.totalorder %s2827_s9, 1 }
  0x5c   : > { %4657 = sst [smem:[#allocation29_spill]] %s4656_s24  ;;  %p3261_p11 = scmp.lt.s32.totalorder %s3895_s30, 2 }
  0x5d   : > { %s4659_s16 = scalar_select %p4117_p10, 1, 0 }
  0x5e   : > { %s4122_s19 = scalar_select %p54_p2, %s3883_s27, %s56_s23  }
  0x5f   : > { %4660 = sst [smem:[#allocation30_spill]] %s4659_s16  ;;  %p4124_p4 = por %p363_p6, %p69_p0 }
  0x60   : > { %4661 = sst [smem:[#allocation31_spill]] %s4122_s19  ;;  %s4130_s17 = sand.u32 1, %s3883_s27  }
  0x61   : > { %s4662_s21 = scalar_select %p4124_p4, 1, 0 }
  0x62   : > { %s486_s5 = sand.u32 1, %s3895_s30   ;;  %p4133_p13 = pnand %p3261_p11, %p65_p3 }
  0x63   : > { %4663 = sst [smem:[#allocation32_spill]] %s4662_s21  ;;  %s4611_s22 = sshll.u32 %s4130_s17, 5 }
  0x64   : > { %s4664_s6 = scalar_select %p4133_p13, 1, 0 }
  0x65   : > { %s4612_s20 = sshll.u32 %s3891_s29, 9  ;;  %s4665_s1 = sld [smem:[#allocation33_spill]] }
  0x66   : > { %s490_s3 = scalar_lea.vmem [#allocation5], %s4611_s22  ;;  %s4150_s10 = scalar_lea.sflag [#allocation6], %s486_s5 }
  0x67   : > { %s497_s8 = sshll.u32 %s490_s3, 4  ;;  %p4156_p0 = pneg %p4133_p13  ;;  %s4148_s8 = int_to_ptr.vmem [resolvable:$true] %s497_s8 }
  0x69   : > { %s4666_s27 = scalar_select %p4156_p0, 1, 0 }
  0x6b   : > { %s4144_s28 = scalar_lea.hbm %s4665_s1, %s4612_s20  ;;  %s3628_s22 = scalar_lea.hbm %s4665_s1, 1024 }
  0x6c   : > { %s3623_s19 = scalar_lea.hbm %s4144_s28, 512  ;;  %p3629_p2 = scmp.lt.u32.totalorder %s4144_s28, %s4665_s1 }
  0x6d   : > { %p3624_p12 = scmp.ne.s32.totalorder %s4144_s28, %s3623_s19  ;;  %p3630_p6 = scmp.lt.u32.totalorder %s3628_s22, %s3623_s19 }
  0x6e   : > { %p3632_p1 = scmp.lt.u32.totalorder %s3623_s19, %s4144_s28 }
  0x6f   : > { %p3626_p3 = pnand %p4156_p0, %p3624_p12  ;;  %p3631_p11 = por %p3630_p6, %p3629_p2 }
  0x71   : > { %p3627_p8 = pneg %p3626_p3  ;;  %p3633_p4 = por %p3632_p1, %p3631_p11 }
  0x73   : > { %p3634_p10 = pnand %p3633_p4, %p3627_p8 }
  0x75   : > { %3637 = shalt.err (!%p3634_p10)
}
  0x76   : > { %s3638_s5 = scalar_lea.vmem %s4148_s8, 512  ;;  %s3901_s9 = smov [#allocation5]  }
  0x77   : > { %p3639_p12 = scmp.ne.s32.totalorder %s4148_s8, %s3638_s5  ;;  %s3643_s23 = sshll.u32 %s3901_s9, 4  ;;  %s3644_s23 = int_to_ptr.vmem [resolvable:$false] %s3643_s23 }
  0x78   : > { %s3645_s20 = scalar_lea.vmem %s3644_s23, 1024  ;;  %p3646_p7 = scmp.lt.s32.totalorder %s4148_s8, %s3644_s23 }
  0x79   : > { %p3641_p3 = pnand %p3639_p12, %p4156_p0  ;;  %p3647_p9 = scmp.lt.s32.totalorder %s3645_s20, %s3638_s5 }
  0x7b   : > { %p3642_p5 = pneg %p3641_p3  ;;  %p3648_p2 = por %p3647_p9, %p3646_p7 }
  0x7d   : > { %p3649_p6 = pnand %p3648_p2, %p3642_p5 }
  0x7f   : > { %3652 = shalt.err (!%p3649_p6)
}
  0x80   : > { %s4630_s22 = smov 256   ;;  %s3903_s19 = smov 16  }
  0x81   : > { %3248 = dma.hbm_to_vmem [thread:$0]  (!%p4133_p13), %s4144_s28, 512, %s4148_s8, %s4150_s10, %s4630_s22, %s4630_s22, %s3903_s19  }
  0x82   : > { %s4667_s3 = sshll.u32 %s3891_s29, 9  ;;  %s4668_s20 = sshll.u32 %s4130_s17, 5 }
  0x83   : > { %s4188_s23 = scalar_lea.hbm %s4591_s2, %s4667_s3  ;;  %s511_s1 = scalar_lea.vmem [#allocation7], %s4668_s20 }
  0x84   : > { %s518_s30 = sshll.u32 %s511_s1, 4  ;;  %s3904_s21 = smov [#allocation10]   ;;  %s4192_s30 = int_to_ptr.vmem [resolvable:$true] %s518_s30 }
  0x85   : > { %s404_s25 = sshll.u32 %s3904_s21, 4  ;;  %s3905_s16 = smov [#allocation13]   ;;  %s405_s25 = int_to_ptr.vmem [resolvable:$true] %s404_s25 }
  0x86   : > { %s436_s4 = sshll.u32 %s3905_s16, 4  ;;  %s3653_s8 = scalar_lea.hbm %s4596_s7, 4096  ;;  %s437_s4 = int_to_ptr.vmem [resolvable:$true] %s436_s4 }
  0x87   : > { %p3654_p1 = scmp.ne.s32.totalorder %s4596_s7, %s3653_s8  ;;  %p4669_p4 = scmp.ne.s32.totalorder %s4653_s13, 0 }
  0x88   : > { %p3660_p5 = scmp.lt.u32.totalorder %s3653_s8, %s4596_s7 }
  0x89   : > { %p3656_p7 = pnand %p3654_p1, %p4669_p4 }
  0x8b   : > { %p3657_p9 = pneg %p3656_p7 }
  0x8d   : > { %p3662_p10 = pnand %p3660_p5, %p3657_p9 }
  0x8f   : > { %3665 = shalt.err (!%p3662_p10)
}
  0x90   : > { %s3666_s21 = scalar_lea.vmem %s405_s25, 4096  ;;  %p3674_p3 = scmp.lt.s32.totalorder %s405_s25, %s405_s25 }
  0x91   : > { %p3667_p8 = scmp.ne.s32.totalorder %s405_s25, %s3666_s21  ;;  %p3675_p2 = scmp.lt.s32.totalorder %s3666_s21, %s3666_s21 }
  0x93   : > { %p3669_p11 = pnand %p3667_p8, %p4669_p4  ;;  %p3676_p6 = por %p3675_p2, %p3674_p3 }
  0x95   : > { %p3670_p12 = pneg %p3669_p11 }
  0x97   : > { %p3677_p13 = pnand %p3676_p6, %p3670_p12 }
  0x99   : > { %3680 = shalt.err (!%p3677_p13)
}
  0x9a   : > { %p4670_p1 = scmp.ne.s32.totalorder %s4651_s18, 0  ;;  %s4671_s14 = smov 256  }
  0x9b   : > { %s3681_s5 = scalar_lea.hbm %s4600_s11, 4096 }
  0x9c   : > { %3232 = dma.hbm_to_vmem [thread:$0]  (!%p4670_p1), %s4596_s7, 4096, %s405_s25, [#allocation9], %s4671_s14, %s4671_s14, %s3903_s19  }
  0x9d   : > { %p3682_p7 = scmp.ne.s32.totalorder %s4600_s11, %s3681_s5  ;;  %p3688_p5 = scmp.lt.u32.totalorder %s3681_s5, %s4600_s11 }
  0x9f   : > { %p3684_p13 = pnand %p3682_p7, %p4669_p4 }
  0xa1   : > { %p3685_p9 = pneg %p3684_p13 }
  0xa3   : > { %p3690_p10 = pnand %p3688_p5, %p3685_p9 }
  0xa5   : > { %3693 = shalt.err (!%p3690_p10)
}
  0xa6   : > { %s3694_s1 = scalar_lea.vmem %s437_s4, 4096  ;;  %p3702_p3 = scmp.lt.s32.totalorder %s437_s4, %s437_s4 }
  0xa7   : > { %p3695_p8 = scmp.ne.s32.totalorder %s437_s4, %s3694_s1  ;;  %p3703_p2 = scmp.lt.s32.totalorder %s3694_s1, %s3694_s1 }
  0xa9   : > { %p3697_p11 = pnand %p3695_p8, %p4669_p4  ;;  %p3704_p6 = por %p3703_p2, %p3702_p3 }
  0xab   : > { %p3698_p12 = pneg %p3697_p11 }
  0xad   : > { %p3705_p0 = pnand %p3704_p6, %p3698_p12 }
  0xaf   : > { %3708 = shalt.err (!%p3705_p0)
}
  0xb0   : > { %3238 = dma.hbm_to_vmem [thread:$0]  (!%p4670_p1), %s4600_s11, 4096, %s437_s4, [#allocation12], %s4671_s14, %s4671_s14, %s3903_s19  }
  0xb1   : > { %s3906_s24 = smov [#allocation14]   ;;  %s2835_s22 = sshll.u32 %s4130_s17, 3 }
  0xb2   : > { %s449_s16 = sshll.u32 %s3906_s24, 4  ;;  %s3709_s20 = scalar_lea.hbm %s4601_s12, 4096  ;;  %s450_s16 = int_to_ptr.vmem [resolvable:$true] %s449_s16 }
  0xb3   : > { %p3710_p0 = scmp.ne.s32.totalorder %s4601_s12, %s3709_s20  ;;  %p3716_p9 = scmp.lt.u32.totalorder %s3709_s20, %s4601_s12 }
  0xb5   : > { %p3712_p7 = pnand %p3710_p0, %p4669_p4 }
  0xb7   : > { %p3713_p13 = pneg %p3712_p7 }
  0xb9   : > { %p3718_p5 = pnand %p3716_p9, %p3713_p13 }
  0xbb   : > { %3721 = shalt.err (!%p3718_p5)
}
  0xbc   : > { %s3722_s4 = scalar_lea.vmem %s450_s16, 4096  ;;  %p3730_p12 = scmp.lt.s32.totalorder %s450_s16, %s450_s16 }
  0xbd   : > { %p3723_p10 = scmp.ne.s32.totalorder %s450_s16, %s3722_s4  ;;  %p3731_p3 = scmp.lt.s32.totalorder %s3722_s4, %s3722_s4 }
  0xbf   : > { %p3725_p8 = pnand %p3723_p10, %p4669_p4  ;;  %p3732_p2 = por %p3731_p3, %p3730_p12 }
  0xc1   : > { %p3726_p11 = pneg %p3725_p8 }
  0xc3   : > { %p3733_p6 = pnand %p3732_p2, %p3726_p11 }
  0xc5   : > { %3736 = shalt.err (!%p3733_p6)
}
  0xc6   : > { %s4672_s25 = smov 4   ;;  %s4673_s21 = smov 64  }
  0xc7   : > { %3241 = dma.hbm_to_vmem [thread:$0]  (!%p4670_p1), %s4601_s12, 4096, %s450_s16, [#allocation15], %s4673_s21, %s4673_s21, %s4672_s25  }
  0xc8   : > { %s3013_s13 = sshll.u32 %s3891_s29, 7  ;;  %s467_s18 = scalar_lea.vmem [#allocation2], %s2835_s22 }
  0xc9   : > { %s4262_s8 = scalar_lea.hbm %s4589_s0, %s3013_s13  ;;  %s476_s28 = sshll.u32 %s467_s18, 4  ;;  %s4264_s28 = int_to_ptr.vmem [resolvable:$true] %s476_s28 }
  0xca   : > { %s464_s3 = scalar_lea.sflag [#allocation3], %s4130_s17  ;;  %s3737_s1 = scalar_lea.hbm %s4262_s8, 128 }
  0xcb   : > { %p3738_p4 = scmp.ne.s32.totalorder %s4262_s8, %s3737_s1  ;;  %p4674_p0 = scmp.ne.s32.totalorder %s4666_s27, 0 }
  0xcc   : > { %s3742_s24 = scalar_lea.hbm %s4589_s0, 256  ;;  %p3743_p13 = scmp.lt.u32.totalorder %s4262_s8, %s4589_s0 }
  0xcd   : > { %p3740_p7 = pnand %p3738_p4, %p4674_p0  ;;  %p3744_p9 = scmp.lt.u32.totalorder %s3742_s24, %s3737_s1 }
  0xce   : > { %p3746_p10 = scmp.lt.u32.totalorder %s3737_s1, %s4262_s8 }
  0xcf   : > { %p3741_p1 = pneg %p3740_p7  ;;  %p3745_p5 = por %p3744_p9, %p3743_p13 }
  0xd1   : > { %p3747_p8 = por %p3746_p10, %p3745_p5 }
  0xd3   : > { %p3748_p11 = pnand %p3747_p8, %p3741_p1 }
  0xd5   : > { %3751 = shalt.err (!%p3748_p11)
}
  0xd6   : > { %s3752_s22 = scalar_lea.vmem %s4264_s28, 128  ;;  %s3907_s5 = smov [#allocation2]  }
  0xd7   : > { %p3753_p12 = scmp.ne.s32.totalorder %s4264_s28, %s3752_s22  ;;  %s3757_s20 = sshll.u32 %s3907_s5, 4  ;;  %s3758_s20 = int_to_ptr.vmem [resolvable:$false] %s3757_s20 }
  0xd8   : > { %s3759_s18 = scalar_lea.vmem %s3758_s20, 256  ;;  %p3760_p6 = scmp.lt.s32.totalorder %s4264_s28, %s3758_s20 }
  0xd9   : > { %p3755_p3 = pnand %p3753_p12, %p4674_p0  ;;  %p3761_p4 = scmp.lt.s32.totalorder %s3759_s18, %s3752_s22 }
  0xdb   : > { %p3756_p2 = pneg %p3755_p3  ;;  %p3762_p7 = por %p3761_p4, %p3760_p6 }
  0xdd   : > { %p3763_p13 = pnand %p3762_p7, %p3756_p2 }
  0xdf   : > { %3766 = shalt.err (!%p3763_p13)
}
  0xe0   : > { %p4675_p1 = scmp.ne.s32.totalorder %s4664_s6, 0  ;;  %s3767_s1 = scalar_lea.hbm %s4188_s23, 512 }
  0xe1   : > { %p3768_p9 = scmp.ne.s32.totalorder %s4188_s23, %s3767_s1  ;;  %s3772_s24 = scalar_lea.hbm %s4591_s2, 1024 }
  0xe2   : > { %3245 = dma.hbm_to_vmem [thread:$0]  (!%p4675_p1), %s4262_s8, 128, %s4264_s28, %s464_s3, %s4673_s21, %s4673_s21, %s4672_s25  }
  0xe3   : > { %p3770_p5 = pnand %p3768_p9, %p4674_p0  ;;  %p3773_p8 = scmp.lt.u32.totalorder %s4188_s23, %s4591_s2 }
  0xe4   : > { %p3774_p11 = scmp.lt.u32.totalorder %s3772_s24, %s3767_s1  ;;  %p3776_p3 = scmp.lt.u32.totalorder %s3767_s1, %s4188_s23 }
  0xe5   : > { %p3771_p10 = pneg %p3770_p5 }
  0xe6   : > { %p3775_p12 = por %p3774_p11, %p3773_p8 }
  0xe8   : > { %p3777_p2 = por %p3776_p3, %p3775_p12 }
  0xea   : > { %p3778_p6 = pnand %p3777_p2, %p3771_p10 }
  0xec   : > { %3781 = shalt.err (!%p3778_p6)
}
  0xed   : > { %s3782_s17 = scalar_lea.vmem %s4192_s30, 512  ;;  %s3908_s25 = smov [#allocation7]  }
  0xee   : > { %p3783_p4 = scmp.ne.s32.totalorder %s4192_s30, %s3782_s17  ;;  %s3787_s21 = sshll.u32 %s3908_s25, 4  ;;  %s3788_s21 = int_to_ptr.vmem [resolvable:$false] %s3787_s21 }
  0xef   : > { %s3789_s8 = scalar_lea.vmem %s3788_s21, 1024  ;;  %p3790_p9 = scmp.lt.s32.totalorder %s4192_s30, %s3788_s21 }
  0xf0   : > { %p3785_p7 = pnand %p3783_p4, %p4674_p0  ;;  %p3791_p5 = scmp.lt.s32.totalorder %s3789_s8, %s3782_s17 }
  0xf2   : > { %p3786_p13 = pneg %p3785_p7  ;;  %p3792_p8 = por %p3791_p5, %p3790_p9 }
  0xf4   : > { %p3793_p11 = pnand %p3792_p8, %p3786_p13 }
  0xf6   : > { %3796 = shalt.err (!%p3793_p11)
}
  0xf7   : > { %3251 = dma.hbm_to_vmem [thread:$0]  (!%p4675_p1), %s4188_s23, 512, %s4192_s30, %s4150_s10, %s4671_s14, %s4671_s14, %s3903_s19  }
  0xf8   : > { %p4676_p0 = scmp.ne.s32.totalorder %s4650_s15, 0 }
  0xf9   : > { %s4677_s27 = sld [smem:[#allocation29_spill]] (!%p4676_p0)  ;;  %s4321_s28 = sand.u32 (!%p4676_p0), 1, %s3879_s26  }
  0xfa   : > { %530 = sbr.rel (%p4676_p0) target bundleno = 3371 (0xd2b), region = 72  ;;  %s2845_s3 = sshll.u32 (!%p4676_p0), %s4321_s28, 3 }
  0xfb   : > { %s533_s22 = scalar_lea.sflag (!%p4676_p0), [#allocation3], %s4321_s28  ;;  %s4325_s5 = scalar_lea.vmem (!%p4676_p0), [#allocation2], %s2845_s3 }
  0xff   : > { %p4678_p10 = scmp.ne.s32.totalorder (!%p4676_p0), %s4677_s27, 0 }
 0x101   : > { %3850 = dma.done.wait (%p4678_p10), %s533_s22, 128  }
 0x102   : > { %3852 = vsyncadd (%p4678_p10), %s533_s22, 4294967168  ;;  %s4679_s6 = sld [smem:[#allocation27_spill]]  ;;  %s2846_s15 = sshll.u32 %s4321_s28, 5 }
 0x103   : > { %s4333_s19 = scalar_lea.vmem [#allocation5], %s2846_s15 }
 0x108   : > { %s541_s30 = sand.u32 1, %s4679_s6  }
 0x109   : > { %s542_s10 = scalar_lea.sflag [#allocation6], %s541_s30 }
 0x10a   : > { %3854 = dma.done.wait (%p4678_p10), %s542_s10, 1024  }
 0x10b   : > { %3856 = vsyncadd (%p4678_p10), %s542_s10, 4294966272  ;;  %s4339_s23 = scalar_lea.vmem [#allocation7], %s2846_s15  ;;  %p4680_p1 = scmp.eq.s32.totalorder %s4679_s6, 0 }
 0x10d   : > { %3858 = dma.done.wait (%p4680_p1), [#allocation9], 5120   ;;  %p4681_p12 = pmov %p4680_p1 }
 0x10e   : > { %p4682_p3 = pmov %p4680_p1 }
 0x10f   : > { %3860 = vsyncadd (%p4681_p12), [#allocation9], 4294962176 }
 0x110   : > { %3862 = dma.done.wait (%p4682_p3), [#allocation12], 8192   ;;  %p4683_p2 = pmov %p4680_p1 }
 0x111   : > { %p4684_p6 = pmov %p4680_p1 }
 0x112   : > { %3864 = vsyncadd (%p4683_p2), [#allocation12], 4294959104 }
 0x113   : > { %3866 = dma.done.wait (%p4684_p6), [#allocation15], 4096   ;;  %p4685_p4 = pmov %p4680_p1 }
 0x114   : > { %v3909_v0 = vmov 0.0   ;;  %vm3910_vm0 = vmmov 0   ;;  %v3330_v1 = vld [vmem:[#allocation8] sm:$0xff]   ;;  %v3331_v2 = vld [vmem:[#allocation8 + $0x8] sm:$0xff]   ;;  %v3332_v3 = vld [vmem:[#allocation8 + $0x10] sm:$0xff]   ;;  %s4686_s18 = sld [smem:[#allocation35_spill]] }
 0x115   : > { %3868 = vsyncadd (%p4685_p4), [#allocation15], 4294963200  ;;  %3130 = vmatprep.subr.bf16.mxu0 %v3909_v0  ;;  %3146 = vmatprep.mubr.msk.bf16.mxu0 %vm3910_vm0, %v3909_v0  ;;  %v3333_v4 = vld [vmem:[#allocation8 + $0x18] sm:$0xff]   ;;  %v3334_v5 = vld [vmem:[#allocation8 + $0x20] sm:$0xff]   ;;  %v3911_v51 = vmov 0   ;;  %s4687_s4 = sld [smem:[#allocation36_spill]] }
 0x116   : > { %3131 = vmatpush3.bf16.msra.mxu0 %v3330_v1  ;;  %v3335_v6 = vld [vmem:[#allocation8 + $0x28] sm:$0xff]   ;;  %v3336_v7 = vld [vmem:[#allocation8 + $0x30] sm:$0xff]   ;;  %v3337_v8 = vld [vmem:[#allocation8 + $0x38] sm:$0xff]   ;;  %1024 = vmatprep.mubr.bf16.mxu1 %v3911_v51  ;;  %s4688_s13 = sld [smem:[#allocation37_spill]]  ;;  %vm1129_vm1 = vcmask 130048   ;;  %s4689_s21 = sld [smem:[#allocation39_spill]] }
 0x117   : > { %3132 = vmatprep.subr.bf16.mxu0 %v3909_v0  ;;  %v3338_v9 = vld [vmem:[%s4325_s5] sm:$0xff]   ;;  %s4690_s3 = sld [smem:[#allocation40_spill]]  ;;  %s4691_s22 = sld [smem:[#allocation25_spill]] }
 0x118   : > { %v3339_v17 = vld [vmem:[#allocation10 + $0x4] ss:$16 sps:$4 sm:$0xff]   ;;  %v3341_v18 = vld [vmem:[#allocation10 + $0x8] ss:$16 sps:$4 sm:$0xff]   ;;  %v3343_v19 = vld [vmem:[#allocation10 + $0xc] ss:$16 sps:$4 sm:$0xff]  }
 0x119   : > { %v3344_v20 = vld [vmem:[#allocation10] ss:$16 sps:$4 sm:$0xff]   ;;  %v3345_v21 = vld [vmem:[#allocation10 + $0x24] ss:$16 sps:$4 sm:$0xff]   ;;  %992 = vmatprep.subr.bf16.mxu1 %v3339_v17  ;;  %v3349_v22 = vld [vmem:[#allocation10 + $0x2c] ss:$16 sps:$4 sm:$0xff]  }
 0x11a   : > { %3133 = vmatpush3.bf16.msra.mxu0 %v3331_v2  ;;  %v2854_v10 = vld [vmem:[%s4686_s18] ss:$0 sm:$0xff]  ;;  %993 = vmatpush1.bf16.msra.mxu1 %v3344_v20  ;;  %v3347_v23 = vld [vmem:[#allocation10 + $0x28] ss:$16 sps:$4 sm:$0xff]   ;;  %v3351_v33 = vld [vmem:[#allocation10 + $0x44] ss:$16 sps:$4 sm:$0xff]  }
 0x11b   : > { %3134 = vmatprep.subr.bf16.mxu0 %v3909_v0  ;;  %994 = vmatprep.subr.bf16.mxu1 %v3345_v21  ;;  %v3350_v32 = vld [vmem:[#allocation10 + $0x20] ss:$16 sps:$4 sm:$0xff]   ;;  %v3355_v34 = vld [vmem:[#allocation10 + $0x4c] ss:$16 sps:$4 sm:$0xff]   ;;  %v3353_v35 = vld [vmem:[#allocation10 + $0x48] ss:$16 sps:$4 sm:$0xff]  }
 0x11c   : > { %v3356_v36 = vld [vmem:[#allocation10 + $0x40] ss:$16 sps:$4 sm:$0xff]   ;;  %v3357_v37 = vld [vmem:[#allocation10 + $0x64] ss:$16 sps:$4 sm:$0xff]   ;;  %v3361_v38 = vld [vmem:[#allocation10 + $0x6c] ss:$16 sps:$4 sm:$0xff]  }
 0x11d   : > { %v3359_v39 = vld [vmem:[#allocation10 + $0x68] ss:$16 sps:$4 sm:$0xff]   ;;  %v3362_v40 = vld [vmem:[#allocation10 + $0x60] ss:$16 sps:$4 sm:$0xff]   ;;  %v3363_v41 = vld [vmem:[#allocation10 + $0x84] ss:$16 sps:$4 sm:$0xff]  }
 0x11e   : > { %3135 = vmatpush3.bf16.msra.mxu0 %v3332_v3  ;;  %995 = vmatpush1.bf16.msra.mxu1 %v3350_v32  ;;  %v3365_v42 = vld [vmem:[#allocation10 + $0x88] ss:$16 sps:$4 sm:$0xff]   ;;  %v3367_v43 = vld [vmem:[#allocation10 + $0x8c] ss:$16 sps:$4 sm:$0xff]   ;;  %v3368_v44 = vld [vmem:[#allocation10 + $0x80] ss:$16 sps:$4 sm:$0xff]  }
 0x11f   : > { %3136 = vmatprep.subr.bf16.mxu0 %v3909_v0  ;;  %996 = vmatprep.subr.bf16.mxu1 %v3351_v33  ;;  %v3369_v45 = vld [vmem:[#allocation10 + $0xa4] ss:$16 sps:$4 sm:$0xff]   ;;  %v3373_v46 = vld [vmem:[#allocation10 + $0xac] ss:$16 sps:$4 sm:$0xff]   ;;  %v3371_v47 = vld [vmem:[#allocation10 + $0xa8] ss:$16 sps:$4 sm:$0xff]  }
 0x120   : > { %v3374_v48 = vld [vmem:[#allocation10 + $0xa0] ss:$16 sps:$4 sm:$0xff]   ;;  %v3375_v49 = vld [vmem:[#allocation10 + $0xc4] ss:$16 sps:$4 sm:$0xff]   ;;  %v3379_v50 = vld [vmem:[#allocation10 + $0xcc] ss:$16 sps:$4 sm:$0xff]  }
 0x121   : > { %v3377_v52 = vld [vmem:[#allocation10 + $0xc8] ss:$16 sps:$4 sm:$0xff]   ;;  %v3380_v53 = vld [vmem:[#allocation10 + $0xc0] ss:$16 sps:$4 sm:$0xff]   ;;  %v3381_v54 = vld [vmem:[#allocation10 + $0xe4] ss:$16 sps:$4 sm:$0xff]  }
 0x122   : > { %3137 = vmatpush3.bf16.msra.mxu0 %v3333_v4  ;;  %997 = vmatpush1.bf16.msra.mxu1 %v3356_v36  ;;  %v3385_v55 = vld [vmem:[#allocation10 + $0xec] ss:$16 sps:$4 sm:$0xff]   ;;  %v3383_v56 = vld [vmem:[#allocation10 + $0xe8] ss:$16 sps:$4 sm:$0xff]   ;;  %v3386_v57 = vld [vmem:[#allocation10 + $0xe0] ss:$16 sps:$4 sm:$0xff]  }
 0x123   : > { %3138 = vmatprep.subr.bf16.mxu0 %v3909_v0  ;;  %998 = vmatprep.subr.bf16.mxu1 %v3357_v37  ;;  %v2864_v3 = vld [vmem:[%s4687_s4] ss:$0 sm:$0xff]  ;;  %s2853_s5 = sshll.u32 %s4321_s28, 4  ;;  %s4692_s15 = sld [smem:[#allocation30_spill]] }
 0x124   : > { %s626_s6 = scalar_lea.vmem [#allocation16], %s2853_s5  ;;  %s3016_s10 = sshll.u32 %s4691_s22, 8 }
 0x125   : > { %s2648_s30 = sshll.u32 %s626_s6, 4  ;;  %s4693_s14 = sld [smem:[#allocation41_spill]]  ;;  %s4534_s30 = int_to_ptr.vmem [resolvable:$true] %s2648_s30 }
 0x126   : > { %3139 = vmatpush3.bf16.msra.mxu0 %v3334_v5  ;;  %999 = vmatpush1.bf16.msra.mxu1 %v3362_v40  ;;  %s2633_s18 = scalar_lea.sflag [#allocation4], %s4321_s28  ;;  %s3797_s1 = scalar_lea.vmem %s4534_s30, 256 }
 0x127   : > { %3140 = vmatprep.subr.bf16.mxu0 %v3909_v0  ;;  %1000 = vmatprep.subr.bf16.mxu1 %v3363_v41  ;;  %p3798_p7 = scmp.ne.s32.totalorder %s4534_s30, %s3797_s1  ;;  %s3912_s16 = smov [#allocation16]  }
 0x128   : > { %s3801_s4 = sshll.u32 %s3912_s16, 4  ;;  %s3802_s4 = int_to_ptr.vmem [resolvable:$false] %s3801_s4 }
 0x129   : > { %p4694_p13 = scmp.ne.s32.totalorder %s4692_s15, 0  ;;  %s3803_s24 = scalar_lea.vmem %s3802_s4, 512 }
 0x12a   : > { %3141 = vmatpush3.bf16.msra.mxu0 %v3335_v6  ;;  %1001 = vmatpush1.bf16.msra.mxu1 %v3368_v44  ;;  %p3804_p8 = scmp.lt.s32.totalorder %s4534_s30, %s3802_s4  ;;  %p3805_p11 = scmp.lt.s32.totalorder %s3803_s24, %s3797_s1 }
 0x12b   : > { %3142 = vmatprep.subr.bf16.mxu0 %v3909_v0  ;;  %1002 = vmatprep.subr.bf16.mxu1 %v3369_v45  ;;  %s4540_s20 = scalar_lea.hbm %s4693_s14, %s3016_s10  ;;  %p3799_p9 = pnand %p3798_p7, %p4694_p13 }
 0x12c   : > { %p3806_p0 = por %p3805_p11, %p3804_p8 }
 0x12d   : > { %p3800_p5 = pneg %p3799_p9 }
 0x12e   : > { %3143 = vmatpush3.bf16.msra.mxu0 %v3336_v7  ;;  %1003 = vmatpush1.bf16.msra.mxu1 %v3374_v48  ;;  %v2865_v7 = vld [vmem:[%s4688_s13] ss:$0 sm:$0xff] }
 0x12f   : > { %3144 = vmatprep.subr.bf16.mxu0 %v3909_v0  ;;  %1004 = vmatprep.subr.bf16.mxu1 %v3375_v49  ;;  %p3807_p10 = pnand %p3806_p0, %p3800_p5 }
 0x132   : > { %3145 = vmatpush3.bf16.msra.mxu0 %v3337_v8  ;;  %1005 = vmatpush1.bf16.msra.mxu1 %v3380_v53 }
 0x133   : > { %1035 = vmatprep.subr.bf16.mxu0 %v3343_v19  ;;  %1006 = vmatprep.subr.bf16.mxu1 %v3381_v54  ;;  %v3392_v54 = vld [vmem:[%s4339_s23] ss:$16 sps:$4 sm:$0xff]  }
 0x135   : > { %3147 = vmatmul.mubr.bf16.vlgmr.msra.gmra.mrb[0].mxu0 %v3338_v9 }
 0x136   : > { %1036 = vmatpush1.bf16.msra.mxu0 %v3341_v18  ;;  %1067 = vmatprep.mubr.bf16.mxu0 %v3911_v51 }
 0x137   : > { %1037 = vmatprep.subr.bf16.mxu0 %v3349_v22  ;;  %1007 = vmatpush1.bf16.msra.mxu1 %v3386_v57  ;;  %v3391_v22 = vld [vmem:[%s4333_s19 + $0xc] ss:$16 sps:$4 sm:$0xff]  }
 0x138   : > { %3150 = vmatprep.subr.bf16.mxu1 %v3909_v0 }
 0x13a   : > { %1038 = vmatpush1.bf16.msra.mxu0 %v3347_v23 }
 0x13b   : > { %1039 = vmatprep.subr.bf16.mxu0 %v3355_v34 }
 0x13e   : > { %1040 = vmatpush1.bf16.msra.mxu0 %v3353_v35 }
 0x13f   : > { %1041 = vmatprep.subr.bf16.mxu0 %v3361_v38 }
 0x142   : > { %1042 = vmatpush1.bf16.msra.mxu0 %v3359_v39 }
 0x143   : > { %1043 = vmatprep.subr.bf16.mxu0 %v3367_v43 }
 0x146   : > { %1044 = vmatpush1.bf16.msra.mxu0 %v3365_v42 }
 0x147   : > { %1045 = vmatprep.subr.bf16.mxu0 %v3373_v46 }
 0x14a   : > { %1046 = vmatpush1.bf16.msra.mxu0 %v3371_v47 }
 0x14b   : > { %1047 = vmatprep.subr.bf16.mxu0 %v3379_v50 }
 0x14e   : > { %1048 = vmatpush1.bf16.msra.mxu0 %v3377_v52 }
 0x14f   : > { %1049 = vmatprep.subr.bf16.mxu0 %v3385_v55 }
 0x152   : > { %1050 = vmatpush1.bf16.msra.mxu0 %v3383_v56 }
 0x153   : > { %3174 = vmatprep.subr.bf16.mxu0 %v3909_v0 }
 0x208   : > { %v751_v11 = vpop.f32.mrb[0].mxu0 }
 0x209   : > { %v4367_v12 = vadd.f32 %v2854_v10, %v751_v11  ;;  %v3148_v13 = vpop.f32.mrb[1].mxu0  ;;  %v3387_v11 = vld [vmem:[%s4333_s19] ss:$16 sps:$4 sm:$0xff]  }
 0x20a   : > { %v754_v14 = vpop.f32.mrb[2].mxu0  ;;  %v3389_v13 = vld [vmem:[%s4333_s19 + $0x8] ss:$16 sps:$4 sm:$0xff]  }
 0x20b   : > { %760 = vadd.xlane.f32.xlu0 %v4367_v12  ;;  %v3149_v15 = vpop.f32.mrb[3].mxu0  ;;  %v4370_v16 = vadd.f32 %v2854_v10, %v754_v14 }
 0x20f   : > { %762 = vadd.xlane.f32.xlu0 %v4370_v16 }
 0x298   : > { %v761_v24 = vpop.xlane.xlu0 %760 }
 0x299   : > { %v765_v25 = vmul.f32 0.0078125, %v761_v24 }
 0x29b   : > { %v4374_v26 = vsub.f32 %v4367_v12, %v765_v25 }
 0x29c   : > { %v763_v27 = vpop.xlane.xlu0 %762 }
 0x29d   : > { %v766_v28 = vmul.f32 0.0078125, %v763_v27  ;;  %v769_v29 = vmul.f32 %v4374_v26, %v4374_v26 }
 0x29f   : > { %v4379_v30 = vsub.f32 %v4370_v16, %v766_v28  ;;  %771 = vadd.xlane.f32.xlu1 %v769_v29 }
 0x2a1   : > { %v770_v31 = vmul.f32 %v4379_v30, %v4379_v30 }
 0x2a3   : > { %773 = vadd.xlane.f32.xlu1 %v770_v31 }
 0x32c   : > { %v772_v58 = vpop.xlane.xlu1 %771 }
 0x32d   : > { %v775_v59 = vmul.f32 0.0078125, %v772_v58 }
 0x32f   : > { %v777_v60 = vadd.f32 1e-05, %v775_v59 }
 0x330   : > { %v774_v61 = vpop.xlane.xlu1 %773 }
 0x331   : > { %3511 = vrsqrt.f32 %v777_v60  ;;  %v776_v62 = vmul.f32 0.0078125, %v774_v61  ;;  %v3394_v61 = vld [vmem:[%s4333_s19 + $0x4] ss:$16 sps:$4 sm:$0xff]  }
 0x333   : > { %v778_v63 = vadd.f32 1e-05, %v776_v62 }
 0x335   : > { %3513 = vrsqrt.f32 %v778_v63 }
 0x33b   : > { %v3512_v1 = vpop.eup %3511 }
 0x33c   : > { %v781_v2 = vmul.f32 %v3512_v1, %v4374_v26 }
 0x33e   : > { %v789_v6 = vmul.f32 %v2864_v3, %v781_v2 }
 0x33f   : > { %v3514_v4 = vpop.eup %3513 }
 0x340   : > { %v782_v5 = vmul.f32 %v3514_v4, %v4379_v30  ;;  %v797_v9 = vadd.f32 %v2865_v7, %v789_v6 }
 0x342   : > { %v790_v8 = vmul.f32 %v2864_v3, %v782_v5 }
 0x344   : > { %v798_v10 = vadd.f32 %v2865_v7, %v790_v8 }
 0x346   : > { %v799_v14 = vpack.c.bf16 %v798_v10, %v797_v9 }
 0x348   : > { %1025 = vmatmul.mubr.bf16.vlgmr.msra.gmra.mrb[0].mxu1 %v799_v14  ;;  %1068 = vmatmul.mubr.bf16.vlgmr.msra.gmra.mrb[4].mxu0 %v799_v14 }
 0x349   : > { %3151 = vmatpush3.bf16.xpose.msra.mxu1 %v3387_v11  ;;  %3175 = vmatpush3.bf16.xpose.msra.mxu0 %v3389_v13 }
 0x34a   : > { %3152 = vmatprep.mubr.msk.bf16.mxu1 %vm3910_vm0, %v3909_v0  ;;  %3176 = vmatprep.mubr.msk.bf16.mxu0 %vm3910_vm0, %v3909_v0 }
 0x34b   : > { %3186 = vmatprep.subr.bf16.mxu0 %v3909_v0  ;;  %3156 = vmatprep.subr.bf16.mxu1 %v3909_v0 }
 0x41b   : > { %v1026_v15 = vpop.f32.mrb[0].mxu1  ;;  %v1069_v17 = vpop.f32.mrb[4].mxu0 }
 0x41c   : > { %v4403_v18 = vpop.f32.mrb[1].mxu1  ;;  %v1071_v19 = vpop.f32.mrb[5].mxu0 }
 0x41d   : > { %v1030_v20 = vpop.f32.mrb[2].mxu1  ;;  %v1073_v21 = vpop.f32.mrb[6].mxu0 }
 0x41e   : > { %v1078_v23 = vpack.c.bf16 %v1030_v20, %v1026_v15  ;;  %v1080_v24 = vpack.c.bf16 %v1073_v21, %v1069_v17  ;;  %v1032_v25 = vpop.f32.mrb[3].mxu1  ;;  %v1075_v26 = vpop.f32.mrb[7].mxu0 }
 0x41f   : > { %v1079_v27 = vpack.c.bf16 %v1032_v25, %v4403_v18  ;;  %v1081_v28 = vpack.c.bf16 %v1075_v26, %v1071_v19 }
 0x420   : > { %3153 = vmatmul.mubr.bf16.vlgmr.msra.gmra.mrb[4].mxu1 %v1078_v23  ;;  %3177 = vmatmul.mubr.bf16.vlgmr.msra.gmra.mrb[8].mxu0 %v1080_v24 }
 0x421   : > { %3187 = vmatpush3.bf16.xpose.msra.mxu0 %v3391_v22  ;;  %3188 = vmatprep.mubr.msk.bf16.mxu0 %vm3910_vm0, %v3909_v0 }
 0x422   : > { %3158 = vmatprep.mubr.msk.bf16.mxu1 %vm3910_vm0, %v3909_v0  ;;  %3157 = vmatpush3.bf16.msra.mxu1 %v3392_v54  ;;  %v3404_v54 = vld [vmem:[#allocation11 + $0x10] sm:$0xff]  }
 0x423   : > { %3162 = vmatprep.subr.bf16.mxu1 %v3909_v0 }
 0x428   : > { %3189 = vmatmul.mubr.bf16.vlgmr.msra.gmra.mrb[12].mxu0 %v1081_v28 }
 0x4f3   : > { %v1122_v29 = vpop.f32.mrb[4].mxu1  ;;  %v4411_v30 = vpop.f32.mrb[8].mxu0 }
 0x4f4   : > { %v3154_v31 = vpop.f32.mrb[5].mxu1  ;;  %v3178_v32 = vpop.f32.mrb[9].mxu0  ;;  %v1130_v33 = vsel %vm1129_vm1, %v1122_v29, -inf  ;;  %v1368_v11 = vsel %vm1129_vm1, %v4411_v30, -inf }
 0x4f5   : > { %1131 = vmax.xlane.f32.xlu0 %v1130_v33  ;;  %v1125_v34 = vpop.f32.mrb[6].mxu1  ;;  %v4414_v35 = vpop.f32.mrb[10].mxu0 }
 0x4f6   : > { %v3155_v36 = vpop.f32.mrb[7].mxu1  ;;  %v3179_v37 = vpop.f32.mrb[11].mxu0  ;;  %v1133_v38 = vsel %vm1129_vm1, %v1125_v34, -inf  ;;  %v1371_v13 = vsel %vm1129_vm1, %v4414_v35, -inf }
 0x4f7   : > { %1134 = vmax.xlane.f32.xlu1 %v1133_v38 }
 0x4fb   : > { %v4417_v39 = vpop.f32.mrb[12].mxu0 }
 0x4fc   : > { %v3190_v40 = vpop.f32.mrb[13].mxu0  ;;  %v1487_v14 = vsel %vm1129_vm1, %v4417_v39, -inf }
 0x4fd   : > { %v4419_v41 = vpop.f32.mrb[14].mxu0 }
 0x4fe   : > { %v3191_v42 = vpop.f32.mrb[15].mxu0  ;;  %v1490_v15 = vsel %vm1129_vm1, %v4419_v41, -inf }
 0x582   : > { %v1132_v43 = vpop.xlane.xlu0 %1131 }
 0x583   : > { %v1136_v44 = vsub.f32 %v1122_v29, %v1132_v43 }
 0x584   : > { %v1135_v45 = vpop.xlane.xlu1 %1134 }
 0x585   : > { %v1138_v46 = vmul.f32 1.442695, %v1136_v44  ;;  %v1137_v47 = vsub.f32 %v1125_v34, %v1135_v45 }
 0x587   : > { %3515 = vpow2.f32 %v1138_v46  ;;  %v1140_v48 = vmul.f32 1.442695, %v1137_v47  ;;  %v3395_v47 = vld [vmem:[%s4339_s23 + $0x4] ss:$16 sps:$4 sm:$0xff]  }
 0x589   : > { %3517 = vpow2.f32 %v1140_v48  ;;  %v3399_v48 = vld [vmem:[#allocation11 + $0x40] sm:$0xff]  }
 0x58a   : > { %3042 = vmatprep.subr.bf16.mxu0 %v3399_v48 }
 0x591   : > { %v3516_v49 = vpop.eup %3515 }
 0x592   : > { %v1142_v50 = vsel %vm1129_vm1, %v3516_v49, 0.0 }
 0x593   : > { %v3518_v52 = vpop.eup %3517  ;;  %1143 = vadd.xlane.f32.xlu0 %v1142_v50  ;;  %v3401_v50 = vld [vmem:[#allocation11 + $0x48] sm:$0xff]  }
 0x594   : > { %v1145_v53 = vsel %vm1129_vm1, %v3518_v52, 0.0 }
 0x595   : > { %1146 = vadd.xlane.f32.xlu1 %v1145_v53  ;;  %v3403_v53 = vld [vmem:[#allocation11 + $0x50] sm:$0xff]  }
 0x620   : > { %v1144_v55 = vpop.xlane.xlu0 %1143 }
 0x621   : > { %3519 = vrcp.f32 %v1144_v55  ;;  %v3405_v55 = vld [vmem:[#allocation11 + $0x58] sm:$0xff]  }
 0x622   : > { %v1147_v56 = vpop.xlane.xlu1 %1146 }
 0x623   : > { %3521 = vrcp.f32 %v1147_v56  ;;  %v3406_v56 = vld [vmem:[#allocation11 + $0x18] sm:$0xff]  }
 0x62b   : > { %v3520_v57 = vpop.eup %3519 }
 0x62c   : > { %v1150_v59 = vmul.f32 %v3520_v57, %v3516_v49  ;;  %v3400_v49 = vld [vmem:[#allocation11] sm:$0xff]  }
 0x62d   : > { %v3522_v58 = vpop.eup %3521  ;;  %3043 = vmatpush3.bf16.msra.mxu0 %v3400_v49  ;;  %v3407_v57 = vld [vmem:[#allocation11 + $0x60] sm:$0xff]  }
 0x62e   : > { %v1151_v60 = vmul.f32 %v3522_v58, %v3518_v52  ;;  %v3402_v52 = vld [vmem:[#allocation11 + $0x8] sm:$0xff]   ;;  %3044 = vmatprep.subr.bf16.mxu0 %v3401_v50  ;;  %v3409_v58 = vld [vmem:[#allocation11 + $0x20] sm:$0xff]  }
 0x630   : > { %v1152_v62 = vpack.c.bf16 %v1151_v60, %v1150_v59  ;;  %v3411_v59 = vld [vmem:[#allocation11 + $0x68] sm:$0xff]  }
 0x631   : > { %3045 = vmatpush3.bf16.msra.mxu0 %v3402_v52  ;;  %v3413_v60 = vld [vmem:[#allocation11 + $0x28] sm:$0xff]  }
 0x632   : > { %3159 = vmatmul.mubr.msk.bf16.vlgmr.msra.gmra.mrb[8].mxu1 %vm1129_vm1, %v1152_v62  ;;  %3046 = vmatprep.subr.bf16.mxu0 %v3403_v53  ;;  %v3417_v62 = vld [vmem:[#allocation11 + $0x30] sm:$0xff]  }
 0x633   : > { %3163 = vmatpush3.bf16.xpose.msra.mxu1 %v3394_v61  ;;  %3164 = vmatprep.mubr.msk.bf16.mxu1 %vm3910_vm0, %v3909_v0  ;;  %v3415_v61 = vld [vmem:[#allocation11 + $0x70] sm:$0xff]  }
 0x634   : > { %3168 = vmatprep.subr.bf16.mxu1 %v3909_v0 }
 0x635   : > { %3047 = vmatpush3.bf16.msra.mxu0 %v3404_v54 }
 0x636   : > { %3048 = vmatprep.subr.bf16.mxu0 %v3405_v55 }
 0x639   : > { %3049 = vmatpush3.bf16.msra.mxu0 %v3406_v56 }
 0x63a   : > { %3165 = vmatmul.mubr.bf16.vlgmr.msra.gmra.mrb[12].mxu1 %v1079_v27  ;;  %3050 = vmatprep.subr.bf16.mxu0 %v3407_v57 }
 0x63b   : > { %3170 = vmatprep.mubr.msk.bf16.mxu1 %vm3910_vm0, %v3909_v0  ;;  %3169 = vmatpush3.bf16.msra.mxu1 %v3395_v47 }
 0x63c   : > { %3180 = vmatprep.subr.bf16.mxu1 %v3909_v0 }
 0x63d   : > { %3051 = vmatpush3.bf16.msra.mxu0 %v3409_v58 }
 0x63e   : > { %3052 = vmatprep.subr.bf16.mxu0 %v3411_v59 }
 0x641   : > { %3053 = vmatpush3.bf16.msra.mxu0 %v3413_v60 }
 0x642   : > { %3054 = vmatprep.subr.bf16.mxu0 %v3415_v61 }
 0x645   : > { %3055 = vmatpush3.bf16.msra.mxu0 %v3417_v62 }
 0x705   : > { %v4432_v63 = vpop.f32.mrb[8].mxu1 }
 0x706   : > { %v3160_v1 = vpop.f32.mrb[9].mxu1 }
 0x707   : > { %v4434_v2 = vpop.f32.mrb[10].mxu1 }
 0x708   : > { %v1203_v3 = vpack.c.bf16 %v4434_v2, %v4432_v63  ;;  %v3161_v4 = vpop.f32.mrb[11].mxu1 }
 0x70d   : > { %v1242_v5 = vpop.f32.mrb[12].mxu1 }
 0x70e   : > { %v3166_v6 = vpop.f32.mrb[13].mxu1  ;;  %v1249_v7 = vsel %vm1129_vm1, %v1242_v5, -inf }
 0x70f   : > { %1250 = vmax.xlane.f32.xlu0 %v1249_v7  ;;  %v1245_v8 = vpop.f32.mrb[14].mxu1 }
 0x710   : > { %v3167_v9 = vpop.f32.mrb[15].mxu1  ;;  %v1252_v10 = vsel %vm1129_vm1, %v1245_v8, -inf }
 0x711   : > { %1253 = vmax.xlane.f32.xlu1 %v1252_v10 }
 0x713   : > { %1369 = vmax.xlane.f32.xlu0 %v1368_v11 }
 0x715   : > { %1372 = vmax.xlane.f32.xlu1 %v1371_v13 }
 0x717   : > { %1488 = vmax.xlane.f32.xlu0 %v1487_v14  ;;  %v3396_v14 = vld [vmem:[%s4339_s23 + $0x8] ss:$16 sps:$4 sm:$0xff]  }
 0x719   : > { %1491 = vmax.xlane.f32.xlu1 %v1490_v15 }
 0x79c   : > { %v1251_v17 = vpop.xlane.xlu0 %1250 }
 0x79d   : > { %v1255_v18 = vsub.f32 %v1242_v5, %v1251_v17 }
 0x79e   : > { %v1254_v19 = vpop.xlane.xlu1 %1253 }
 0x79f   : > { %v1257_v20 = vmul.f32 1.442695, %v1255_v18  ;;  %v1256_v21 = vsub.f32 %v1245_v8, %v1254_v19 }
 0x7a0   : > { %v1370_v22 = vpop.xlane.xlu0 %1369 }
 0x7a1   : > { %3523 = vpow2.f32 %v1257_v20  ;;  %v1259_v23 = vmul.f32 1.442695, %v1256_v21  ;;  %v1374_v24 = vsub.f32 %v4411_v30, %v1370_v22  ;;  %v3398_v21 = vld [vmem:[%s4339_s23 + $0xc] ss:$16 sps:$4 sm:$0xff]  }
 0x7a2   : > { %v1373_v25 = vpop.xlane.xlu1 %1372 }
 0x7a3   : > { %3525 = vpow2.f32 %v1259_v23  ;;  %v1376_v26 = vmul.f32 1.442695, %v1374_v24  ;;  %v1375_v27 = vsub.f32 %v4414_v35, %v1373_v25  ;;  %v3408_v23 = vld [vmem:[#allocation11 + $0xc0] sm:$0xff]  }
 0x7a4   : > { %v1489_v28 = vpop.xlane.xlu0 %1488 }
 0x7a5   : > { %3527 = vpow2.f32 %v1376_v26  ;;  %v1378_v29 = vmul.f32 1.442695, %v1375_v27  ;;  %v1493_v31 = vsub.f32 %v4417_v39, %v1489_v28  ;;  %v3410_v28 = vld [vmem:[#allocation11 + $0x80] sm:$0xff]  }
 0x7a6   : > { %v1492_v32 = vpop.xlane.xlu1 %1491 }
 0x7a7   : > { %3529 = vpow2.f32 %v1378_v29  ;;  %v1495_v33 = vmul.f32 1.442695, %v1493_v31  ;;  %v1494_v34 = vsub.f32 %v4419_v41, %v1492_v32  ;;  %v3412_v31 = vld [vmem:[#allocation11 + $0xc8] sm:$0xff]  }
 0x7a8   : > { %v3414_v32 = vld [vmem:[#allocation11 + $0x88] sm:$0xff]  }
 0x7a9   : > { %3531 = vpow2.f32 %v1495_v33  ;;  %v1497_v36 = vmul.f32 1.442695, %v1494_v34  ;;  %v3416_v33 = vld [vmem:[#allocation11 + $0xd0] sm:$0xff]  }
 0x7aa   : > { %v3418_v34 = vld [vmem:[#allocation11 + $0x90] sm:$0xff]  }
 0x7ab   : > { %v3524_v37 = vpop.eup %3523  ;;  %3533 = vpow2.f32 %v1497_v36  ;;  %v3419_v36 = vld [vmem:[#allocation11 + $0x78] sm:$0xff]  }
 0x7ac   : > { %v1261_v30 = vsel %vm1129_vm1, %v3524_v37, 0.0  ;;  %3056 = vmatprep.subr.bf16.mxu0 %v3419_v36  ;;  %v3454_v36 = vld [vmem:[#allocation13 + $0x6c] ss:$16 sps:$4 sm:$0xff]  }
 0x7ad   : > { %v3526_v38 = vpop.eup %3525  ;;  %1262 = vadd.xlane.f32.xlu0 %v1261_v30  ;;  %v3422_v30 = vld [vmem:[#allocation11 + $0x98] sm:$0xff]  }
 0x7ae   : > { %v1264_v35 = vsel %vm1129_vm1, %v3526_v38, 0.0 }
 0x7af   : > { %v4454_v40 = vpop.eup %3527  ;;  %1265 = vadd.xlane.f32.xlu1 %v1264_v35  ;;  %v3424_v35 = vld [vmem:[#allocation11 + $0xa0] sm:$0xff]  }
 0x7b0   : > { %v1380_v39 = vsel %vm1129_vm1, %v4454_v40, 0.0 }
 0x7b1   : > { %v4458_v42 = vpop.eup %3529  ;;  %1381 = vadd.xlane.f32.xlu0 %v1380_v39  ;;  %v3426_v39 = vld [vmem:[#allocation11 + $0xa8] sm:$0xff]  }
 0x7b2   : > { %v1383_v41 = vsel %vm1129_vm1, %v4458_v42, 0.0 }
 0x7b3   : > { %v4462_v43 = vpop.eup %3531  ;;  %1384 = vadd.xlane.f32.xlu1 %v1383_v41  ;;  %v3428_v41 = vld [vmem:[#allocation11 + $0xb0] sm:$0xff]  }
 0x7b4   : > { %v1499_v44 = vsel %vm1129_vm1, %v4462_v43, 0.0 }
 0x7b5   : > { %v4466_v45 = vpop.eup %3533  ;;  %1500 = vadd.xlane.f32.xlu0 %v1499_v44  ;;  %v3430_v44 = vld [vmem:[#allocation11 + $0xb8] sm:$0xff]  }
 0x7b6   : > { %v1502_v46 = vsel %vm1129_vm1, %v4466_v45, 0.0 }
 0x7b7   : > { %1503 = vadd.xlane.f32.xlu1 %v1502_v46 }
 0x83a   : > { %v1263_v1 = vpop.xlane.xlu0 %1262 }
 0x83b   : > { %3535 = vrcp.f32 %v1263_v1 }
 0x83c   : > { %v1266_v4 = vpop.xlane.xlu1 %1265 }
 0x83d   : > { %3537 = vrcp.f32 %v1266_v4 }
 0x83e   : > { %v1382_v5 = vpop.xlane.xlu0 %1381 }
 0x840   : > { %v1385_v6 = vpop.xlane.xlu1 %1384 }
 0x841   : > { %3539 = vrcp.f32 %v1385_v6 }
 0x842   : > { %3541 = vrcp.f32 %v1382_v5  ;;  %v1501_v13 = vpop.xlane.xlu0 %1500 }
 0x844   : > { %v1504_v8 = vpop.xlane.xlu1 %1503 }
 0x845   : > { %v3536_v7 = vpop.eup %3535  ;;  %3543 = vrcp.f32 %v1504_v8 }
 0x846   : > { %v1269_v10 = vmul.f32 %v3536_v7, %v3524_v37  ;;  %3545 = vrcp.f32 %v1501_v13  ;;  %v3421_v37 = vld [vmem:[#allocation11 + $0x38] sm:$0xff]  }
 0x847   : > { %v3538_v9 = vpop.eup %3537  ;;  %3057 = vmatpush3.bf16.msra.mxu0 %v3421_v37  ;;  %v3452_v37 = vld [vmem:[#allocation13 + $0x68] ss:$16 sps:$4 sm:$0xff]  }
 0x848   : > { %v1270_v11 = vmul.f32 %v3538_v9, %v3526_v38  ;;  %v3423_v38 = vld [vmem:[#allocation11 + $0xe0] sm:$0xff]  }
 0x84a   : > { %v1271_v15 = vpack.c.bf16 %v1270_v11, %v1269_v10 }
 0x84b   : > { %v3540_v17 = vpop.eup %3539 }
 0x84c   : > { %3171 = vmatmul.mubr.msk.bf16.vlgmr.msra.gmra.mrb[16].mxu1 %vm1129_vm1, %v1271_v15  ;;  %v3542_v18 = vpop.eup %3541  ;;  %v1389_v19 = vmul.f32 %v3540_v17, %v4458_v42  ;;  %v3427_v42 = vld [vmem:[#allocation11 + $0xf0] sm:$0xff]   ;;  %v3434_v17 = vld [vmem:[#allocation13 + $0x8] ss:$16 sps:$4 sm:$0xff]  }
 0x84d   : > { %3181 = vmatpush3.bf16.msra.mxu1 %v3396_v14  ;;  %3182 = vmatprep.mubr.msk.bf16.mxu1 %vm3910_vm0, %v3909_v0  ;;  %v1388_v20 = vmul.f32 %v3542_v18, %v4454_v40  ;;  %v3425_v40 = vld [vmem:[#allocation11 + $0xe8] sm:$0xff]   ;;  %v3433_v15 = vld [vmem:[#allocation13 + $0x4] ss:$16 sps:$4 sm:$0xff]  }
 0x84e   : > { %3192 = vmatprep.subr.bf16.mxu1 %v3909_v0  ;;  %v3436_v18 = vld [vmem:[#allocation13 + $0xc] ss:$16 sps:$4 sm:$0xff]   ;;  %2130 = vmatprep.subr.bf16.mxu0 %v3433_v15 }
 0x84f   : > { %v1390_v22 = vpack.c.bf16 %v1389_v19, %v1388_v20  ;;  %v3544_v24 = vpop.eup %3543  ;;  %v3439_v19 = vld [vmem:[#allocation13 + $0x24] ss:$16 sps:$4 sm:$0xff]   ;;  %v3437_v20 = vld [vmem:[#allocation13 + $0x20] ss:$16 sps:$4 sm:$0xff]   ;;  %v3485_v15 = vld [vmem:[#allocation14 + $0x8] sm:$0xff]  }
 0x850   : > { %v3546_v25 = vpop.eup %3545  ;;  %v1508_v26 = vmul.f32 %v3544_v24, %v4466_v45 }
 0x851   : > { %v1507_v27 = vmul.f32 %v3546_v25, %v4462_v43  ;;  %v3429_v43 = vld [vmem:[#allocation11 + $0xf8] sm:$0xff]  }
 0x853   : > { %v1509_v29 = vpack.c.bf16 %v1508_v26, %v1507_v27 }
 0x854   : > { %3183 = vmatmul.mubr.msk.bf16.vlgmr.msra.gmra.mrb[20].mxu1 %vm1129_vm1, %v1390_v22 }
 0x855   : > { %3193 = vmatpush3.bf16.msra.mxu1 %v3398_v21  ;;  %3194 = vmatprep.mubr.msk.bf16.mxu1 %vm3910_vm0, %v3909_v0  ;;  %v3420_v0 = vld [vmem:[#allocation11 + $0xd8] sm:$0xff]  }
 0x856   : > { %3064 = vmatprep.subr.bf16.mxu1 %v3408_v23 }
 0x85c   : > { %3195 = vmatmul.mubr.msk.bf16.vlgmr.msra.gmra.mrb[24].mxu1 %vm1129_vm1, %v1509_v29  ;;  %v3445_v29 = vld [vmem:[#allocation13 + $0x44] ss:$16 sps:$4 sm:$0xff]  }
 0x85d   : > { %3065 = vmatpush3.bf16.msra.mxu1 %v3410_v28 }
 0x85e   : > { %3066 = vmatprep.subr.bf16.mxu1 %v3412_v31  ;;  %v3448_v31 = vld [vmem:[#allocation13 + $0x4c] ss:$16 sps:$4 sm:$0xff]  }
 0x861   : > { %3067 = vmatpush3.bf16.msra.mxu1 %v3414_v32  ;;  %v3443_v32 = vld [vmem:[#allocation13 + $0x40] ss:$16 sps:$4 sm:$0xff]  }
 0x862   : > { %3068 = vmatprep.subr.bf16.mxu1 %v3416_v33  ;;  %v3446_v33 = vld [vmem:[#allocation13 + $0x48] ss:$16 sps:$4 sm:$0xff]  }
 0x865   : > { %3069 = vmatpush3.bf16.msra.mxu1 %v3418_v34  ;;  %v3451_v34 = vld [vmem:[#allocation13 + $0x64] ss:$16 sps:$4 sm:$0xff]  }
 0x866   : > { %3070 = vmatprep.subr.bf16.mxu1 %v3420_v0  ;;  %v3449_v0 = vld [vmem:[#allocation13 + $0x60] ss:$16 sps:$4 sm:$0xff]  }
 0x869   : > { %3071 = vmatpush3.bf16.msra.mxu1 %v3422_v30  ;;  %v3457_v30 = vld [vmem:[#allocation13 + $0x84] ss:$16 sps:$4 sm:$0xff]  }
 0x86a   : > { %3072 = vmatprep.subr.bf16.mxu1 %v3423_v38  ;;  %v3460_v38 = vld [vmem:[#allocation13 + $0x8c] ss:$16 sps:$4 sm:$0xff]  }
 0x86d   : > { %3073 = vmatpush3.bf16.msra.mxu1 %v3424_v35  ;;  %v3455_v35 = vld [vmem:[#allocation13 + $0x80] ss:$16 sps:$4 sm:$0xff]  }
 0x86e   : > { %3074 = vmatprep.subr.bf16.mxu1 %v3425_v40  ;;  %v3458_v40 = vld [vmem:[#allocation13 + $0x88] ss:$16 sps:$4 sm:$0xff]  }
 0x871   : > { %3075 = vmatpush3.bf16.msra.mxu1 %v3426_v39  ;;  %v3463_v39 = vld [vmem:[#allocation13 + $0xa4] ss:$16 sps:$4 sm:$0xff]  }
 0x872   : > { %3076 = vmatprep.subr.bf16.mxu1 %v3427_v42  ;;  %v3466_v42 = vld [vmem:[#allocation13 + $0xac] ss:$16 sps:$4 sm:$0xff]  }
 0x875   : > { %3077 = vmatpush3.bf16.msra.mxu1 %v3428_v41  ;;  %v3461_v41 = vld [vmem:[#allocation13 + $0xa0] ss:$16 sps:$4 sm:$0xff]  }
 0x876   : > { %3078 = vmatprep.subr.bf16.mxu1 %v3429_v43  ;;  %v3464_v43 = vld [vmem:[#allocation13 + $0xa8] ss:$16 sps:$4 sm:$0xff]  }
 0x879   : > { %3079 = vmatpush3.bf16.msra.mxu1 %v3430_v44  ;;  %v3469_v44 = vld [vmem:[#allocation13 + $0xc4] ss:$16 sps:$4 sm:$0xff]  }
 0x87a   : > { %2173 = vmatprep.subr.bf16.mxu1 %v3436_v18  ;;  %v3487_v18 = vld [vmem:[#allocation14 + $0x50] sm:$0xff]  }
 0x91f   : > { %v1313_v45 = vpop.f32.mrb[16].mxu1 }
 0x920   : > { %v3172_v46 = vpop.f32.mrb[17].mxu1 }
 0x921   : > { %v1316_v47 = vpop.f32.mrb[18].mxu1  ;;  %v3467_v46 = vld [vmem:[#allocation13 + $0xc0] ss:$16 sps:$4 sm:$0xff]  }
 0x922   : > { %v1320_v48 = vpack.c.bf16 %v1316_v47, %v1313_v45  ;;  %v3173_v49 = vpop.f32.mrb[19].mxu1  ;;  %v3472_v45 = vld [vmem:[#allocation13 + $0xcc] ss:$16 sps:$4 sm:$0xff]   ;;  %v3470_v47 = vld [vmem:[#allocation13 + $0xc8] ss:$16 sps:$4 sm:$0xff]  }
 0x923   : > { %v3473_v49 = vld [vmem:[#allocation13 + $0xe0] ss:$16 sps:$4 sm:$0xff]  }
 0x924   : > { %1847 = vmatprep.mubr.bf16.mxu0 %v1320_v48  ;;  %v3475_v48 = vld [vmem:[#allocation13 + $0xe4] ss:$16 sps:$4 sm:$0xff]  }
 0x925   : > { %1848 = vmatmul.mubr.bf16.vlgmr.msra.gmra.mrb[16].mxu0 %v1203_v3 }
 0x926   : > { %2162 = vmatprep.mubr.bf16.mxu0 %v3911_v51 }
 0x927   : > { %v1434_v50 = vpop.f32.mrb[20].mxu1 }
 0x928   : > { %v3184_v52 = vpop.f32.mrb[21].mxu1 }
 0x929   : > { %v1437_v53 = vpop.f32.mrb[22].mxu1  ;;  %v3478_v52 = vld [vmem:[#allocation13 + $0xec] ss:$16 sps:$4 sm:$0xff]  }
 0x92a   : > { %v1441_v54 = vpack.c.bf16 %v1437_v53, %v1434_v50  ;;  %v3185_v55 = vpop.f32.mrb[23].mxu1  ;;  %v3476_v50 = vld [vmem:[#allocation13 + $0xe8] ss:$16 sps:$4 sm:$0xff]  }
 0x92f   : > { %v1551_v56 = vpop.f32.mrb[24].mxu1 }
 0x930   : > { %v3196_v57 = vpop.f32.mrb[25].mxu1 }
 0x931   : > { %v1554_v58 = vpop.f32.mrb[26].mxu1 }
 0x932   : > { %v1558_v59 = vpack.c.bf16 %v1554_v58, %v1551_v56  ;;  %v3197_v60 = vpop.f32.mrb[27].mxu1 }
 0x933   : > { %v2942_v60 = vld [vmem:[%s4689_s21] ss:$0 sm:$0xff] }
 0x934   : > { %1888 = vmatprep.mubr.bf16.mxu1 %v1558_v59 }
 0x935   : > { %1889 = vmatmul.mubr.bf16.vlgmr.msra.gmra.mrb[28].mxu1 %v1441_v54 }
 0x936   : > { %2205 = vmatprep.mubr.bf16.mxu1 %v3911_v51  ;;  %v3431_v51 = vld [vmem:[#allocation13] ss:$16 sps:$4 sm:$0xff]   ;;  %2174 = vmatpush1.bf16.msra.mxu1 %v3434_v17  ;;  %v3486_v17 = vld [vmem:[#allocation14 + $0x88] sm:$0xff]  }
 0x937   : > { %2131 = vmatpush1.bf16.msra.mxu0 %v3431_v51  ;;  %v3484_v51 = vld [vmem:[#allocation14 + $0xc8] sm:$0xff]  }
 0x938   : > { %2132 = vmatprep.subr.bf16.mxu0 %v3439_v19  ;;  %v3488_v19 = vld [vmem:[#allocation14 + $0xd0] sm:$0xff]  }
 0x93b   : > { %2133 = vmatpush1.bf16.msra.mxu0 %v3437_v20  ;;  %v3490_v20 = vld [vmem:[#allocation14 + $0x90] sm:$0xff]  }
 0x93c   : > { %2134 = vmatprep.subr.bf16.mxu0 %v3445_v29  ;;  %v3500_v29 = vld [vmem:[#allocation14 + $0xe8] sm:$0xff]  }
 0x93f   : > { %2135 = vmatpush1.bf16.msra.mxu0 %v3443_v32  ;;  %v3502_v32 = vld [vmem:[#allocation14 + $0xa8] sm:$0xff]  }
 0x940   : > { %2136 = vmatprep.subr.bf16.mxu0 %v3451_v34  ;;  %v3504_v34 = vld [vmem:[#allocation14 + $0xf0] sm:$0xff]  }
 0x943   : > { %2137 = vmatpush1.bf16.msra.mxu0 %v3449_v0  ;;  %v3506_v0 = vld [vmem:[#allocation14 + $0xb0] sm:$0xff]  }
 0x944   : > { %2138 = vmatprep.subr.bf16.mxu0 %v3457_v30  ;;  %v3508_v30 = vld [vmem:[#allocation14 + $0xf8] sm:$0xff]  }
 0x947   : > { %2139 = vmatpush1.bf16.msra.mxu0 %v3455_v35  ;;  %v3510_v35 = vld [vmem:[#allocation14 + $0xb8] sm:$0xff]  }
 0x948   : > { %2140 = vmatprep.subr.bf16.mxu0 %v3463_v39 }
 0x94b   : > { %2141 = vmatpush1.bf16.msra.mxu0 %v3461_v41 }
 0x94c   : > { %2142 = vmatprep.subr.bf16.mxu0 %v3469_v44 }
 0x94f   : > { %2143 = vmatpush1.bf16.msra.mxu0 %v3467_v46 }
 0x950   : > { %2144 = vmatprep.subr.bf16.mxu0 %v3475_v48 }
 0x953   : > { %2145 = vmatpush1.bf16.msra.mxu0 %v3473_v49 }
 0x9f8   : > { %v3058_v61 = vpop.f32.mrb[16].mxu0 }
 0x9f9   : > { %v3059_v62 = vpop.f32.mrb[17].mxu0 }
 0x9fa   : > { %v3060_v63 = vadd.f32 %v3059_v62, %v3058_v61  ;;  %v3061_v2 = vpop.f32.mrb[18].mxu0 }
 0x9fb   : > { %v3062_v3 = vpop.f32.mrb[19].mxu0 }
 0x9fc   : > { %v3063_v1 = vadd.f32 %v3062_v3, %v3061_v2  ;;  %v1850_v6 = vadd.f32 %v3060_v63, %v4367_v12  ;;  %v3442_v12 = vld [vmem:[#allocation13 + $0x2c] ss:$16 sps:$4 sm:$0xff]   ;;  %v2943_v3 = vld [vmem:[%s4690_s3] ss:$0 sm:$0xff] }
 0x9fd   : > { %2175 = vmatprep.subr.bf16.mxu1 %v3442_v12  ;;  %v3489_v12 = vld [vmem:[#allocation14 + $0x10] sm:$0xff]  }
 0x9fe   : > { %v1853_v10 = vadd.f32 %v3063_v1, %v4370_v16  ;;  %v3440_v16 = vld [vmem:[#allocation13 + $0x28] ss:$16 sps:$4 sm:$0xff]  }
 0x9ff   : > { %2176 = vmatpush1.bf16.msra.mxu1 %v3440_v16  ;;  %v3491_v16 = vld [vmem:[#allocation14 + $0x58] sm:$0xff]  }
 0xa00   : > { %2177 = vmatprep.subr.bf16.mxu1 %v3448_v31  ;;  %v3501_v31 = vld [vmem:[#allocation14 + $0x28] sm:$0xff]  }
 0xa03   : > { %2178 = vmatpush1.bf16.msra.mxu1 %v3446_v33  ;;  %v3503_v33 = vld [vmem:[#allocation14 + $0x70] sm:$0xff]  }
 0xa04   : > { %2179 = vmatprep.subr.bf16.mxu1 %v3454_v36  ;;  %v3505_v36 = vld [vmem:[#allocation14 + $0x30] sm:$0xff]  }
 0xa07   : > { %2180 = vmatpush1.bf16.msra.mxu1 %v3452_v37  ;;  %v3507_v37 = vld [vmem:[#allocation14 + $0x78] sm:$0xff]  }
 0xa08   : > { %v3080_v4 = vpop.f32.mrb[28].mxu1  ;;  %2181 = vmatprep.subr.bf16.mxu1 %v3460_v38  ;;  %v3509_v38 = vld [vmem:[#allocation14 + $0x38] sm:$0xff]  }
 0xa09   : > { %v3081_v5 = vpop.f32.mrb[29].mxu1 }
 0xa0a   : > { %v3082_v7 = vadd.f32 %v3081_v5, %v3080_v4  ;;  %v3083_v8 = vpop.f32.mrb[30].mxu1 }
 0xa0b   : > { %v3084_v9 = vpop.f32.mrb[31].mxu1  ;;  %2182 = vmatpush1.bf16.msra.mxu1 %v3458_v40 }
 0xa0c   : > { %v4493_v11 = vadd.f32 %v3082_v7, %v1850_v6  ;;  %v3085_v13 = vadd.f32 %v3084_v9, %v3083_v8  ;;  %2183 = vmatprep.subr.bf16.mxu1 %v3466_v42  ;;  %v3479_v7 = vld [vmem:[#allocation14 + $0x40] sm:$0xff]  }
 0xa0d   : > { %v3480_v8 = vld [vmem:[#allocation14 + $0xc0] sm:$0xff]   ;;  %3086 = vmatprep.subr.bf16.mxu0 %v3479_v7 }
 0xa0e   : > { %v4495_v14 = vadd.f32 %v3085_v13, %v1853_v10  ;;  %1899 = vadd.xlane.f32.xlu0 %v4493_v11  ;;  %v3481_v9 = vld [vmem:[#allocation14] sm:$0xff]   ;;  %v3483_v13 = vld [vmem:[#allocation14 + $0x48] sm:$0xff]  }
 0xa0f   : > { %2184 = vmatpush1.bf16.msra.mxu1 %v3464_v43  ;;  %v3482_v10 = vld [vmem:[#allocation14 + $0x80] sm:$0xff]  }
 0xa10   : > { %1901 = vadd.xlane.f32.xlu1 %v4495_v14  ;;  %2185 = vmatprep.subr.bf16.mxu1 %v3472_v45 }
 0xa13   : > { %2186 = vmatpush1.bf16.msra.mxu1 %v3470_v47 }
 0xa14   : > { %2187 = vmatprep.subr.bf16.mxu1 %v3478_v52 }
 0xa17   : > { %2188 = vmatpush1.bf16.msra.mxu1 %v3476_v50 }
 0xa18   : > { %3108 = vmatprep.subr.bf16.mxu1 %v3480_v8 }
 0xa9b   : > { %v1900_v21 = vpop.xlane.xlu0 %1899 }
 0xa9c   : > { %v1903_v22 = vmul.f32 0.0078125, %v1900_v21  ;;  %v3492_v21 = vld [vmem:[#allocation14 + $0xd8] sm:$0xff]  }
 0xa9d   : > { %v1902_v23 = vpop.xlane.xlu1 %1901 }
 0xa9e   : > { %v4500_v24 = vsub.f32 %v4493_v11, %v1903_v22  ;;  %v1904_v25 = vmul.f32 0.0078125, %v1902_v23  ;;  %v3493_v22 = vld [vmem:[#allocation14 + $0x18] sm:$0xff]  }
 0xa9f   : > { %v3494_v23 = vld [vmem:[#allocation14 + $0x98] sm:$0xff]  }
 0xaa0   : > { %v4503_v26 = vsub.f32 %v4495_v14, %v1904_v25  ;;  %v1907_v27 = vmul.f32 %v4500_v24, %v4500_v24  ;;  %v3496_v25 = vld [vmem:[#allocation14 + $0xe0] sm:$0xff]  }
 0xaa2   : > { %1909 = vadd.xlane.f32.xlu0 %v1907_v27  ;;  %v1908_v28 = vmul.f32 %v4503_v26, %v4503_v26  ;;  %v3498_v27 = vld [vmem:[#allocation14 + $0xa0] sm:$0xff]  }
 0xaa4   : > { %1911 = vadd.xlane.f32.xlu1 %v1908_v28  ;;  %v3499_v28 = vld [vmem:[#allocation14 + $0x68] sm:$0xff]  }
 0xb2f   : > { %v1910_v53 = vpop.xlane.xlu0 %1909 }
 0xb30   : > { %v1913_v54 = vmul.f32 0.0078125, %v1910_v53 }
 0xb31   : > { %v1912_v55 = vpop.xlane.xlu1 %1911 }
 0xb32   : > { %v1915_v56 = vadd.f32 1e-05, %v1913_v54  ;;  %v1914_v57 = vmul.f32 0.0078125, %v1912_v55 }
 0xb34   : > { %3547 = vrsqrt.f32 %v1915_v56  ;;  %v1916_v58 = vadd.f32 1e-05, %v1914_v57 }
 0xb36   : > { %3549 = vrsqrt.f32 %v1916_v58 }
 0xb3e   : > { %v3548_v59 = vpop.eup %3547 }
 0xb3f   : > { %v1919_v61 = vmul.f32 %v3548_v59, %v4500_v24  ;;  %v3495_v24 = vld [vmem:[#allocation14 + $0x60] sm:$0xff]  }
 0xb40   : > { %v3550_v62 = vpop.eup %3549 }
 0xb41   : > { %v1920_v63 = vmul.f32 %v3550_v62, %v4503_v26  ;;  %v1927_v2 = vmul.f32 %v2942_v60, %v1919_v61  ;;  %v3497_v26 = vld [vmem:[#allocation14 + $0x20] sm:$0xff]  }
 0xb43   : > { %v1928_v1 = vmul.f32 %v2942_v60, %v1920_v63  ;;  %v1935_v4 = vadd.f32 %v2943_v3, %v1927_v2 }
 0xb45   : > { %v1936_v5 = vadd.f32 %v2943_v3, %v1928_v1 }
 0xb47   : > { %v1937_v6 = vpack.c.bf16 %v1936_v5, %v1935_v4 }
 0xb49   : > { %2163 = vmatmul.mubr.bf16.vlgmr.msra.gmra.mrb[20].mxu0 %v1937_v6  ;;  %2206 = vmatmul.mubr.bf16.vlgmr.msra.gmra.mrb[32].mxu1 %v1937_v6 }
 0xb4a   : > { %3087 = vmatpush3.bf16.msra.mxu0 %v3481_v9  ;;  %3109 = vmatpush3.bf16.msra.mxu1 %v3482_v10 }
 0xb4b   : > { %3088 = vmatprep.subr.bf16.mxu0 %v3483_v13  ;;  %3110 = vmatprep.subr.bf16.mxu1 %v3484_v51 }
 0xb4e   : > { %3089 = vmatpush3.bf16.msra.mxu0 %v3485_v15  ;;  %3111 = vmatpush3.bf16.msra.mxu1 %v3486_v17 }
 0xb4f   : > { %3090 = vmatprep.subr.bf16.mxu0 %v3487_v18  ;;  %3112 = vmatprep.subr.bf16.mxu1 %v3488_v19 }
 0xb52   : > { %3091 = vmatpush3.bf16.msra.mxu0 %v3489_v12  ;;  %3113 = vmatpush3.bf16.msra.mxu1 %v3490_v20 }
 0xb53   : > { %3092 = vmatprep.subr.bf16.mxu0 %v3491_v16  ;;  %3114 = vmatprep.subr.bf16.mxu1 %v3492_v21 }
 0xb56   : > { %3093 = vmatpush3.bf16.msra.mxu0 %v3493_v22  ;;  %3115 = vmatpush3.bf16.msra.mxu1 %v3494_v23 }
 0xb57   : > { %3094 = vmatprep.subr.bf16.mxu0 %v3495_v24  ;;  %3116 = vmatprep.subr.bf16.mxu1 %v3496_v25 }
 0xb5a   : > { %3095 = vmatpush3.bf16.msra.mxu0 %v3497_v26  ;;  %3117 = vmatpush3.bf16.msra.mxu1 %v3498_v27 }
 0xb5b   : > { %3096 = vmatprep.subr.bf16.mxu0 %v3499_v28  ;;  %3118 = vmatprep.subr.bf16.mxu1 %v3500_v29 }
 0xb5e   : > { %3097 = vmatpush3.bf16.msra.mxu0 %v3501_v31  ;;  %3119 = vmatpush3.bf16.msra.mxu1 %v3502_v32 }
 0xb5f   : > { %3098 = vmatprep.subr.bf16.mxu0 %v3503_v33  ;;  %3120 = vmatprep.subr.bf16.mxu1 %v3504_v34 }
 0xb62   : > { %3099 = vmatpush3.bf16.msra.mxu0 %v3505_v36  ;;  %3121 = vmatpush3.bf16.msra.mxu1 %v3506_v0 }
 0xb63   : > { %3100 = vmatprep.subr.bf16.mxu0 %v3507_v37  ;;  %3122 = vmatprep.subr.bf16.mxu1 %v3508_v30 }
 0xb66   : > { %3101 = vmatpush3.bf16.msra.mxu0 %v3509_v38  ;;  %3123 = vmatpush3.bf16.msra.mxu1 %v3510_v35 }
 0xc1c   : > { %v2164_v40 = vpop.f32.mrb[20].mxu0  ;;  %v2207_v39 = vpop.f32.mrb[32].mxu1 }
 0xc1d   : > { %v2224_v42 = vmul.f32 0.044715, %v2164_v40  ;;  %v2226_v41 = vmul.f32 0.044715, %v2207_v39  ;;  %v4517_v43 = vpop.f32.mrb[21].mxu0  ;;  %v4519_v44 = vpop.f32.mrb[33].mxu1 }
 0xc1e   : > { %v2225_v47 = vmul.f32 0.044715, %v4517_v43  ;;  %v2227_v48 = vmul.f32 0.044715, %v4519_v44  ;;  %v2168_v49 = vpop.f32.mrb[22].mxu0  ;;  %v2211_v50 = vpop.f32.mrb[34].mxu1 }
 0xc1f   : > { %v2232_v45 = vmul.f32 %v2224_v42, %v2164_v40  ;;  %v2234_v46 = vmul.f32 %v2226_v41, %v2207_v39  ;;  %v2228_v52 = vmul.f32 0.044715, %v2168_v49  ;;  %v2230_v53 = vmul.f32 0.044715, %v2211_v50  ;;  %v2170_v58 = vpop.f32.mrb[23].mxu0  ;;  %v2213_v59 = vpop.f32.mrb[35].mxu1 }
 0xc20   : > { %v2233_v56 = vmul.f32 %v2225_v47, %v4517_v43  ;;  %v2235_v57 = vmul.f32 %v2227_v48, %v4519_v44  ;;  %v2229_v62 = vmul.f32 0.044715, %v2170_v58  ;;  %v2231_v63 = vmul.f32 0.044715, %v2213_v59 }
 0xc21   : > { %v2240_v54 = vmul.f32 %v2232_v45, %v2164_v40  ;;  %v2242_v55 = vmul.f32 %v2234_v46, %v2207_v39  ;;  %v2236_v60 = vmul.f32 %v2228_v52, %v2168_v49  ;;  %v2238_v61 = vmul.f32 %v2230_v53, %v2211_v50 }
 0xc22   : > { %v2241_v1 = vmul.f32 %v2233_v56, %v4517_v43  ;;  %v2243_v4 = vmul.f32 %v2235_v57, %v4519_v44  ;;  %v2237_v7 = vmul.f32 %v2229_v62, %v2170_v58  ;;  %v2239_v8 = vmul.f32 %v2231_v63, %v2213_v59 }
 0xc23   : > { %v2248_v2 = vadd.f32 %v2240_v54, %v2164_v40  ;;  %v2250_v3 = vadd.f32 %v2242_v55, %v2207_v39  ;;  %v2244_v5 = vmul.f32 %v2236_v60, %v2168_v49  ;;  %v2246_v6 = vmul.f32 %v2238_v61, %v2211_v50 }
 0xc24   : > { %v2249_v13 = vadd.f32 %v2241_v1, %v4517_v43  ;;  %v2251_v51 = vadd.f32 %v2243_v4, %v4519_v44  ;;  %v2245_v18 = vmul.f32 %v2237_v7, %v2170_v58  ;;  %v2247_v19 = vmul.f32 %v2239_v8, %v2213_v59 }
 0xc25   : > { %v2256_v9 = vmul.f32 0.7978846, %v2248_v2  ;;  %v2258_v10 = vmul.f32 0.7978846, %v2250_v3  ;;  %v2252_v15 = vadd.f32 %v2244_v5, %v2168_v49  ;;  %v2254_v17 = vadd.f32 %v2246_v6, %v2211_v50 }
 0xc26   : > { %v2257_v12 = vmul.f32 0.7978846, %v2249_v13  ;;  %v2259_v20 = vmul.f32 0.7978846, %v2251_v51  ;;  %v2253_v22 = vadd.f32 %v2245_v18, %v2170_v58  ;;  %v2255_v23 = vadd.f32 %v2247_v19, %v2213_v59 }
 0xc27   : > { %3551 = vtanh.f32 %v2256_v9  ;;  %v2260_v16 = vmul.f32 0.7978846, %v2252_v15  ;;  %v2262_v21 = vmul.f32 0.7978846, %v2254_v17  ;;  %v2216_v33 = vmul.f32 0.5, %v2164_v40 }
 0xc28   : > { %3553 = vtanh.f32 %v2258_v10  ;;  %v2261_v24 = vmul.f32 0.7978846, %v2253_v22  ;;  %v2263_v25 = vmul.f32 0.7978846, %v2255_v23  ;;  %v2218_v34 = vmul.f32 0.5, %v2207_v39 }
 0xc29   : > { %3555 = vtanh.f32 %v2257_v12  ;;  %v2220_v37 = vmul.f32 0.5, %v2168_v49  ;;  %v2222_v30 = vmul.f32 0.5, %v2211_v50  ;;  %v2217_v41 = vmul.f32 0.5, %v4517_v43 }
 0xc2a   : > { %3557 = vtanh.f32 %v2259_v20  ;;  %v2221_v45 = vmul.f32 0.5, %v2170_v58  ;;  %v2219_v53 = vmul.f32 0.5, %v4519_v44  ;;  %v2223_v40 = vmul.f32 0.5, %v2213_v59 }
 0xc2b   : > { %3559 = vtanh.f32 %v2260_v16 }
 0xc2c   : > { %3561 = vtanh.f32 %v2262_v21 }
 0xc2d   : > { %3563 = vtanh.f32 %v2261_v24 }
 0xc2e   : > { %3565 = vtanh.f32 %v2263_v25 }
 0xc31   : > { %v3552_v26 = vpop.eup %3551 }
 0xc32   : > { %v3554_v27 = vpop.eup %3553  ;;  %v2272_v31 = vadd.f32 1.0, %v3552_v26 }
 0xc33   : > { %v3556_v28 = vpop.eup %3555  ;;  %v2274_v36 = vadd.f32 1.0, %v3554_v27 }
 0xc34   : > { %v3558_v29 = vpop.eup %3557  ;;  %v2273_v38 = vadd.f32 1.0, %v3556_v28  ;;  %v2280_v54 = vmul.f32 %v2272_v31, %v2216_v33 }
 0xc35   : > { %v3560_v32 = vpop.eup %3559  ;;  %v2275_v46 = vadd.f32 1.0, %v3558_v29  ;;  %v2282_v56 = vmul.f32 %v2274_v36, %v2218_v34 }
 0xc36   : > { %v3562_v0 = vpop.eup %3561  ;;  %v2276_v35 = vadd.f32 1.0, %v3560_v32  ;;  %v2281_v50 = vmul.f32 %v2273_v38, %v2217_v41 }
 0xc37   : > { %v3564_v42 = vpop.eup %3563  ;;  %v2278_v47 = vadd.f32 1.0, %v3562_v0  ;;  %v2283_v61 = vmul.f32 %v2275_v46, %v2219_v53 }
 0xc38   : > { %v3566_v48 = vpop.eup %3565  ;;  %v2277_v52 = vadd.f32 1.0, %v3564_v42  ;;  %v2284_v55 = vmul.f32 %v2276_v35, %v2220_v37 }
 0xc39   : > { %v2279_v39 = vadd.f32 1.0, %v3566_v48  ;;  %v2286_v49 = vmul.f32 %v2278_v47, %v2222_v30 }
 0xc3a   : > { %v2285_v57 = vmul.f32 %v2277_v52, %v2221_v45  ;;  %v2288_v60 = vpack.c.bf16 %v2284_v55, %v2280_v54 }
 0xc3b   : > { %v2287_v62 = vmul.f32 %v2279_v39, %v2223_v40  ;;  %v2290_v43 = vpack.c.bf16 %v2286_v49, %v2282_v56 }
 0xc3c   : > { %v2289_v58 = vpack.c.bf16 %v2285_v57, %v2281_v50 }
 0xc3d   : > { %v2291_v63 = vpack.c.bf16 %v2287_v62, %v2283_v61 }
 0xc3e   : > { %2580 = vmatprep.mubr.bf16.mxu0 %v2289_v58 }
 0xc3f   : > { %2621 = vmatprep.mubr.bf16.mxu1 %v2291_v63  ;;  %2581 = vmatmul.mubr.bf16.vlgmr.msra.gmra.mrb[24].mxu0 %v2288_v60 }
 0xc40   : > { %2622 = vmatmul.mubr.bf16.vlgmr.msra.gmra.mrb[36].mxu1 %v2290_v43 }
 0xd12   : > { %v3102_v44 = vpop.f32.mrb[24].mxu0 }
 0xd13   : > { %v3124_v59 = vpop.f32.mrb[36].mxu1  ;;  %v3103_v2 = vpop.f32.mrb[25].mxu0 }
 0xd14   : > { %v3104_v3 = vadd.f32 %v3103_v2, %v3102_v44  ;;  %v3125_v1 = vpop.f32.mrb[37].mxu1  ;;  %v3105_v4 = vpop.f32.mrb[26].mxu0 }
 0xd15   : > { %v3126_v5 = vadd.f32 %v3125_v1, %v3124_v59  ;;  %v3127_v6 = vpop.f32.mrb[38].mxu1  ;;  %v3106_v7 = vpop.f32.mrb[27].mxu0 }
 0xd16   : > { %v2583_v8 = vadd.f32 %v3104_v3, %v4493_v11  ;;  %v3107_v9 = vadd.f32 %v3106_v7, %v3105_v4  ;;  %v3128_v10 = vpop.f32.mrb[39].mxu1 }
 0xd17   : > { %v3129_v13 = vadd.f32 %v3128_v10, %v3127_v6 }
 0xd18   : > { %v2624_v51 = vadd.f32 %v3126_v5, %v2583_v8  ;;  %v2586_v15 = vadd.f32 %v3107_v9, %v4495_v14 }
 0xd1a   : > { %2630 = vst [vmem:[%s626_s6] sm:$0xff] %v2624_v51  ;;  %v2627_v17 = vadd.f32 %v3129_v13, %v2586_v15 }
 0xd1c   : > { %2631 = vst [vmem:[%s626_s6 + $0x8] sm:$0xff] %v2627_v17 }
 0xd1d   : > { %3810 = shalt.err (!%p3807_p10)
}
 0xd1e   : > { %s3811_s9 = scalar_lea.hbm %s4540_s20, 256  ;;  %s3815_s25 = scalar_lea.hbm %s4693_s14, 512 }
 0xd1f   : > { %p3812_p1 = scmp.ne.s32.totalorder %s4540_s20, %s3811_s9  ;;  %p3816_p2 = scmp.lt.u32.totalorder %s4540_s20, %s4693_s14 }
 0xd20   : > { %p3817_p6 = scmp.lt.u32.totalorder %s3815_s25, %s3811_s9  ;;  %p3819_p7 = scmp.lt.u32.totalorder %s3811_s9, %s4540_s20 }
 0xd21   : > { %p3813_p12 = pnand %p3812_p1, %p4694_p13 }
 0xd22   : > { %p3818_p4 = por %p3817_p6, %p3816_p2 }
 0xd23   : > { %p3814_p3 = pneg %p3813_p12 }
 0xd24   : > { %p3820_p9 = por %p3819_p7, %p3818_p4 }
 0xd26   : > { %p3821_p5 = pnand %p3820_p9, %p3814_p3 }
 0xd28   : > { %3824 = shalt.err (!%p3821_p5)
}
 0xd29   : > { %s3913_s27 = smov 128   ;;  %s3914_s3 = smov 8  }
 0xd2a   : > { %3224 = dma.vmem_to_hbm [thread:$0]  (%p4694_p13), %s4534_s30, 256, %s4540_s20, %s2633_s18, %s3913_s27, %s3913_s27, %s3914_s3  }
 0xd2b PF: > { %s4695_s22 = sld [smem:[#allocation23_spill]]  ;;  %s4696_s5 = sld [smem:[#allocation32_spill]] }
 0xd2c   : > { %s4697_s6 = sld [smem:[#allocation26_spill]] }
 0xd31   : > { %s2663_s10 = sand.u32 1, %s4695_s22   ;;  %p4698_p8 = scmp.ne.s32.totalorder %s4696_s5, 0 }
 0xd32   : > { %p4699_p11 = scmp.ge.s32.totalorder %s4697_s6, 2  ;;  %s2664_s19 = scalar_lea.sflag [#allocation4], %s2663_s10 }
 0xd34   : > { %p3253_p0 = pnand %p4699_p11, %p4698_p8 }
 0xd36   : > { %3870 = dma.done.wait (!%p3253_p0), %s2664_s19, 256  }
 0xd37   : > { %3872 = vsyncadd (!%p3253_p0), %s2664_s19, 4294967040  ;;  %s35_s30 = sadd.s32 1, %s4697_s6   ;;  %s4700_s23 = sld [smem:[#allocation24_spill]] }
 0xd38   : > { %p32_p10 = scmp.ge.s32.totalorder %s35_s30, 4   ;;  %s4701_s27 = sld [smem:[#allocation31_spill]] }
 0xd39   : > { %s4702_s15 = sld [smem:[#allocation28_spill]]  ;;  %s4703_s25 = smov %s3879_s26 }
 0xd3a   : > { %s4705_s28 = smov %s3891_s29  ;;  %34 = sbr.rel (!%p32_p10) target bundleno = 21 (0x15), region = 161 }
 0xd3d   : > { %s4704_s26 = smov %s4700_s23 }
 0xd3f   : > { %s4706_s29 = smov %s4702_s15 }
 0xd41   :  { %2669 = vsyncpa [#allocation3], 1 }
 0xd42   :  { %2671 = vsyncpa [#allocation3 + $0x1], 1 }
 0xd43   :  { %2672 = vsyncpa [#allocation6], 1 }
 0xd44   :  { %2674 = vsyncpa [#allocation6 + $0x1], 1 }
 0xd45   :  { %2675 = vsyncpa [#allocation9], 1 }
 0xd46   :  { %2676 = vsyncpa [#allocation12], 1 }
 0xd47   :  { %2677 = vsyncpa [#allocation15], 1 }
 0xd48   :  { %2678 = vsyncpa [#allocation4], 1 }
 0xd49   :  { %2680 = vsyncpa [#allocation4 + $0x1], 1 }

</bundles_post_ra>
